<compile_context>
chip_gen: v5e
topology: v5e:2x2
jax: 0.10.0
libtpu: 0.0.40
codegen_flags: <defaults>
</compile_context>

<pallas_src>
import functools

import jax
import jax.numpy as jnp
from jax import lax
from jax.experimental import pallas as pl
from jax.experimental.pallas import tpu as pltpu


# ----------------------------------------------------------------------------
# Pallas kernels
# ----------------------------------------------------------------------------
def linear_kernel(x_ref, w_ref, b_ref, o_ref):
    # x: (rows, Din) f32, w: (Din, Dout) bf16, b: (1, Dout) f32
    o_ref[...] = (
        jnp.dot(x_ref[...].astype(jnp.bfloat16), w_ref[...],
                preferred_element_type=jnp.float32)
        + b_ref[...]
    )


def decoder_layer_kernel(
    x_ref,        # (tc*B, H) f32    layer input chunk (row = t*B + b, time-major)
    scale_ref,    # (1, H)    f32    RMSNorm scale
    w_ih_ref,     # (H, 4H)   bf16   LSTM input->gates (gate order i, f, g, o)
    b_ref,        # (1, 4H)   f32    combined LSTM bias (b_ih + b_hh)
    w_hh_ref,     # (H, 4H)   f32    LSTM hidden->gates (kept f32 for accuracy)
    gu_w_ref,     # (H, 2I)   bf16   fused [gate_proj | up_proj]
    down_w_ref,   # (I, H)    bf16   down_proj
    out_ref,      # (tc*B, H) f32    layer output chunk
    xp_scr,       # scratch (tc, B, 4H) f32   precomputed input projections
    hs_scr,       # scratch (tc, B, H)  f32   per-step LSTM outputs
    h_scr,        # scratch (B, H) f32        hidden carry across T-chunks
    c_scr,        # scratch (B, H) f32        cell   carry across T-chunks
    *,
    batch,
):
    rows, H = x_ref.shape
    tc = rows // batch

    # Reset the recurrent carry at the start of the sequence (first T-chunk).
    @pl.when(pl.program_id(0) == 0)
    def _():
        h_scr[...] = jnp.zeros_like(h_scr)
        c_scr[...] = jnp.zeros_like(c_scr)

    x = x_ref[...]                                            # (rows, H) f32

    # --- RMSNorm (eps = 1e-8) : rsqrt on the EUP -----------------------------
    ms = jnp.mean(x * x, axis=-1, keepdims=True)
    xn = x * lax.rsqrt(ms + jnp.float32(1e-8)) * scale_ref[...]

    # --- LSTM input projection for all timesteps in the chunk ---------------
    # Single (rows, H) @ (H, 4H) bf16 matmul, f32 accumulation.
    xp = (
        jnp.dot(xn.astype(jnp.bfloat16), w_ih_ref[...],
                preferred_element_type=jnp.float32)
        + b_ref[...]
    )
    xp_scr[...] = xp.reshape(tc, batch, 4 * H)

    # --- LSTM recurrence over the chunk (sequential, f32) --------------------
    w_hh = w_hh_ref[...]

    def step(t, carry):
        h, c = carry
        gates = xp_scr[t] + jnp.dot(h, w_hh, preferred_element_type=jnp.float32)
        i_f = jax.nn.sigmoid(gates[:, : 2 * H])               # i and f together
        g = jnp.tanh(gates[:, 2 * H: 3 * H])
        o = jax.nn.sigmoid(gates[:, 3 * H:])
        c = i_f[:, H:] * c + i_f[:, :H] * g
        h = o * jnp.tanh(c)
        hs_scr[t] = h
        return (h, c)

    unroll = True if tc <= 16 else 8
    h_last, c_last = lax.fori_loop(0, tc, step, (h_scr[...], c_scr[...]),
                                   unroll=unroll)
    h_scr[...] = h_last
    c_scr[...] = c_last

    # --- residual + MLP (fused gate|up matmul, exact GELU, down matmul) ------
    x1 = x + hs_scr[...].reshape(rows, H)                     # residual #1
    gu = jnp.dot(x1.astype(jnp.bfloat16), gu_w_ref[...],
                 preferred_element_type=jnp.float32)          # (rows, 2I)
    inter = gu.shape[1] // 2
    gate = gu[:, :inter]
    up = gu[:, inter:]
    # exact GELU (nn.GELU default)
    act = 0.5 * gate * (1.0 + lax.erf(gate * jnp.float32(0.7071067811865476)))
    mlp = jnp.dot((act * up).astype(jnp.bfloat16), down_w_ref[...],
                  preferred_element_type=jnp.float32)         # (rows, H)
    out_ref[...] = x1 + mlp                                   # residual #2


# ----------------------------------------------------------------------------
# Wrappers
# ----------------------------------------------------------------------------
def linear_pallas(x2d, w, b, *, target_rows=512):
    n, din = x2d.shape
    dout = w.shape[1]
    br = n if n <= target_rows else target_rows
    return pl.pallas_call(
        linear_kernel,
        out_shape=jax.ShapeDtypeStruct((n, dout), jnp.float32),
        grid_spec=pltpu.PrefetchScalarGridSpec(
            num_scalar_prefetch=0,
            grid=(pl.cdiv(n, br),),
            in_specs=[
                pl.BlockSpec((br, din), lambda i: (i, 0)),
                pl.BlockSpec((din, dout), lambda i: (0, 0)),
                pl.BlockSpec((1, dout), lambda i: (0, 0)),
            ],
            out_specs=pl.BlockSpec((br, dout), lambda i: (i, 0)),
        ),
        compiler_params=pltpu.CompilerParams(
            dimension_semantics=("parallel",)),
    )(x2d, w, b)


def _choose_tc(T, B, target_rows=512):
    """Timesteps per chunk: ~target_rows rows, block rows multiple of 8."""
    if T * B <= target_rows:
        return T
    tc = max(1, target_rows // B)
    while (tc * B) % 8 != 0 and tc > 1:
        tc -= 1
    return tc


def decoder_layer_pallas(x2d, batch, lp):
    rows, H = x2d.shape
    T = rows // batch
    tc = _choose_tc(T, batch)
    br = tc * batch
    I2 = lp["gu_w"].shape[1]
    kernel = functools.partial(decoder_layer_kernel, batch=batch)
    return pl.pallas_call(
        kernel,
        out_shape=jax.ShapeDtypeStruct((rows, H), jnp.float32),
        grid_spec=pltpu.PrefetchScalarGridSpec(
            num_scalar_prefetch=0,
            grid=(pl.cdiv(T, tc),),
            in_specs=[
                pl.BlockSpec((br, H), lambda t: (t, 0)),          # x chunk
                pl.BlockSpec((1, H), lambda t: (0, 0)),           # RMSNorm scale
                pl.BlockSpec((H, 4 * H), lambda t: (0, 0)),       # w_ih (bf16)
                pl.BlockSpec((1, 4 * H), lambda t: (0, 0)),       # lstm bias
                pl.BlockSpec((H, 4 * H), lambda t: (0, 0)),       # w_hh (f32)
                pl.BlockSpec((H, I2), lambda t: (0, 0)),          # [gate|up] (bf16)
                pl.BlockSpec((I2 // 2, H), lambda t: (0, 0)),     # down (bf16)
            ],
            out_specs=pl.BlockSpec((br, H), lambda t: (t, 0)),
            scratch_shapes=[
                pltpu.VMEM((tc, batch, 4 * H), jnp.float32),      # xp
                pltpu.VMEM((tc, batch, H), jnp.float32),          # lstm outputs
                pltpu.VMEM((batch, H), jnp.float32),              # h carry
                pltpu.VMEM((batch, H), jnp.float32),              # c carry
            ],
        ),
        compiler_params=pltpu.CompilerParams(
            dimension_semantics=("arbitrary",),   # sequential recurrence over T
            vmem_limit_bytes=32 * 1024 * 1024,
        ),
    )(x2d, lp["scale"], lp["w_ih"], lp["b"], lp["w_hh"], lp["gu_w"], lp["down_w"])


@jax.jit
def lstm_mixer_forward(x_btf, kparams):
    """x_btf: (B, T, ohlcv) f32 -> (B, T, ohlcv) f32 (batch_first, like PyTorch)."""
    B, T, F = x_btf.shape
    # Time-major flat layout (row = t*B + b) so the recurrence can chunk over T
    # and every parallel matmul sees M = T*B rows.
    x_flat = jnp.transpose(x_btf, (1, 0, 2)).reshape(T * B, F)
    h = linear_pallas(x_flat, kparams["embed_w"], kparams["embed_b"])
    for lp in kparams["layers"]:
        h = decoder_layer_pallas(h, B, lp)
    out = linear_pallas(h, kparams["head_w"], kparams["head_b"])
    return jnp.transpose(out.reshape(T, B, F), (1, 0, 2))


# ----------------------------------------------------------------------------
# Pure-JAX f32 reference (for correctness check)
# ----------------------------------------------------------------------------
def ref_forward(x_btf, params):
    h = x_btf @ params["embed_w"] + params["embed_b"]
    B, T, H = h.shape
    for lp in params["layers"]:
        res = h
        rms = jnp.sqrt(jnp.mean(h * h, axis=-1, keepdims=True) + 1e-8)
        hn = h / rms * lp["scale"]
        xp = jnp.einsum("bth,hg->btg", hn, lp["w_ih"]) + lp["b"]

        def step(carry, x_t):
            hh, cc = carry
            gates = x_t + hh @ lp["w_hh"]
            i = jax.nn.sigmoid(gates[:, 0:H])
            f = jax.nn.sigmoid(gates[:, H:2 * H])
            g = jnp.tanh(gates[:, 2 * H:3 * H])
            o = jax.nn.sigmoid(gates[:, 3 * H:4 * H])
            cc = f * cc + i * g
            hh = o * jnp.tanh(cc)
            return (hh, cc), hh

        init = (jnp.zeros((B, H), jnp.float32), jnp.zeros((B, H), jnp.float32))
        _, hs = lax.scan(step, init, jnp.transpose(xp, (1, 0, 2)))
        h = res + jnp.transpose(hs, (1, 0, 2))

        res = h
        gate = h @ lp["gate_w"]
        up = h @ lp["up_w"]
        act = 0.5 * gate * (1.0 + lax.erf(gate * 0.7071067811865476))
        h = res + (act * up) @ lp["down_w"]
    return h @ params["head_w"]


# ----------------------------------------------------------------------------
# Deterministic synthetic parameters (shapes from LSTM_Mixer.__init__)
# ----------------------------------------------------------------------------
def make_params(key, ohlcv, hidden, inter, num_layers):
    def nrm(k, shape, s=0.1):
        return s * jax.random.normal(k, shape, jnp.float32)

    keys = jax.random.split(key, 3 + num_layers)
    params = {
        "embed_w": nrm(keys[0], (ohlcv, hidden)),        # Linear(ohlcv, H).weight.T
        "embed_b": nrm(keys[1], (1, hidden)),            # Linear bias
        "head_w": nrm(keys[2], (hidden, ohlcv)),         # lm_head.weight.T (no bias)
        "layers": [],
    }
    for li in range(num_layers):
        lk = jax.random.split(keys[3 + li], 7)
        params["layers"].append({
            "scale": 1.0 + nrm(lk[0], (1, hidden), 0.05),  # RMSNorm scale
            "w_ih": nrm(lk[1], (hidden, 4 * hidden)),      # lstm.weight_ih_l0.T (i,f,g,o)
            "w_hh": nrm(lk[2], (hidden, 4 * hidden)),      # lstm.weight_hh_l0.T
            "b": nrm(lk[3], (1, 4 * hidden)),              # b_ih + b_hh combined
            "gate_w": nrm(lk[4], (hidden, inter)),         # mlp.gate_proj.weight.T
            "up_w": nrm(lk[5], (hidden, inter)),           # mlp.up_proj.weight.T
            "down_w": nrm(lk[6], (inter, hidden)),         # mlp.down_proj.weight.T
        })
    return params


def prepare_kernel_params(p):
    """Cast / fuse weights for the kernels (bf16 matmul operands, fused gate|up)."""
    bf16 = jnp.bfloat16
    kp = {
        "embed_w": p["embed_w"].astype(bf16),
        "embed_b": p["embed_b"],
        "head_w": p["head_w"].astype(bf16),
        "head_b": jnp.zeros((1, p["head_w"].shape[1]), jnp.float32),  # lm_head has no bias
        "layers": [],
    }
    for lp in p["layers"]:
        kp["layers"].append({
            "scale": lp["scale"],
            "w_ih": lp["w_ih"].astype(bf16),
            "b": lp["b"],
            "w_hh": lp["w_hh"],                    # keep f32 for the recurrence
            "gu_w": jnp.concatenate([lp["gate_w"], lp["up_w"]], axis=1).astype(bf16),
            "down_w": lp["down_w"].astype(bf16),
        })
    return kp


if __name__ == "__main__":
    # Small config consistent with LSTMConfig fields.
    B, T = 2, 8
    OHLCV, HIDDEN, INTER, NUM_LAYERS = 5, 32, 64, 2

    key = jax.random.PRNGKey(0)
    kx, kp = jax.random.split(key)
    x = jax.random.normal(kx, (B, T, OHLCV), jnp.float32)
    params = make_params(kp, OHLCV, HIDDEN, INTER, NUM_LAYERS)
    kparams = prepare_kernel_params(params)

    out = lstm_mixer_forward(x, kparams)
    out = jax.block_until_ready(out)

    ref = ref_forward(x, params)
    assert out.shape == (B, T, OHLCV)
    max_err = float(jnp.max(jnp.abs(out - ref)))
    # bf16 MXU operands with f32 accumulation -> slightly looser than pure-f32.
    assert max_err < 2e-2, f"mismatch vs reference: {max_err}"

    print("KERNEL_OK")
</pallas_src>

<mosaic_0001>
module attributes {stable_mosaic.version = 11 : i64} {
  func.func @linear_kernel(%arg0: i32, %arg1: memref<16x5xf32, #tpu.memory_space<vmem>>, %arg2: memref<5x32xbf16, #tpu.memory_space<vmem>>, %arg3: memref<1x32xf32, #tpu.memory_space<vmem>>, %arg4: memref<16x32xf32, #tpu.memory_space<vmem>>) attributes {dimension_semantics = [#tpu.dimension_semantics<parallel>], iteration_bounds = array<i64: 1>, scalar_prefetch = 0 : i64, scratch_operands = 0 : i64, tpu.core_type = #tpu.core_type<tc>, window_params = [{transform_indices = @transform_0, window_bounds = array<i64: 16, 5>}, {pipeline_mode = #tpu.pipeline_mode<synchronous>, transform_indices = @transform_1, window_bounds = array<i64: 5, 32>}, {pipeline_mode = #tpu.pipeline_mode<synchronous>, transform_indices = @transform_2, window_bounds = array<i64: 1, 32>}, {transform_indices = @transform_3, window_bounds = array<i64: 16, 32>}]} {
    %c0 = arith.constant 0 : index
    %c0_0 = arith.constant 0 : index
    %0 = vector.load %arg1[%c0, %c0_0] : memref<16x5xf32, #tpu.memory_space<vmem>>, vector<16x5xf32>
    %1 = arith.truncf %0 : vector<16x5xf32> to vector<16x5xbf16>
    %c0_1 = arith.constant 0 : index
    %c0_2 = arith.constant 0 : index
    %2 = vector.load %arg2[%c0_1, %c0_2] : memref<5x32xbf16, #tpu.memory_space<vmem>>, vector<5x32xbf16>
    %cst = arith.constant dense<0.000000e+00> : vector<16x32xf32>
    %3 = tpu.matmul %1, %2, %cst {dimension_numbers = #tpu.dot_dimension_numbers<[1], [0], [0], [1], [0, 0, 1, 1], [], []>} : vector<16x5xbf16>, vector<5x32xbf16>, vector<16x32xf32> -> vector<16x32xf32>
    %c0_3 = arith.constant 0 : index
    %c0_4 = arith.constant 0 : index
    %4 = vector.load %arg3[%c0_3, %c0_4] : memref<1x32xf32, #tpu.memory_space<vmem>>, vector<1x32xf32>
    %5 = vector.broadcast %4 : vector<1x32xf32> to vector<16x32xf32>
    %6 = arith.addf %3, %5 : vector<16x32xf32>
    %c0_5 = arith.constant 0 : index
    %c0_6 = arith.constant 0 : index
    %7 = vector.load %arg4[%c0_5, %c0_6] : memref<16x32xf32, #tpu.memory_space<vmem>>, vector<16x32xf32>
    tpu.vector_store %arg4[%c0_5, %c0_6], %6 {strides = array<i32>} : memref<16x32xf32, #tpu.memory_space<vmem>>, vector<16x32xf32>,
    return
  }
  func.func @transform_0(%arg0: i32) -> (i32, i32) {
    %c0_i32 = arith.constant 0 : i32
    %c0_i32_0 = arith.constant 0 : i32
    return %arg0, %c0_i32 : i32, i32
  }
  func.func @transform_1(%arg0: i32) -> (i32, i32) {
    %c0_i32 = arith.constant 0 : i32
    %c0_i32_0 = arith.constant 0 : i32
    %c0_i32_1 = arith.constant 0 : i32
    return %c0_i32, %c0_i32_0 : i32, i32
  }
  func.func @transform_2(%arg0: i32) -> (i32, i32) {
    %c0_i32 = arith.constant 0 : i32
    %c0_i32_0 = arith.constant 0 : i32
    %c0_i32_1 = arith.constant 0 : i32
    return %c0_i32, %c0_i32_0 : i32, i32
  }
  func.func @transform_3(%arg0: i32) -> (i32, i32) {
    %c0_i32 = arith.constant 0 : i32
    %c0_i32_0 = arith.constant 0 : i32
    return %arg0, %c0_i32 : i32, i32
  }
}

module attributes {stable_mosaic.version = 11 : i64} {
  func.func @decoder_layer_kernel(%arg0: i32, %arg1: memref<16x32xf32, #tpu.memory_space<vmem>>, %arg2: memref<1x32xf32, #tpu.memory_space<vmem>>, %arg3: memref<32x128xbf16, #tpu.memory_space<vmem>>, %arg4: memref<1x128xf32, #tpu.memory_space<vmem>>, %arg5: memref<32x128xf32, #tpu.memory_space<vmem>>, %arg6: memref<32x128xbf16, #tpu.memory_space<vmem>>, %arg7: memref<64x32xbf16, #tpu.memory_space<vmem>>, %arg8: memref<16x32xf32, #tpu.memory_space<vmem>>, %arg9: memref<8x2x128xf32, #tpu.memory_space<vmem>>, %arg10: memref<8x2x32xf32, #tpu.memory_space<vmem>>, %arg11: memref<2x32xf32, #tpu.memory_space<vmem>>, %arg12: memref<2x32xf32, #tpu.memory_space<vmem>>) attributes {dimension_semantics = [#tpu.dimension_semantics<arbitrary>], iteration_bounds = array<i64: 1>, scalar_prefetch = 0 : i64, scratch_operands = 4 : i64, tpu.core_type = #tpu.core_type<tc>, window_params = [{transform_indices = @transform_0, window_bounds = array<i64: 16, 32>}, {pipeline_mode = #tpu.pipeline_mode<synchronous>, transform_indices = @transform_1, window_bounds = array<i64: 1, 32>}, {pipeline_mode = #tpu.pipeline_mode<synchronous>, transform_indices = @transform_2, window_bounds = array<i64: 32, 128>}, {pipeline_mode = #tpu.pipeline_mode<synchronous>, transform_indices = @transform_3, window_bounds = array<i64: 1, 128>}, {pipeline_mode = #tpu.pipeline_mode<synchronous>, transform_indices = @transform_4, window_bounds = array<i64: 32, 128>}, {pipeline_mode = #tpu.pipeline_mode<synchronous>, transform_indices = @transform_5, window_bounds = array<i64: 32, 128>}, {pipeline_mode = #tpu.pipeline_mode<synchronous>, transform_indices = @transform_6, window_bounds = array<i64: 64, 32>}, {transform_indices = @transform_7, window_bounds = array<i64: 16, 32>}]} {
    %c0_i32 = arith.constant 0 : i32
    %0 = arith.cmpi eq, %arg0, %c0_i32 : i32
    %1 = arith.extui %0 : i1 to i32
    %c0_i32_0 = arith.constant 0 : i32
    %2 = arith.cmpi ne, %1, %c0_i32_0 : i32
    scf.if %2 {
      %cst_95 = arith.constant 0.000000e+00 : f32
      %292 = vector.broadcast %cst_95 : f32 to vector<2x32xf32>
      %c0_96 = arith.constant 0 : index
      %c0_97 = arith.constant 0 : index
      %293 = vector.load %arg11[%c0_96, %c0_97] : memref<2x32xf32, #tpu.memory_space<vmem>>, vector<2x32xf32>
      tpu.vector_store %arg11[%c0_96, %c0_97], %292 {strides = array<i32>} : memref<2x32xf32, #tpu.memory_space<vmem>>, vector<2x32xf32>,
      %cst_98 = arith.constant 0.000000e+00 : f32
      %294 = vector.broadcast %cst_98 : f32 to vector<2x32xf32>
      %c0_99 = arith.constant 0 : index
      %c0_100 = arith.constant 0 : index
      %295 = vector.load %arg12[%c0_99, %c0_100] : memref<2x32xf32, #tpu.memory_space<vmem>>, vector<2x32xf32>
      tpu.vector_store %arg12[%c0_99, %c0_100], %294 {strides = array<i32>} : memref<2x32xf32, #tpu.memory_space<vmem>>, vector<2x32xf32>,
    } else {
    }
    %c0 = arith.constant 0 : index
    %c0_1 = arith.constant 0 : index
    %3 = vector.load %arg1[%c0, %c0_1] : memref<16x32xf32, #tpu.memory_space<vmem>>, vector<16x32xf32>
    %4 = arith.mulf %3, %3 : vector<16x32xf32>
    %cst = arith.constant dense<0.000000e+00> : vector<16xf32>
    %5 = vector.multi_reduction <add>, %4, %cst [1] : vector<16x32xf32> to vector<16xf32>
    %6 = vector.shape_cast %5 : vector<16xf32> to vector<16x1xf32>
    %cst_2 = arith.constant 3.200000e+01 : f32
    %7 = vector.broadcast %cst_2 : f32 to vector<16x1xf32>
    %8 = arith.divf %6, %7 : vector<16x1xf32>
    %cst_3 = arith.constant 9.99999993E-9 : f32
    %9 = vector.broadcast %cst_3 : f32 to vector<16x1xf32>
    %10 = arith.addf %8, %9 : vector<16x1xf32>
    %11 = math.rsqrt %10 : vector<16x1xf32>
    %12 = vector.broadcast %11 : vector<16x1xf32> to vector<16x32xf32>
    %13 = arith.mulf %3, %12 : vector<16x32xf32>
    %c0_4 = arith.constant 0 : index
    %c0_5 = arith.constant 0 : index
    %14 = vector.load %arg2[%c0_4, %c0_5] : memref<1x32xf32, #tpu.memory_space<vmem>>, vector<1x32xf32>
    %15 = vector.broadcast %14 : vector<1x32xf32> to vector<16x32xf32>
    %16 = arith.mulf %13, %15 : vector<16x32xf32>
    %17 = arith.truncf %16 : vector<16x32xf32> to vector<16x32xbf16>
    %c0_6 = arith.constant 0 : index
    %c0_7 = arith.constant 0 : index
    %18 = vector.load %arg3[%c0_6, %c0_7] : memref<32x128xbf16, #tpu.memory_space<vmem>>, vector<32x128xbf16>
    %cst_8 = arith.constant dense<0.000000e+00> : vector<16x128xf32>
    %19 = tpu.matmul %17, %18, %cst_8 {dimension_numbers = #tpu.dot_dimension_numbers<[1], [0], [0], [1], [0, 0, 1, 1], [], []>} : vector<16x32xbf16>, vector<32x128xbf16>, vector<16x128xf32> -> vector<16x128xf32>
    %c0_9 = arith.constant 0 : index
    %c0_10 = arith.constant 0 : index
    %20 = vector.load %arg4[%c0_9, %c0_10] : memref<1x128xf32, #tpu.memory_space<vmem>>, vector<1x128xf32>
    %21 = vector.broadcast %20 : vector<1x128xf32> to vector<16x128xf32>
    %22 = arith.addf %19, %21 : vector<16x128xf32>
    %23 = vector.shape_cast %22 : vector<16x128xf32> to vector<8x2x128xf32>
    %c0_11 = arith.constant 0 : index
    %c0_12 = arith.constant 0 : index
    %c0_13 = arith.constant 0 : index
    %24 = vector.load %arg9[%c0_11, %c0_12, %c0_13] : memref<8x2x128xf32, #tpu.memory_space<vmem>>, vector<8x2x128xf32>
    tpu.vector_store %arg9[%c0_11, %c0_12, %c0_13], %23 {strides = array<i32>} : memref<8x2x128xf32, #tpu.memory_space<vmem>>, vector<8x2x128xf32>,
    %c0_14 = arith.constant 0 : index
    %c0_15 = arith.constant 0 : index
    %25 = vector.load %arg5[%c0_14, %c0_15] : memref<32x128xf32, #tpu.memory_space<vmem>>, vector<32x128xf32>
    %c0_16 = arith.constant 0 : index
    %c0_17 = arith.constant 0 : index
    %26 = vector.load %arg11[%c0_16, %c0_17] : memref<2x32xf32, #tpu.memory_space<vmem>>, vector<2x32xf32>
    %c0_18 = arith.constant 0 : index
    %c0_19 = arith.constant 0 : index
    %27 = vector.load %arg12[%c0_18, %c0_19] : memref<2x32xf32, #tpu.memory_space<vmem>>, vector<2x32xf32>
    %c0_i32_20 = arith.constant 0 : i32
    %28 = arith.index_cast %c0_i32_20 : i32 to index
    %c0_21 = arith.constant 0 : index
    %c0_22 = arith.constant 0 : index
    %29 = vector.load %arg9[%28, %c0_21, %c0_22] : memref<8x2x128xf32, #tpu.memory_space<vmem>>, vector<1x2x128xf32>
    %30 = vector.shape_cast %29 : vector<1x2x128xf32> to vector<2x128xf32>
    %cst_23 = arith.constant dense<0.000000e+00> : vector<2x128xf32>
    %31 = tpu.matmul %26, %25, %cst_23 {dimension_numbers = #tpu.dot_dimension_numbers<[1], [0], [0], [1], [0, 0, 1, 1], [], []>} : vector<2x32xf32>, vector<32x128xf32>, vector<2x128xf32> -> vector<2x128xf32>
    %32 = arith.addf %30, %31 : vector<2x128xf32>
    %33 = vector.extract_strided_slice %32 {offsets = [0, 0], sizes = [2, 64], strides = [1, 1]} : vector<2x128xf32> to vector<2x64xf32>
    %34 = arith.negf %33 : vector<2x64xf32>
    %35 = math.exp %34 : vector<2x64xf32>
    %cst_24 = arith.constant 1.000000e+00 : f32
    %36 = vector.broadcast %cst_24 : f32 to vector<2x64xf32>
    %37 = arith.addf %36, %35 : vector<2x64xf32>
    %38 = arith.divf %36, %37 : vector<2x64xf32>
    %39 = vector.extract_strided_slice %32 {offsets = [0, 64], sizes = [2, 32], strides = [1, 1]} : vector<2x128xf32> to vector<2x32xf32>
    %40 = math.tanh %39 : vector<2x32xf32>
    %41 = vector.extract_strided_slice %32 {offsets = [0, 96], sizes = [2, 32], strides = [1, 1]} : vector<2x128xf32> to vector<2x32xf32>
    %42 = arith.negf %41 : vector<2x32xf32>
    %43 = math.exp %42 : vector<2x32xf32>
    %cst_25 = arith.constant 1.000000e+00 : f32
    %44 = vector.broadcast %cst_25 : f32 to vector<2x32xf32>
    %45 = arith.addf %44, %43 : vector<2x32xf32>
    %46 = arith.divf %44, %45 : vector<2x32xf32>
    %47 = vector.extract_strided_slice %38 {offsets = [0, 32], sizes = [2, 32], strides = [1, 1]} : vector<2x64xf32> to vector<2x32xf32>
    %48 = arith.mulf %47, %27 : vector<2x32xf32>
    %49 = vector.extract_strided_slice %38 {offsets = [0, 0], sizes = [2, 32], strides = [1, 1]} : vector<2x64xf32> to vector<2x32xf32>
    %50 = arith.mulf %49, %40 : vector<2x32xf32>
    %51 = arith.addf %48, %50 : vector<2x32xf32>
    %52 = math.tanh %51 : vector<2x32xf32>
    %53 = arith.mulf %46, %52 : vector<2x32xf32>
    %54 = arith.index_cast %c0_i32_20 : i32 to index
    %c0_26 = arith.constant 0 : index
    %c0_27 = arith.constant 0 : index
    %55 = vector.load %arg10[%54, %c0_26, %c0_27] : memref<8x2x32xf32, #tpu.memory_space<vmem>>, vector<1x2x32xf32>
    %56 = vector.shape_cast %55 : vector<1x2x32xf32> to vector<2x32xf32>
    %57 = vector.shape_cast %53 : vector<2x32xf32> to vector<1x2x32xf32>
    tpu.vector_store %arg10[%54, %c0_26, %c0_27], %57 {strides = array<i32>} : memref<8x2x32xf32, #tpu.memory_space<vmem>>, vector<1x2x32xf32>,
    %c1_i32 = arith.constant 1 : i32
    %58 = arith.index_cast %c1_i32 : i32 to index
    %c0_28 = arith.constant 0 : index
    %c0_29 = arith.constant 0 : index
    %59 = vector.load %arg9[%58, %c0_28, %c0_29] : memref<8x2x128xf32, #tpu.memory_space<vmem>>, vector<1x2x128xf32>
    %60 = vector.shape_cast %59 : vector<1x2x128xf32> to vector<2x128xf32>
    %cst_30 = arith.constant dense<0.000000e+00> : vector<2x128xf32>
    %61 = tpu.matmul %53, %25, %cst_30 {dimension_numbers = #tpu.dot_dimension_numbers<[1], [0], [0], [1], [0, 0, 1, 1], [], []>} : vector<2x32xf32>, vector<32x128xf32>, vector<2x128xf32> -> vector<2x128xf32>
    %62 = arith.addf %60, %61 : vector<2x128xf32>
    %63 = vector.extract_strided_slice %62 {offsets = [0, 0], sizes = [2, 64], strides = [1, 1]} : vector<2x128xf32> to vector<2x64xf32>
    %64 = arith.negf %63 : vector<2x64xf32>
    %65 = math.exp %64 : vector<2x64xf32>
    %cst_31 = arith.constant 1.000000e+00 : f32
    %66 = vector.broadcast %cst_31 : f32 to vector<2x64xf32>
    %67 = arith.addf %66, %65 : vector<2x64xf32>
    %68 = arith.divf %66, %67 : vector<2x64xf32>
    %69 = vector.extract_strided_slice %62 {offsets = [0, 64], sizes = [2, 32], strides = [1, 1]} : vector<2x128xf32> to vector<2x32xf32>
    %70 = math.tanh %69 : vector<2x32xf32>
    %71 = vector.extract_strided_slice %62 {offsets = [0, 96], sizes = [2, 32], strides = [1, 1]} : vector<2x128xf32> to vector<2x32xf32>
    %72 = arith.negf %71 : vector<2x32xf32>
    %73 = math.exp %72 : vector<2x32xf32>
    %cst_32 = arith.constant 1.000000e+00 : f32
    %74 = vector.broadcast %cst_32 : f32 to vector<2x32xf32>
    %75 = arith.addf %74, %73 : vector<2x32xf32>
    %76 = arith.divf %74, %75 : vector<2x32xf32>
    %77 = vector.extract_strided_slice %68 {offsets = [0, 32], sizes = [2, 32], strides = [1, 1]} : vector<2x64xf32> to vector<2x32xf32>
    %78 = arith.mulf %77, %51 : vector<2x32xf32>
    %79 = vector.extract_strided_slice %68 {offsets = [0, 0], sizes = [2, 32], strides = [1, 1]} : vector<2x64xf32> to vector<2x32xf32>
    %80 = arith.mulf %79, %70 : vector<2x32xf32>
    %81 = arith.addf %78, %80 : vector<2x32xf32>
    %82 = math.tanh %81 : vector<2x32xf32>
    %83 = arith.mulf %76, %82 : vector<2x32xf32>
    %84 = arith.index_cast %c1_i32 : i32 to index
    %c0_33 = arith.constant 0 : index
    %c0_34 = arith.constant 0 : index
    %85 = vector.load %arg10[%84, %c0_33, %c0_34] : memref<8x2x32xf32, #tpu.memory_space<vmem>>, vector<1x2x32xf32>
    %86 = vector.shape_cast %85 : vector<1x2x32xf32> to vector<2x32xf32>
    %87 = vector.shape_cast %83 : vector<2x32xf32> to vector<1x2x32xf32>
    tpu.vector_store %arg10[%84, %c0_33, %c0_34], %87 {strides = array<i32>} : memref<8x2x32xf32, #tpu.memory_space<vmem>>, vector<1x2x32xf32>,
    %c2_i32 = arith.constant 2 : i32
    %88 = arith.index_cast %c2_i32 : i32 to index
    %c0_35 = arith.constant 0 : index
    %c0_36 = arith.constant 0 : index
    %89 = vector.load %arg9[%88, %c0_35, %c0_36] : memref<8x2x128xf32, #tpu.memory_space<vmem>>, vector<1x2x128xf32>
    %90 = vector.shape_cast %89 : vector<1x2x128xf32> to vector<2x128xf32>
    %cst_37 = arith.constant dense<0.000000e+00> : vector<2x128xf32>
    %91 = tpu.matmul %83, %25, %cst_37 {dimension_numbers = #tpu.dot_dimension_numbers<[1], [0], [0], [1], [0, 0, 1, 1], [], []>} : vector<2x32xf32>, vector<32x128xf32>, vector<2x128xf32> -> vector<2x128xf32>
    %92 = arith.addf %90, %91 : vector<2x128xf32>
    %93 = vector.extract_strided_slice %92 {offsets = [0, 0], sizes = [2, 64], strides = [1, 1]} : vector<2x128xf32> to vector<2x64xf32>
    %94 = arith.negf %93 : vector<2x64xf32>
    %95 = math.exp %94 : vector<2x64xf32>
    %cst_38 = arith.constant 1.000000e+00 : f32
    %96 = vector.broadcast %cst_38 : f32 to vector<2x64xf32>
    %97 = arith.addf %96, %95 : vector<2x64xf32>
    %98 = arith.divf %96, %97 : vector<2x64xf32>
    %99 = vector.extract_strided_slice %92 {offsets = [0, 64], sizes = [2, 32], strides = [1, 1]} : vector<2x128xf32> to vector<2x32xf32>
    %100 = math.tanh %99 : vector<2x32xf32>
    %101 = vector.extract_strided_slice %92 {offsets = [0, 96], sizes = [2, 32], strides = [1, 1]} : vector<2x128xf32> to vector<2x32xf32>
    %102 = arith.negf %101 : vector<2x32xf32>
    %103 = math.exp %102 : vector<2x32xf32>
    %cst_39 = arith.constant 1.000000e+00 : f32
    %104 = vector.broadcast %cst_39 : f32 to vector<2x32xf32>
    %105 = arith.addf %104, %103 : vector<2x32xf32>
    %106 = arith.divf %104, %105 : vector<2x32xf32>
    %107 = vector.extract_strided_slice %98 {offsets = [0, 32], sizes = [2, 32], strides = [1, 1]} : vector<2x64xf32> to vector<2x32xf32>
    %108 = arith.mulf %107, %81 : vector<2x32xf32>
    %109 = vector.extract_strided_slice %98 {offsets = [0, 0], sizes = [2, 32], strides = [1, 1]} : vector<2x64xf32> to vector<2x32xf32>
    %110 = arith.mulf %109, %100 : vector<2x32xf32>
    %111 = arith.addf %108, %110 : vector<2x32xf32>
    %112 = math.tanh %111 : vector<2x32xf32>
    %113 = arith.mulf %106, %112 : vector<2x32xf32>
    %114 = arith.index_cast %c2_i32 : i32 to index
    %c0_40 = arith.constant 0 : index
    %c0_41 = arith.constant 0 : index
    %115 = vector.load %arg10[%114, %c0_40, %c0_41] : memref<8x2x32xf32, #tpu.memory_space<vmem>>, vector<1x2x32xf32>
    %116 = vector.shape_cast %115 : vector<1x2x32xf32> to vector<2x32xf32>
    %117 = vector.shape_cast %113 : vector<2x32xf32> to vector<1x2x32xf32>
    tpu.vector_store %arg10[%114, %c0_40, %c0_41], %117 {strides = array<i32>} : memref<8x2x32xf32, #tpu.memory_space<vmem>>, vector<1x2x32xf32>,
    %c3_i32 = arith.constant 3 : i32
    %118 = arith.index_cast %c3_i32 : i32 to index
    %c0_42 = arith.constant 0 : index
    %c0_43 = arith.constant 0 : index
    %119 = vector.load %arg9[%118, %c0_42, %c0_43] : memref<8x2x128xf32, #tpu.memory_space<vmem>>, vector<1x2x128xf32>
    %120 = vector.shape_cast %119 : vector<1x2x128xf32> to vector<2x128xf32>
    %cst_44 = arith.constant dense<0.000000e+00> : vector<2x128xf32>
    %121 = tpu.matmul %113, %25, %cst_44 {dimension_numbers = #tpu.dot_dimension_numbers<[1], [0], [0], [1], [0, 0, 1, 1], [], []>} : vector<2x32xf32>, vector<32x128xf32>, vector<2x128xf32> -> vector<2x128xf32>
    %122 = arith.addf %120, %121 : vector<2x128xf32>
    %123 = vector.extract_strided_slice %122 {offsets = [0, 0], sizes = [2, 64], strides = [1, 1]} : vector<2x128xf32> to vector<2x64xf32>
    %124 = arith.negf %123 : vector<2x64xf32>
    %125 = math.exp %124 : vector<2x64xf32>
    %cst_45 = arith.constant 1.000000e+00 : f32
    %126 = vector.broadcast %cst_45 : f32 to vector<2x64xf32>
    %127 = arith.addf %126, %125 : vector<2x64xf32>
    %128 = arith.divf %126, %127 : vector<2x64xf32>
    %129 = vector.extract_strided_slice %122 {offsets = [0, 64], sizes = [2, 32], strides = [1, 1]} : vector<2x128xf32> to vector<2x32xf32>
    %130 = math.tanh %129 : vector<2x32xf32>
    %131 = vector.extract_strided_slice %122 {offsets = [0, 96], sizes = [2, 32], strides = [1, 1]} : vector<2x128xf32> to vector<2x32xf32>
    %132 = arith.negf %131 : vector<2x32xf32>
    %133 = math.exp %132 : vector<2x32xf32>
    %cst_46 = arith.constant 1.000000e+00 : f32
    %134 = vector.broadcast %cst_46 : f32 to vector<2x32xf32>
    %135 = arith.addf %134, %133 : vector<2x32xf32>
    %136 = arith.divf %134, %135 : vector<2x32xf32>
    %137 = vector.extract_strided_slice %128 {offsets = [0, 32], sizes = [2, 32], strides = [1, 1]} : vector<2x64xf32> to vector<2x32xf32>
    %138 = arith.mulf %137, %111 : vector<2x32xf32>
    %139 = vector.extract_strided_slice %128 {offsets = [0, 0], sizes = [2, 32], strides = [1, 1]} : vector<2x64xf32> to vector<2x32xf32>
    %140 = arith.mulf %139, %130 : vector<2x32xf32>
    %141 = arith.addf %138, %140 : vector<2x32xf32>
    %142 = math.tanh %141 : vector<2x32xf32>
    %143 = arith.mulf %136, %142 : vector<2x32xf32>
    %144 = arith.index_cast %c3_i32 : i32 to index
    %c0_47 = arith.constant 0 : index
    %c0_48 = arith.constant 0 : index
    %145 = vector.load %arg10[%144, %c0_47, %c0_48] : memref<8x2x32xf32, #tpu.memory_space<vmem>>, vector<1x2x32xf32>
    %146 = vector.shape_cast %145 : vector<1x2x32xf32> to vector<2x32xf32>
    %147 = vector.shape_cast %143 : vector<2x32xf32> to vector<1x2x32xf32>
    tpu.vector_store %arg10[%144, %c0_47, %c0_48], %147 {strides = array<i32>} : memref<8x2x32xf32, #tpu.memory_space<vmem>>, vector<1x2x32xf32>,
    %c4_i32 = arith.constant 4 : i32
    %148 = arith.index_cast %c4_i32 : i32 to index
    %c0_49 = arith.constant 0 : index
    %c0_50 = arith.constant 0 : index
    %149 = vector.load %arg9[%148, %c0_49, %c0_50] : memref<8x2x128xf32, #tpu.memory_space<vmem>>, vector<1x2x128xf32>
    %150 = vector.shape_cast %149 : vector<1x2x128xf32> to vector<2x128xf32>
    %cst_51 = arith.constant dense<0.000000e+00> : vector<2x128xf32>
    %151 = tpu.matmul %143, %25, %cst_51 {dimension_numbers = #tpu.dot_dimension_numbers<[1], [0], [0], [1], [0, 0, 1, 1], [], []>} : vector<2x32xf32>, vector<32x128xf32>, vector<2x128xf32> -> vector<2x128xf32>
    %152 = arith.addf %150, %151 : vector<2x128xf32>
    %153 = vector.extract_strided_slice %152 {offsets = [0, 0], sizes = [2, 64], strides = [1, 1]} : vector<2x128xf32> to vector<2x64xf32>
    %154 = arith.negf %153 : vector<2x64xf32>
    %155 = math.exp %154 : vector<2x64xf32>
    %cst_52 = arith.constant 1.000000e+00 : f32
    %156 = vector.broadcast %cst_52 : f32 to vector<2x64xf32>
    %157 = arith.addf %156, %155 : vector<2x64xf32>
    %158 = arith.divf %156, %157 : vector<2x64xf32>
    %159 = vector.extract_strided_slice %152 {offsets = [0, 64], sizes = [2, 32], strides = [1, 1]} : vector<2x128xf32> to vector<2x32xf32>
    %160 = math.tanh %159 : vector<2x32xf32>
    %161 = vector.extract_strided_slice %152 {offsets = [0, 96], sizes = [2, 32], strides = [1, 1]} : vector<2x128xf32> to vector<2x32xf32>
    %162 = arith.negf %161 : vector<2x32xf32>
    %163 = math.exp %162 : vector<2x32xf32>
    %cst_53 = arith.constant 1.000000e+00 : f32
    %164 = vector.broadcast %cst_53 : f32 to vector<2x32xf32>
    %165 = arith.addf %164, %163 : vector<2x32xf32>
    %166 = arith.divf %164, %165 : vector<2x32xf32>
    %167 = vector.extract_strided_slice %158 {offsets = [0, 32], sizes = [2, 32], strides = [1, 1]} : vector<2x64xf32> to vector<2x32xf32>
    %168 = arith.mulf %167, %141 : vector<2x32xf32>
    %169 = vector.extract_strided_slice %158 {offsets = [0, 0], sizes = [2, 32], strides = [1, 1]} : vector<2x64xf32> to vector<2x32xf32>
    %170 = arith.mulf %169, %160 : vector<2x32xf32>
    %171 = arith.addf %168, %170 : vector<2x32xf32>
    %172 = math.tanh %171 : vector<2x32xf32>
    %173 = arith.mulf %166, %172 : vector<2x32xf32>
    %174 = arith.index_cast %c4_i32 : i32 to index
    %c0_54 = arith.constant 0 : index
    %c0_55 = arith.constant 0 : index
    %175 = vector.load %arg10[%174, %c0_54, %c0_55] : memref<8x2x32xf32, #tpu.memory_space<vmem>>, vector<1x2x32xf32>
    %176 = vector.shape_cast %175 : vector<1x2x32xf32> to vector<2x32xf32>
    %177 = vector.shape_cast %173 : vector<2x32xf32> to vector<1x2x32xf32>
    tpu.vector_store %arg10[%174, %c0_54, %c0_55], %177 {strides = array<i32>} : memref<8x2x32xf32, #tpu.memory_space<vmem>>, vector<1x2x32xf32>,
    %c5_i32 = arith.constant 5 : i32
    %178 = arith.index_cast %c5_i32 : i32 to index
    %c0_56 = arith.constant 0 : index
    %c0_57 = arith.constant 0 : index
    %179 = vector.load %arg9[%178, %c0_56, %c0_57] : memref<8x2x128xf32, #tpu.memory_space<vmem>>, vector<1x2x128xf32>
    %180 = vector.shape_cast %179 : vector<1x2x128xf32> to vector<2x128xf32>
    %cst_58 = arith.constant dense<0.000000e+00> : vector<2x128xf32>
    %181 = tpu.matmul %173, %25, %cst_58 {dimension_numbers = #tpu.dot_dimension_numbers<[1], [0], [0], [1], [0, 0, 1, 1], [], []>} : vector<2x32xf32>, vector<32x128xf32>, vector<2x128xf32> -> vector<2x128xf32>
    %182 = arith.addf %180, %181 : vector<2x128xf32>
    %183 = vector.extract_strided_slice %182 {offsets = [0, 0], sizes = [2, 64], strides = [1, 1]} : vector<2x128xf32> to vector<2x64xf32>
    %184 = arith.negf %183 : vector<2x64xf32>
    %185 = math.exp %184 : vector<2x64xf32>
    %cst_59 = arith.constant 1.000000e+00 : f32
    %186 = vector.broadcast %cst_59 : f32 to vector<2x64xf32>
    %187 = arith.addf %186, %185 : vector<2x64xf32>
    %188 = arith.divf %186, %187 : vector<2x64xf32>
    %189 = vector.extract_strided_slice %182 {offsets = [0, 64], sizes = [2, 32], strides = [1, 1]} : vector<2x128xf32> to vector<2x32xf32>
    %190 = math.tanh %189 : vector<2x32xf32>
    %191 = vector.extract_strided_slice %182 {offsets = [0, 96], sizes = [2, 32], strides = [1, 1]} : vector<2x128xf32> to vector<2x32xf32>
    %192 = arith.negf %191 : vector<2x32xf32>
    %193 = math.exp %192 : vector<2x32xf32>
    %cst_60 = arith.constant 1.000000e+00 : f32
    %194 = vector.broadcast %cst_60 : f32 to vector<2x32xf32>
    %195 = arith.addf %194, %193 : vector<2x32xf32>
    %196 = arith.divf %194, %195 : vector<2x32xf32>
    %197 = vector.extract_strided_slice %188 {offsets = [0, 32], sizes = [2, 32], strides = [1, 1]} : vector<2x64xf32> to vector<2x32xf32>
    %198 = arith.mulf %197, %171 : vector<2x32xf32>
    %199 = vector.extract_strided_slice %188 {offsets = [0, 0], sizes = [2, 32], strides = [1, 1]} : vector<2x64xf32> to vector<2x32xf32>
    %200 = arith.mulf %199, %190 : vector<2x32xf32>
    %201 = arith.addf %198, %200 : vector<2x32xf32>
    %202 = math.tanh %201 : vector<2x32xf32>
    %203 = arith.mulf %196, %202 : vector<2x32xf32>
    %204 = arith.index_cast %c5_i32 : i32 to index
    %c0_61 = arith.constant 0 : index
    %c0_62 = arith.constant 0 : index
    %205 = vector.load %arg10[%204, %c0_61, %c0_62] : memref<8x2x32xf32, #tpu.memory_space<vmem>>, vector<1x2x32xf32>
    %206 = vector.shape_cast %205 : vector<1x2x32xf32> to vector<2x32xf32>
    %207 = vector.shape_cast %203 : vector<2x32xf32> to vector<1x2x32xf32>
    tpu.vector_store %arg10[%204, %c0_61, %c0_62], %207 {strides = array<i32>} : memref<8x2x32xf32, #tpu.memory_space<vmem>>, vector<1x2x32xf32>,
    %c6_i32 = arith.constant 6 : i32
    %208 = arith.index_cast %c6_i32 : i32 to index
    %c0_63 = arith.constant 0 : index
    %c0_64 = arith.constant 0 : index
    %209 = vector.load %arg9[%208, %c0_63, %c0_64] : memref<8x2x128xf32, #tpu.memory_space<vmem>>, vector<1x2x128xf32>
    %210 = vector.shape_cast %209 : vector<1x2x128xf32> to vector<2x128xf32>
    %cst_65 = arith.constant dense<0.000000e+00> : vector<2x128xf32>
    %211 = tpu.matmul %203, %25, %cst_65 {dimension_numbers = #tpu.dot_dimension_numbers<[1], [0], [0], [1], [0, 0, 1, 1], [], []>} : vector<2x32xf32>, vector<32x128xf32>, vector<2x128xf32> -> vector<2x128xf32>
    %212 = arith.addf %210, %211 : vector<2x128xf32>
    %213 = vector.extract_strided_slice %212 {offsets = [0, 0], sizes = [2, 64], strides = [1, 1]} : vector<2x128xf32> to vector<2x64xf32>
    %214 = arith.negf %213 : vector<2x64xf32>
    %215 = math.exp %214 : vector<2x64xf32>
    %cst_66 = arith.constant 1.000000e+00 : f32
    %216 = vector.broadcast %cst_66 : f32 to vector<2x64xf32>
    %217 = arith.addf %216, %215 : vector<2x64xf32>
    %218 = arith.divf %216, %217 : vector<2x64xf32>
    %219 = vector.extract_strided_slice %212 {offsets = [0, 64], sizes = [2, 32], strides = [1, 1]} : vector<2x128xf32> to vector<2x32xf32>
    %220 = math.tanh %219 : vector<2x32xf32>
    %221 = vector.extract_strided_slice %212 {offsets = [0, 96], sizes = [2, 32], strides = [1, 1]} : vector<2x128xf32> to vector<2x32xf32>
    %222 = arith.negf %221 : vector<2x32xf32>
    %223 = math.exp %222 : vector<2x32xf32>
    %cst_67 = arith.constant 1.000000e+00 : f32
    %224 = vector.broadcast %cst_67 : f32 to vector<2x32xf32>
    %225 = arith.addf %224, %223 : vector<2x32xf32>
    %226 = arith.divf %224, %225 : vector<2x32xf32>
    %227 = vector.extract_strided_slice %218 {offsets = [0, 32], sizes = [2, 32], strides = [1, 1]} : vector<2x64xf32> to vector<2x32xf32>
    %228 = arith.mulf %227, %201 : vector<2x32xf32>
    %229 = vector.extract_strided_slice %218 {offsets = [0, 0], sizes = [2, 32], strides = [1, 1]} : vector<2x64xf32> to vector<2x32xf32>
    %230 = arith.mulf %229, %220 : vector<2x32xf32>
    %231 = arith.addf %228, %230 : vector<2x32xf32>
    %232 = math.tanh %231 : vector<2x32xf32>
    %233 = arith.mulf %226, %232 : vector<2x32xf32>
    %234 = arith.index_cast %c6_i32 : i32 to index
    %c0_68 = arith.constant 0 : index
    %c0_69 = arith.constant 0 : index
    %235 = vector.load %arg10[%234, %c0_68, %c0_69] : memref<8x2x32xf32, #tpu.memory_space<vmem>>, vector<1x2x32xf32>
    %236 = vector.shape_cast %235 : vector<1x2x32xf32> to vector<2x32xf32>
    %237 = vector.shape_cast %233 : vector<2x32xf32> to vector<1x2x32xf32>
    tpu.vector_store %arg10[%234, %c0_68, %c0_69], %237 {strides = array<i32>} : memref<8x2x32xf32, #tpu.memory_space<vmem>>, vector<1x2x32xf32>,
    %c7_i32 = arith.constant 7 : i32
    %238 = arith.index_cast %c7_i32 : i32 to index
    %c0_70 = arith.constant 0 : index
    %c0_71 = arith.constant 0 : index
    %239 = vector.load %arg9[%238, %c0_70, %c0_71] : memref<8x2x128xf32, #tpu.memory_space<vmem>>, vector<1x2x128xf32>
    %240 = vector.shape_cast %239 : vector<1x2x128xf32> to vector<2x128xf32>
    %cst_72 = arith.constant dense<0.000000e+00> : vector<2x128xf32>
    %241 = tpu.matmul %233, %25, %cst_72 {dimension_numbers = #tpu.dot_dimension_numbers<[1], [0], [0], [1], [0, 0, 1, 1], [], []>} : vector<2x32xf32>, vector<32x128xf32>, vector<2x128xf32> -> vector<2x128xf32>
    %242 = arith.addf %240, %241 : vector<2x128xf32>
    %243 = vector.extract_strided_slice %242 {offsets = [0, 0], sizes = [2, 64], strides = [1, 1]} : vector<2x128xf32> to vector<2x64xf32>
    %244 = arith.negf %243 : vector<2x64xf32>
    %245 = math.exp %244 : vector<2x64xf32>
    %cst_73 = arith.constant 1.000000e+00 : f32
    %246 = vector.broadcast %cst_73 : f32 to vector<2x64xf32>
    %247 = arith.addf %246, %245 : vector<2x64xf32>
    %248 = arith.divf %246, %247 : vector<2x64xf32>
    %249 = vector.extract_strided_slice %242 {offsets = [0, 64], sizes = [2, 32], strides = [1, 1]} : vector<2x128xf32> to vector<2x32xf32>
    %250 = math.tanh %249 : vector<2x32xf32>
    %251 = vector.extract_strided_slice %242 {offsets = [0, 96], sizes = [2, 32], strides = [1, 1]} : vector<2x128xf32> to vector<2x32xf32>
    %252 = arith.negf %251 : vector<2x32xf32>
    %253 = math.exp %252 : vector<2x32xf32>
    %cst_74 = arith.constant 1.000000e+00 : f32
    %254 = vector.broadcast %cst_74 : f32 to vector<2x32xf32>
    %255 = arith.addf %254, %253 : vector<2x32xf32>
    %256 = arith.divf %254, %255 : vector<2x32xf32>
    %257 = vector.extract_strided_slice %248 {offsets = [0, 32], sizes = [2, 32], strides = [1, 1]} : vector<2x64xf32> to vector<2x32xf32>
    %258 = arith.mulf %257, %231 : vector<2x32xf32>
    %259 = vector.extract_strided_slice %248 {offsets = [0, 0], sizes = [2, 32], strides = [1, 1]} : vector<2x64xf32> to vector<2x32xf32>
    %260 = arith.mulf %259, %250 : vector<2x32xf32>
    %261 = arith.addf %258, %260 : vector<2x32xf32>
    %262 = math.tanh %261 : vector<2x32xf32>
    %263 = arith.mulf %256, %262 : vector<2x32xf32>
    %264 = arith.index_cast %c7_i32 : i32 to index
    %c0_75 = arith.constant 0 : index
    %c0_76 = arith.constant 0 : index
    %265 = vector.load %arg10[%264, %c0_75, %c0_76] : memref<8x2x32xf32, #tpu.memory_space<vmem>>, vector<1x2x32xf32>
    %266 = vector.shape_cast %265 : vector<1x2x32xf32> to vector<2x32xf32>
    %267 = vector.shape_cast %263 : vector<2x32xf32> to vector<1x2x32xf32>
    tpu.vector_store %arg10[%264, %c0_75, %c0_76], %267 {strides = array<i32>} : memref<8x2x32xf32, #tpu.memory_space<vmem>>, vector<1x2x32xf32>,
    %c8_i32 = arith.constant 8 : i32
    %c0_77 = arith.constant 0 : index
    %c0_78 = arith.constant 0 : index
    %268 = vector.load %arg11[%c0_77, %c0_78] : memref<2x32xf32, #tpu.memory_space<vmem>>, vector<2x32xf32>
    tpu.vector_store %arg11[%c0_77, %c0_78], %263 {strides = array<i32>} : memref<2x32xf32, #tpu.memory_space<vmem>>, vector<2x32xf32>,
    %c0_79 = arith.constant 0 : index
    %c0_80 = arith.constant 0 : index
    %269 = vector.load %arg12[%c0_79, %c0_80] : memref<2x32xf32, #tpu.memory_space<vmem>>, vector<2x32xf32>
    tpu.vector_store %arg12[%c0_79, %c0_80], %261 {strides = array<i32>} : memref<2x32xf32, #tpu.memory_space<vmem>>, vector<2x32xf32>,
    %c0_81 = arith.constant 0 : index
    %c0_82 = arith.constant 0 : index
    %c0_83 = arith.constant 0 : index
    %270 = vector.load %arg10[%c0_81, %c0_82, %c0_83] : memref<8x2x32xf32, #tpu.memory_space<vmem>>, vector<8x2x32xf32>
    %271 = vector.shape_cast %270 : vector<8x2x32xf32> to vector<16x32xf32>
    %272 = arith.addf %3, %271 : vector<16x32xf32>
    %273 = arith.truncf %272 : vector<16x32xf32> to vector<16x32xbf16>
    %c0_84 = arith.constant 0 : index
    %c0_85 = arith.constant 0 : index
    %274 = vector.load %arg6[%c0_84, %c0_85] : memref<32x128xbf16, #tpu.memory_space<vmem>>, vector<32x128xbf16>
    %cst_86 = arith.constant dense<0.000000e+00> : vector<16x128xf32>
    %275 = tpu.matmul %273, %274, %cst_86 {dimension_numbers = #tpu.dot_dimension_numbers<[1], [0], [0], [1], [0, 0, 1, 1], [], []>} : vector<16x32xbf16>, vector<32x128xbf16>, vector<16x128xf32> -> vector<16x128xf32>
    %276 = vector.extract_strided_slice %275 {offsets = [0, 0], sizes = [16, 64], strides = [1, 1]} : vector<16x128xf32> to vector<16x64xf32>
    %277 = vector.extract_strided_slice %275 {offsets = [0, 64], sizes = [16, 64], strides = [1, 1]} : vector<16x128xf32> to vector<16x64xf32>
    %cst_87 = arith.constant 5.000000e-01 : f32
    %278 = vector.broadcast %cst_87 : f32 to vector<16x64xf32>
    %279 = arith.mulf %278, %276 : vector<16x64xf32>
    %cst_88 = arith.constant 0.707106769 : f32
    %280 = vector.broadcast %cst_88 : f32 to vector<16x64xf32>
    %281 = arith.mulf %276, %280 : vector<16x64xf32>
    %282 = math.erf %281 : vector<16x64xf32>
    %cst_89 = arith.constant 1.000000e+00 : f32
    %283 = vector.broadcast %cst_89 : f32 to vector<16x64xf32>
    %284 = arith.addf %283, %282 : vector<16x64xf32>
    %285 = arith.mulf %279, %284 : vector<16x64xf32>
    %286 = arith.mulf %285, %277 : vector<16x64xf32>
    %287 = arith.truncf %286 : vector<16x64xf32> to vector<16x64xbf16>
    %c0_90 = arith.constant 0 : index
    %c0_91 = arith.constant 0 : index
    %288 = vector.load %arg7[%c0_90, %c0_91] : memref<64x32xbf16, #tpu.memory_space<vmem>>, vector<64x32xbf16>
    %cst_92 = arith.constant dense<0.000000e+00> : vector<16x32xf32>
    %289 = tpu.matmul %287, %288, %cst_92 {dimension_numbers = #tpu.dot_dimension_numbers<[1], [0], [0], [1], [0, 0, 1, 1], [], []>} : vector<16x64xbf16>, vector<64x32xbf16>, vector<16x32xf32> -> vector<16x32xf32>
    %290 = arith.addf %272, %289 : vector<16x32xf32>
    %c0_93 = arith.constant 0 : index
    %c0_94 = arith.constant 0 : index
    %291 = vector.load %arg8[%c0_93, %c0_94] : memref<16x32xf32, #tpu.memory_space<vmem>>, vector<16x32xf32>
    tpu.vector_store %arg8[%c0_93, %c0_94], %290 {strides = array<i32>} : memref<16x32xf32, #tpu.memory_space<vmem>>, vector<16x32xf32>,
    return
  }
  func.func @transform_0(%arg0: i32) -> (i32, i32) {
    %c0_i32 = arith.constant 0 : i32
    %c0_i32_0 = arith.constant 0 : i32
    return %arg0, %c0_i32 : i32, i32
  }
  func.func @transform_1(%arg0: i32) -> (i32, i32) {
    %c0_i32 = arith.constant 0 : i32
    %c0_i32_0 = arith.constant 0 : i32
    %c0_i32_1 = arith.constant 0 : i32
    return %c0_i32, %c0_i32_0 : i32, i32
  }
  func.func @transform_2(%arg0: i32) -> (i32, i32) {
    %c0_i32 = arith.constant 0 : i32
    %c0_i32_0 = arith.constant 0 : i32
    %c0_i32_1 = arith.constant 0 : i32
    return %c0_i32, %c0_i32_0 : i32, i32
  }
  func.func @transform_3(%arg0: i32) -> (i32, i32) {
    %c0_i32 = arith.constant 0 : i32
    %c0_i32_0 = arith.constant 0 : i32
    %c0_i32_1 = arith.constant 0 : i32
    return %c0_i32, %c0_i32_0 : i32, i32
  }
  func.func @transform_4(%arg0: i32) -> (i32, i32) {
    %c0_i32 = arith.constant 0 : i32
    %c0_i32_0 = arith.constant 0 : i32
    %c0_i32_1 = arith.constant 0 : i32
    return %c0_i32, %c0_i32_0 : i32, i32
  }
  func.func @transform_5(%arg0: i32) -> (i32, i32) {
    %c0_i32 = arith.constant 0 : i32
    %c0_i32_0 = arith.constant 0 : i32
    %c0_i32_1 = arith.constant 0 : i32
    return %c0_i32, %c0_i32_0 : i32, i32
  }
  func.func @transform_6(%arg0: i32) -> (i32, i32) {
    %c0_i32 = arith.constant 0 : i32
    %c0_i32_0 = arith.constant 0 : i32
    %c0_i32_1 = arith.constant 0 : i32
    return %c0_i32, %c0_i32_0 : i32, i32
  }
  func.func @transform_7(%arg0: i32) -> (i32, i32) {
    %c0_i32 = arith.constant 0 : i32
    %c0_i32_0 = arith.constant 0 : i32
    return %arg0, %c0_i32 : i32, i32
  }
}

module attributes {stable_mosaic.version = 11 : i64} {
  func.func @decoder_layer_kernel(%arg0: i32, %arg1: memref<16x32xf32, #tpu.memory_space<vmem>>, %arg2: memref<1x32xf32, #tpu.memory_space<vmem>>, %arg3: memref<32x128xbf16, #tpu.memory_space<vmem>>, %arg4: memref<1x128xf32, #tpu.memory_space<vmem>>, %arg5: memref<32x128xf32, #tpu.memory_space<vmem>>, %arg6: memref<32x128xbf16, #tpu.memory_space<vmem>>, %arg7: memref<64x32xbf16, #tpu.memory_space<vmem>>, %arg8: memref<16x32xf32, #tpu.memory_space<vmem>>, %arg9: memref<8x2x128xf32, #tpu.memory_space<vmem>>, %arg10: memref<8x2x32xf32, #tpu.memory_space<vmem>>, %arg11: memref<2x32xf32, #tpu.memory_space<vmem>>, %arg12: memref<2x32xf32, #tpu.memory_space<vmem>>) attributes {dimension_semantics = [#tpu.dimension_semantics<arbitrary>], iteration_bounds = array<i64: 1>, scalar_prefetch = 0 : i64, scratch_operands = 4 : i64, tpu.core_type = #tpu.core_type<tc>, window_params = [{transform_indices = @transform_0, window_bounds = array<i64: 16, 32>}, {pipeline_mode = #tpu.pipeline_mode<synchronous>, transform_indices = @transform_1, window_bounds = array<i64: 1, 32>}, {pipeline_mode = #tpu.pipeline_mode<synchronous>, transform_indices = @transform_2, window_bounds = array<i64: 32, 128>}, {pipeline_mode = #tpu.pipeline_mode<synchronous>, transform_indices = @transform_3, window_bounds = array<i64: 1, 128>}, {pipeline_mode = #tpu.pipeline_mode<synchronous>, transform_indices = @transform_4, window_bounds = array<i64: 32, 128>}, {pipeline_mode = #tpu.pipeline_mode<synchronous>, transform_indices = @transform_5, window_bounds = array<i64: 32, 128>}, {pipeline_mode = #tpu.pipeline_mode<synchronous>, transform_indices = @transform_6, window_bounds = array<i64: 64, 32>}, {transform_indices = @transform_7, window_bounds = array<i64: 16, 32>}]} {
    %c0_i32 = arith.constant 0 : i32
    %0 = arith.cmpi eq, %arg0, %c0_i32 : i32
    %1 = arith.extui %0 : i1 to i32
    %c0_i32_0 = arith.constant 0 : i32
    %2 = arith.cmpi ne, %1, %c0_i32_0 : i32
    scf.if %2 {
      %cst_95 = arith.constant 0.000000e+00 : f32
      %292 = vector.broadcast %cst_95 : f32 to vector<2x32xf32>
      %c0_96 = arith.constant 0 : index
      %c0_97 = arith.constant 0 : index
      %293 = vector.load %arg11[%c0_96, %c0_97] : memref<2x32xf32, #tpu.memory_space<vmem>>, vector<2x32xf32>
      tpu.vector_store %arg11[%c0_96, %c0_97], %292 {strides = array<i32>} : memref<2x32xf32, #tpu.memory_space<vmem>>, vector<2x32xf32>,
      %cst_98 = arith.constant 0.000000e+00 : f32
      %294 = vector.broadcast %cst_98 : f32 to vector<2x32xf32>
      %c0_99 = arith.constant 0 : index
      %c0_100 = arith.constant 0 : index
      %295 = vector.load %arg12[%c0_99, %c0_100] : memref<2x32xf32, #tpu.memory_space<vmem>>, vector<2x32xf32>
      tpu.vector_store %arg12[%c0_99, %c0_100], %294 {strides = array<i32>} : memref<2x32xf32, #tpu.memory_space<vmem>>, vector<2x32xf32>,
    } else {
    }
    %c0 = arith.constant 0 : index
    %c0_1 = arith.constant 0 : index
    %3 = vector.load %arg1[%c0, %c0_1] : memref<16x32xf32, #tpu.memory_space<vmem>>, vector<16x32xf32>
    %4 = arith.mulf %3, %3 : vector<16x32xf32>
    %cst = arith.constant dense<0.000000e+00> : vector<16xf32>
    %5 = vector.multi_reduction <add>, %4, %cst [1] : vector<16x32xf32> to vector<16xf32>
    %6 = vector.shape_cast %5 : vector<16xf32> to vector<16x1xf32>
    %cst_2 = arith.constant 3.200000e+01 : f32
    %7 = vector.broadcast %cst_2 : f32 to vector<16x1xf32>
    %8 = arith.divf %6, %7 : vector<16x1xf32>
    %cst_3 = arith.constant 9.99999993E-9 : f32
    %9 = vector.broadcast %cst_3 : f32 to vector<16x1xf32>
    %10 = arith.addf %8, %9 : vector<16x1xf32>
    %11 = math.rsqrt %10 : vector<16x1xf32>
    %12 = vector.broadcast %11 : vector<16x1xf32> to vector<16x32xf32>
    %13 = arith.mulf %3, %12 : vector<16x32xf32>
    %c0_4 = arith.constant 0 : index
    %c0_5 = arith.constant 0 : index
    %14 = vector.load %arg2[%c0_4, %c0_5] : memref<1x32xf32, #tpu.memory_space<vmem>>, vector<1x32xf32>
    %15 = vector.broadcast %14 : vector<1x32xf32> to vector<16x32xf32>
    %16 = arith.mulf %13, %15 : vector<16x32xf32>
    %17 = arith.truncf %16 : vector<16x32xf32> to vector<16x32xbf16>
    %c0_6 = arith.constant 0 : index
    %c0_7 = arith.constant 0 : index
    %18 = vector.load %arg3[%c0_6, %c0_7] : memref<32x128xbf16, #tpu.memory_space<vmem>>, vector<32x128xbf16>
    %cst_8 = arith.constant dense<0.000000e+00> : vector<16x128xf32>
    %19 = tpu.matmul %17, %18, %cst_8 {dimension_numbers = #tpu.dot_dimension_numbers<[1], [0], [0], [1], [0, 0, 1, 1], [], []>} : vector<16x32xbf16>, vector<32x128xbf16>, vector<16x128xf32> -> vector<16x128xf32>
    %c0_9 = arith.constant 0 : index
    %c0_10 = arith.constant 0 : index
    %20 = vector.load %arg4[%c0_9, %c0_10] : memref<1x128xf32, #tpu.memory_space<vmem>>, vector<1x128xf32>
    %21 = vector.broadcast %20 : vector<1x128xf32> to vector<16x128xf32>
    %22 = arith.addf %19, %21 : vector<16x128xf32>
    %23 = vector.shape_cast %22 : vector<16x128xf32> to vector<8x2x128xf32>
    %c0_11 = arith.constant 0 : index
    %c0_12 = arith.constant 0 : index
    %c0_13 = arith.constant 0 : index
    %24 = vector.load %arg9[%c0_11, %c0_12, %c0_13] : memref<8x2x128xf32, #tpu.memory_space<vmem>>, vector<8x2x128xf32>
    tpu.vector_store %arg9[%c0_11, %c0_12, %c0_13], %23 {strides = array<i32>} : memref<8x2x128xf32, #tpu.memory_space<vmem>>, vector<8x2x128xf32>,
    %c0_14 = arith.constant 0 : index
    %c0_15 = arith.constant 0 : index
    %25 = vector.load %arg5[%c0_14, %c0_15] : memref<32x128xf32, #tpu.memory_space<vmem>>, vector<32x128xf32>
    %c0_16 = arith.constant 0 : index
    %c0_17 = arith.constant 0 : index
    %26 = vector.load %arg11[%c0_16, %c0_17] : memref<2x32xf32, #tpu.memory_space<vmem>>, vector<2x32xf32>
    %c0_18 = arith.constant 0 : index
    %c0_19 = arith.constant 0 : index
    %27 = vector.load %arg12[%c0_18, %c0_19] : memref<2x32xf32, #tpu.memory_space<vmem>>, vector<2x32xf32>
    %c0_i32_20 = arith.constant 0 : i32
    %28 = arith.index_cast %c0_i32_20 : i32 to index
    %c0_21 = arith.constant 0 : index
    %c0_22 = arith.constant 0 : index
    %29 = vector.load %arg9[%28, %c0_21, %c0_22] : memref<8x2x128xf32, #tpu.memory_space<vmem>>, vector<1x2x128xf32>
    %30 = vector.shape_cast %29 : vector<1x2x128xf32> to vector<2x128xf32>
    %cst_23 = arith.constant dense<0.000000e+00> : vector<2x128xf32>
    %31 = tpu.matmul %26, %25, %cst_23 {dimension_numbers = #tpu.dot_dimension_numbers<[1], [0], [0], [1], [0, 0, 1, 1], [], []>} : vector<2x32xf32>, vector<32x128xf32>, vector<2x128xf32> -> vector<2x128xf32>
    %32 = arith.addf %30, %31 : vector<2x128xf32>
    %33 = vector.extract_strided_slice %32 {offsets = [0, 0], sizes = [2, 64], strides = [1, 1]} : vector<2x128xf32> to vector<2x64xf32>
    %34 = arith.negf %33 : vector<2x64xf32>
    %35 = math.exp %34 : vector<2x64xf32>
    %cst_24 = arith.constant 1.000000e+00 : f32
    %36 = vector.broadcast %cst_24 : f32 to vector<2x64xf32>
    %37 = arith.addf %36, %35 : vector<2x64xf32>
    %38 = arith.divf %36, %37 : vector<2x64xf32>
    %39 = vector.extract_strided_slice %32 {offsets = [0, 64], sizes = [2, 32], strides = [1, 1]} : vector<2x128xf32> to vector<2x32xf32>
    %40 = math.tanh %39 : vector<2x32xf32>
    %41 = vector.extract_strided_slice %32 {offsets = [0, 96], sizes = [2, 32], strides = [1, 1]} : vector<2x128xf32> to vector<2x32xf32>
    %42 = arith.negf %41 : vector<2x32xf32>
    %43 = math.exp %42 : vector<2x32xf32>
    %cst_25 = arith.constant 1.000000e+00 : f32
    %44 = vector.broadcast %cst_25 : f32 to vector<2x32xf32>
    %45 = arith.addf %44, %43 : vector<2x32xf32>
    %46 = arith.divf %44, %45 : vector<2x32xf32>
    %47 = vector.extract_strided_slice %38 {offsets = [0, 32], sizes = [2, 32], strides = [1, 1]} : vector<2x64xf32> to vector<2x32xf32>
    %48 = arith.mulf %47, %27 : vector<2x32xf32>
    %49 = vector.extract_strided_slice %38 {offsets = [0, 0], sizes = [2, 32], strides = [1, 1]} : vector<2x64xf32> to vector<2x32xf32>
    %50 = arith.mulf %49, %40 : vector<2x32xf32>
    %51 = arith.addf %48, %50 : vector<2x32xf32>
    %52 = math.tanh %51 : vector<2x32xf32>
    %53 = arith.mulf %46, %52 : vector<2x32xf32>
    %54 = arith.index_cast %c0_i32_20 : i32 to index
    %c0_26 = arith.constant 0 : index
    %c0_27 = arith.constant 0 : index
    %55 = vector.load %arg10[%54, %c0_26, %c0_27] : memref<8x2x32xf32, #tpu.memory_space<vmem>>, vector<1x2x32xf32>
    %56 = vector.shape_cast %55 : vector<1x2x32xf32> to vector<2x32xf32>
    %57 = vector.shape_cast %53 : vector<2x32xf32> to vector<1x2x32xf32>
    tpu.vector_store %arg10[%54, %c0_26, %c0_27], %57 {strides = array<i32>} : memref<8x2x32xf32, #tpu.memory_space<vmem>>, vector<1x2x32xf32>,
    %c1_i32 = arith.constant 1 : i32
    %58 = arith.index_cast %c1_i32 : i32 to index
    %c0_28 = arith.constant 0 : index
    %c0_29 = arith.constant 0 : index
    %59 = vector.load %arg9[%58, %c0_28, %c0_29] : memref<8x2x128xf32, #tpu.memory_space<vmem>>, vector<1x2x128xf32>
    %60 = vector.shape_cast %59 : vector<1x2x128xf32> to vector<2x128xf32>
    %cst_30 = arith.constant dense<0.000000e+00> : vector<2x128xf32>
    %61 = tpu.matmul %53, %25, %cst_30 {dimension_numbers = #tpu.dot_dimension_numbers<[1], [0], [0], [1], [0, 0, 1, 1], [], []>} : vector<2x32xf32>, vector<32x128xf32>, vector<2x128xf32> -> vector<2x128xf32>
    %62 = arith.addf %60, %61 : vector<2x128xf32>
    %63 = vector.extract_strided_slice %62 {offsets = [0, 0], sizes = [2, 64], strides = [1, 1]} : vector<2x128xf32> to vector<2x64xf32>
    %64 = arith.negf %63 : vector<2x64xf32>
    %65 = math.exp %64 : vector<2x64xf32>
    %cst_31 = arith.constant 1.000000e+00 : f32
    %66 = vector.broadcast %cst_31 : f32 to vector<2x64xf32>
    %67 = arith.addf %66, %65 : vector<2x64xf32>
    %68 = arith.divf %66, %67 : vector<2x64xf32>
    %69 = vector.extract_strided_slice %62 {offsets = [0, 64], sizes = [2, 32], strides = [1, 1]} : vector<2x128xf32> to vector<2x32xf32>
    %70 = math.tanh %69 : vector<2x32xf32>
    %71 = vector.extract_strided_slice %62 {offsets = [0, 96], sizes = [2, 32], strides = [1, 1]} : vector<2x128xf32> to vector<2x32xf32>
    %72 = arith.negf %71 : vector<2x32xf32>
    %73 = math.exp %72 : vector<2x32xf32>
    %cst_32 = arith.constant 1.000000e+00 : f32
    %74 = vector.broadcast %cst_32 : f32 to vector<2x32xf32>
    %75 = arith.addf %74, %73 : vector<2x32xf32>
    %76 = arith.divf %74, %75 : vector<2x32xf32>
    %77 = vector.extract_strided_slice %68 {offsets = [0, 32], sizes = [2, 32], strides = [1, 1]} : vector<2x64xf32> to vector<2x32xf32>
    %78 = arith.mulf %77, %51 : vector<2x32xf32>
    %79 = vector.extract_strided_slice %68 {offsets = [0, 0], sizes = [2, 32], strides = [1, 1]} : vector<2x64xf32> to vector<2x32xf32>
    %80 = arith.mulf %79, %70 : vector<2x32xf32>
    %81 = arith.addf %78, %80 : vector<2x32xf32>
    %82 = math.tanh %81 : vector<2x32xf32>
    %83 = arith.mulf %76, %82 : vector<2x32xf32>
    %84 = arith.index_cast %c1_i32 : i32 to index
    %c0_33 = arith.constant 0 : index
    %c0_34 = arith.constant 0 : index
    %85 = vector.load %arg10[%84, %c0_33, %c0_34] : memref<8x2x32xf32, #tpu.memory_space<vmem>>, vector<1x2x32xf32>
    %86 = vector.shape_cast %85 : vector<1x2x32xf32> to vector<2x32xf32>
    %87 = vector.shape_cast %83 : vector<2x32xf32> to vector<1x2x32xf32>
    tpu.vector_store %arg10[%84, %c0_33, %c0_34], %87 {strides = array<i32>} : memref<8x2x32xf32, #tpu.memory_space<vmem>>, vector<1x2x32xf32>,
    %c2_i32 = arith.constant 2 : i32
    %88 = arith.index_cast %c2_i32 : i32 to index
    %c0_35 = arith.constant 0 : index
    %c0_36 = arith.constant 0 : index
    %89 = vector.load %arg9[%88, %c0_35, %c0_36] : memref<8x2x128xf32, #tpu.memory_space<vmem>>, vector<1x2x128xf32>
    %90 = vector.shape_cast %89 : vector<1x2x128xf32> to vector<2x128xf32>
    %cst_37 = arith.constant dense<0.000000e+00> : vector<2x128xf32>
    %91 = tpu.matmul %83, %25, %cst_37 {dimension_numbers = #tpu.dot_dimension_numbers<[1], [0], [0], [1], [0, 0, 1, 1], [], []>} : vector<2x32xf32>, vector<32x128xf32>, vector<2x128xf32> -> vector<2x128xf32>
    %92 = arith.addf %90, %91 : vector<2x128xf32>
    %93 = vector.extract_strided_slice %92 {offsets = [0, 0], sizes = [2, 64], strides = [1, 1]} : vector<2x128xf32> to vector<2x64xf32>
    %94 = arith.negf %93 : vector<2x64xf32>
    %95 = math.exp %94 : vector<2x64xf32>
    %cst_38 = arith.constant 1.000000e+00 : f32
    %96 = vector.broadcast %cst_38 : f32 to vector<2x64xf32>
    %97 = arith.addf %96, %95 : vector<2x64xf32>
    %98 = arith.divf %96, %97 : vector<2x64xf32>
    %99 = vector.extract_strided_slice %92 {offsets = [0, 64], sizes = [2, 32], strides = [1, 1]} : vector<2x128xf32> to vector<2x32xf32>
    %100 = math.tanh %99 : vector<2x32xf32>
    %101 = vector.extract_strided_slice %92 {offsets = [0, 96], sizes = [2, 32], strides = [1, 1]} : vector<2x128xf32> to vector<2x32xf32>
    %102 = arith.negf %101 : vector<2x32xf32>
    %103 = math.exp %102 : vector<2x32xf32>
    %cst_39 = arith.constant 1.000000e+00 : f32
    %104 = vector.broadcast %cst_39 : f32 to vector<2x32xf32>
    %105 = arith.addf %104, %103 : vector<2x32xf32>
    %106 = arith.divf %104, %105 : vector<2x32xf32>
    %107 = vector.extract_strided_slice %98 {offsets = [0, 32], sizes = [2, 32], strides = [1, 1]} : vector<2x64xf32> to vector<2x32xf32>
    %108 = arith.mulf %107, %81 : vector<2x32xf32>
    %109 = vector.extract_strided_slice %98 {offsets = [0, 0], sizes = [2, 32], strides = [1, 1]} : vector<2x64xf32> to vector<2x32xf32>
    %110 = arith.mulf %109, %100 : vector<2x32xf32>
    %111 = arith.addf %108, %110 : vector<2x32xf32>
    %112 = math.tanh %111 : vector<2x32xf32>
    %113 = arith.mulf %106, %112 : vector<2x32xf32>
    %114 = arith.index_cast %c2_i32 : i32 to index
    %c0_40 = arith.constant 0 : index
    %c0_41 = arith.constant 0 : index
    %115 = vector.load %arg10[%114, %c0_40, %c0_41] : memref<8x2x32xf32, #tpu.memory_space<vmem>>, vector<1x2x32xf32>
    %116 = vector.shape_cast %115 : vector<1x2x32xf32> to vector<2x32xf32>
    %117 = vector.shape_cast %113 : vector<2x32xf32> to vector<1x2x32xf32>
    tpu.vector_store %arg10[%114, %c0_40, %c0_41], %117 {strides = array<i32>} : memref<8x2x32xf32, #tpu.memory_space<vmem>>, vector<1x2x32xf32>,
    %c3_i32 = arith.constant 3 : i32
    %118 = arith.index_cast %c3_i32 : i32 to index
    %c0_42 = arith.constant 0 : index
    %c0_43 = arith.constant 0 : index
    %119 = vector.load %arg9[%118, %c0_42, %c0_43] : memref<8x2x128xf32, #tpu.memory_space<vmem>>, vector<1x2x128xf32>
    %120 = vector.shape_cast %119 : vector<1x2x128xf32> to vector<2x128xf32>
    %cst_44 = arith.constant dense<0.000000e+00> : vector<2x128xf32>
    %121 = tpu.matmul %113, %25, %cst_44 {dimension_numbers = #tpu.dot_dimension_numbers<[1], [0], [0], [1], [0, 0, 1, 1], [], []>} : vector<2x32xf32>, vector<32x128xf32>, vector<2x128xf32> -> vector<2x128xf32>
    %122 = arith.addf %120, %121 : vector<2x128xf32>
    %123 = vector.extract_strided_slice %122 {offsets = [0, 0], sizes = [2, 64], strides = [1, 1]} : vector<2x128xf32> to vector<2x64xf32>
    %124 = arith.negf %123 : vector<2x64xf32>
    %125 = math.exp %124 : vector<2x64xf32>
    %cst_45 = arith.constant 1.000000e+00 : f32
    %126 = vector.broadcast %cst_45 : f32 to vector<2x64xf32>
    %127 = arith.addf %126, %125 : vector<2x64xf32>
    %128 = arith.divf %126, %127 : vector<2x64xf32>
    %129 = vector.extract_strided_slice %122 {offsets = [0, 64], sizes = [2, 32], strides = [1, 1]} : vector<2x128xf32> to vector<2x32xf32>
    %130 = math.tanh %129 : vector<2x32xf32>
    %131 = vector.extract_strided_slice %122 {offsets = [0, 96], sizes = [2, 32], strides = [1, 1]} : vector<2x128xf32> to vector<2x32xf32>
    %132 = arith.negf %131 : vector<2x32xf32>
    %133 = math.exp %132 : vector<2x32xf32>
    %cst_46 = arith.constant 1.000000e+00 : f32
    %134 = vector.broadcast %cst_46 : f32 to vector<2x32xf32>
    %135 = arith.addf %134, %133 : vector<2x32xf32>
    %136 = arith.divf %134, %135 : vector<2x32xf32>
    %137 = vector.extract_strided_slice %128 {offsets = [0, 32], sizes = [2, 32], strides = [1, 1]} : vector<2x64xf32> to vector<2x32xf32>
    %138 = arith.mulf %137, %111 : vector<2x32xf32>
    %139 = vector.extract_strided_slice %128 {offsets = [0, 0], sizes = [2, 32], strides = [1, 1]} : vector<2x64xf32> to vector<2x32xf32>
    %140 = arith.mulf %139, %130 : vector<2x32xf32>
    %141 = arith.addf %138, %140 : vector<2x32xf32>
    %142 = math.tanh %141 : vector<2x32xf32>
    %143 = arith.mulf %136, %142 : vector<2x32xf32>
    %144 = arith.index_cast %c3_i32 : i32 to index
    %c0_47 = arith.constant 0 : index
    %c0_48 = arith.constant 0 : index
    %145 = vector.load %arg10[%144, %c0_47, %c0_48] : memref<8x2x32xf32, #tpu.memory_space<vmem>>, vector<1x2x32xf32>
    %146 = vector.shape_cast %145 : vector<1x2x32xf32> to vector<2x32xf32>
    %147 = vector.shape_cast %143 : vector<2x32xf32> to vector<1x2x32xf32>
    tpu.vector_store %arg10[%144, %c0_47, %c0_48], %147 {strides = array<i32>} : memref<8x2x32xf32, #tpu.memory_space<vmem>>, vector<1x2x32xf32>,
    %c4_i32 = arith.constant 4 : i32
    %148 = arith.index_cast %c4_i32 : i32 to index
    %c0_49 = arith.constant 0 : index
    %c0_50 = arith.constant 0 : index
    %149 = vector.load %arg9[%148, %c0_49, %c0_50] : memref<8x2x128xf32, #tpu.memory_space<vmem>>, vector<1x2x128xf32>
    %150 = vector.shape_cast %149 : vector<1x2x128xf32> to vector<2x128xf32>
    %cst_51 = arith.constant dense<0.000000e+00> : vector<2x128xf32>
    %151 = tpu.matmul %143, %25, %cst_51 {dimension_numbers = #tpu.dot_dimension_numbers<[1], [0], [0], [1], [0, 0, 1, 1], [], []>} : vector<2x32xf32>, vector<32x128xf32>, vector<2x128xf32> -> vector<2x128xf32>
    %152 = arith.addf %150, %151 : vector<2x128xf32>
    %153 = vector.extract_strided_slice %152 {offsets = [0, 0], sizes = [2, 64], strides = [1, 1]} : vector<2x128xf32> to vector<2x64xf32>
    %154 = arith.negf %153 : vector<2x64xf32>
    %155 = math.exp %154 : vector<2x64xf32>
    %cst_52 = arith.constant 1.000000e+00 : f32
    %156 = vector.broadcast %cst_52 : f32 to vector<2x64xf32>
    %157 = arith.addf %156, %155 : vector<2x64xf32>
    %158 = arith.divf %156, %157 : vector<2x64xf32>
    %159 = vector.extract_strided_slice %152 {offsets = [0, 64], sizes = [2, 32], strides = [1, 1]} : vector<2x128xf32> to vector<2x32xf32>
    %160 = math.tanh %159 : vector<2x32xf32>
    %161 = vector.extract_strided_slice %152 {offsets = [0, 96], sizes = [2, 32], strides = [1, 1]} : vector<2x128xf32> to vector<2x32xf32>
    %162 = arith.negf %161 : vector<2x32xf32>
    %163 = math.exp %162 : vector<2x32xf32>
    %cst_53 = arith.constant 1.000000e+00 : f32
    %164 = vector.broadcast %cst_53 : f32 to vector<2x32xf32>
    %165 = arith.addf %164, %163 : vector<2x32xf32>
    %166 = arith.divf %164, %165 : vector<2x32xf32>
    %167 = vector.extract_strided_slice %158 {offsets = [0, 32], sizes = [2, 32], strides = [1, 1]} : vector<2x64xf32> to vector<2x32xf32>
    %168 = arith.mulf %167, %141 : vector<2x32xf32>
    %169 = vector.extract_strided_slice %158 {offsets = [0, 0], sizes = [2, 32], strides = [1, 1]} : vector<2x64xf32> to vector<2x32xf32>
    %170 = arith.mulf %169, %160 : vector<2x32xf32>
    %171 = arith.addf %168, %170 : vector<2x32xf32>
    %172 = math.tanh %171 : vector<2x32xf32>
    %173 = arith.mulf %166, %172 : vector<2x32xf32>
    %174 = arith.index_cast %c4_i32 : i32 to index
    %c0_54 = arith.constant 0 : index
    %c0_55 = arith.constant 0 : index
    %175 = vector.load %arg10[%174, %c0_54, %c0_55] : memref<8x2x32xf32, #tpu.memory_space<vmem>>, vector<1x2x32xf32>
    %176 = vector.shape_cast %175 : vector<1x2x32xf32> to vector<2x32xf32>
    %177 = vector.shape_cast %173 : vector<2x32xf32> to vector<1x2x32xf32>
    tpu.vector_store %arg10[%174, %c0_54, %c0_55], %177 {strides = array<i32>} : memref<8x2x32xf32, #tpu.memory_space<vmem>>, vector<1x2x32xf32>,
    %c5_i32 = arith.constant 5 : i32
    %178 = arith.index_cast %c5_i32 : i32 to index
    %c0_56 = arith.constant 0 : index
    %c0_57 = arith.constant 0 : index
    %179 = vector.load %arg9[%178, %c0_56, %c0_57] : memref<8x2x128xf32, #tpu.memory_space<vmem>>, vector<1x2x128xf32>
    %180 = vector.shape_cast %179 : vector<1x2x128xf32> to vector<2x128xf32>
    %cst_58 = arith.constant dense<0.000000e+00> : vector<2x128xf32>
    %181 = tpu.matmul %173, %25, %cst_58 {dimension_numbers = #tpu.dot_dimension_numbers<[1], [0], [0], [1], [0, 0, 1, 1], [], []>} : vector<2x32xf32>, vector<32x128xf32>, vector<2x128xf32> -> vector<2x128xf32>
    %182 = arith.addf %180, %181 : vector<2x128xf32>
    %183 = vector.extract_strided_slice %182 {offsets = [0, 0], sizes = [2, 64], strides = [1, 1]} : vector<2x128xf32> to vector<2x64xf32>
    %184 = arith.negf %183 : vector<2x64xf32>
    %185 = math.exp %184 : vector<2x64xf32>
    %cst_59 = arith.constant 1.000000e+00 : f32
    %186 = vector.broadcast %cst_59 : f32 to vector<2x64xf32>
    %187 = arith.addf %186, %185 : vector<2x64xf32>
    %188 = arith.divf %186, %187 : vector<2x64xf32>
    %189 = vector.extract_strided_slice %182 {offsets = [0, 64], sizes = [2, 32], strides = [1, 1]} : vector<2x128xf32> to vector<2x32xf32>
    %190 = math.tanh %189 : vector<2x32xf32>
    %191 = vector.extract_strided_slice %182 {offsets = [0, 96], sizes = [2, 32], strides = [1, 1]} : vector<2x128xf32> to vector<2x32xf32>
    %192 = arith.negf %191 : vector<2x32xf32>
    %193 = math.exp %192 : vector<2x32xf32>
    %cst_60 = arith.constant 1.000000e+00 : f32
    %194 = vector.broadcast %cst_60 : f32 to vector<2x32xf32>
    %195 = arith.addf %194, %193 : vector<2x32xf32>
    %196 = arith.divf %194, %195 : vector<2x32xf32>
    %197 = vector.extract_strided_slice %188 {offsets = [0, 32], sizes = [2, 32], strides = [1, 1]} : vector<2x64xf32> to vector<2x32xf32>
    %198 = arith.mulf %197, %171 : vector<2x32xf32>
    %199 = vector.extract_strided_slice %188 {offsets = [0, 0], sizes = [2, 32], strides = [1, 1]} : vector<2x64xf32> to vector<2x32xf32>
    %200 = arith.mulf %199, %190 : vector<2x32xf32>
    %201 = arith.addf %198, %200 : vector<2x32xf32>
    %202 = math.tanh %201 : vector<2x32xf32>
    %203 = arith.mulf %196, %202 : vector<2x32xf32>
    %204 = arith.index_cast %c5_i32 : i32 to index
    %c0_61 = arith.constant 0 : index
    %c0_62 = arith.constant 0 : index
    %205 = vector.load %arg10[%204, %c0_61, %c0_62] : memref<8x2x32xf32, #tpu.memory_space<vmem>>, vector<1x2x32xf32>
    %206 = vector.shape_cast %205 : vector<1x2x32xf32> to vector<2x32xf32>
    %207 = vector.shape_cast %203 : vector<2x32xf32> to vector<1x2x32xf32>
    tpu.vector_store %arg10[%204, %c0_61, %c0_62], %207 {strides = array<i32>} : memref<8x2x32xf32, #tpu.memory_space<vmem>>, vector<1x2x32xf32>,
    %c6_i32 = arith.constant 6 : i32
    %208 = arith.index_cast %c6_i32 : i32 to index
    %c0_63 = arith.constant 0 : index
    %c0_64 = arith.constant 0 : index
    %209 = vector.load %arg9[%208, %c0_63, %c0_64] : memref<8x2x128xf32, #tpu.memory_space<vmem>>, vector<1x2x128xf32>
    %210 = vector.shape_cast %209 : vector<1x2x128xf32> to vector<2x128xf32>
    %cst_65 = arith.constant dense<0.000000e+00> : vector<2x128xf32>
    %211 = tpu.matmul %203, %25, %cst_65 {dimension_numbers = #tpu.dot_dimension_numbers<[1], [0], [0], [1], [0, 0, 1, 1], [], []>} : vector<2x32xf32>, vector<32x128xf32>, vector<2x128xf32> -> vector<2x128xf32>
    %212 = arith.addf %210, %211 : vector<2x128xf32>
    %213 = vector.extract_strided_slice %212 {offsets = [0, 0], sizes = [2, 64], strides = [1, 1]} : vector<2x128xf32> to vector<2x64xf32>
    %214 = arith.negf %213 : vector<2x64xf32>
    %215 = math.exp %214 : vector<2x64xf32>
    %cst_66 = arith.constant 1.000000e+00 : f32
    %216 = vector.broadcast %cst_66 : f32 to vector<2x64xf32>
    %217 = arith.addf %216, %215 : vector<2x64xf32>
    %218 = arith.divf %216, %217 : vector<2x64xf32>
    %219 = vector.extract_strided_slice %212 {offsets = [0, 64], sizes = [2, 32], strides = [1, 1]} : vector<2x128xf32> to vector<2x32xf32>
    %220 = math.tanh %219 : vector<2x32xf32>
    %221 = vector.extract_strided_slice %212 {offsets = [0, 96], sizes = [2, 32], strides = [1, 1]} : vector<2x128xf32> to vector<2x32xf32>
    %222 = arith.negf %221 : vector<2x32xf32>
    %223 = math.exp %222 : vector<2x32xf32>
    %cst_67 = arith.constant 1.000000e+00 : f32
    %224 = vector.broadcast %cst_67 : f32 to vector<2x32xf32>
    %225 = arith.addf %224, %223 : vector<2x32xf32>
    %226 = arith.divf %224, %225 : vector<2x32xf32>
    %227 = vector.extract_strided_slice %218 {offsets = [0, 32], sizes = [2, 32], strides = [1, 1]} : vector<2x64xf32> to vector<2x32xf32>
    %228 = arith.mulf %227, %201 : vector<2x32xf32>
    %229 = vector.extract_strided_slice %218 {offsets = [0, 0], sizes = [2, 32], strides = [1, 1]} : vector<2x64xf32> to vector<2x32xf32>
    %230 = arith.mulf %229, %220 : vector<2x32xf32>
    %231 = arith.addf %228, %230 : vector<2x32xf32>
    %232 = math.tanh %231 : vector<2x32xf32>
    %233 = arith.mulf %226, %232 : vector<2x32xf32>
    %234 = arith.index_cast %c6_i32 : i32 to index
    %c0_68 = arith.constant 0 : index
    %c0_69 = arith.constant 0 : index
    %235 = vector.load %arg10[%234, %c0_68, %c0_69] : memref<8x2x32xf32, #tpu.memory_space<vmem>>, vector<1x2x32xf32>
    %236 = vector.shape_cast %235 : vector<1x2x32xf32> to vector<2x32xf32>
    %237 = vector.shape_cast %233 : vector<2x32xf32> to vector<1x2x32xf32>
    tpu.vector_store %arg10[%234, %c0_68, %c0_69], %237 {strides = array<i32>} : memref<8x2x32xf32, #tpu.memory_space<vmem>>, vector<1x2x32xf32>,
    %c7_i32 = arith.constant 7 : i32
    %238 = arith.index_cast %c7_i32 : i32 to index
    %c0_70 = arith.constant 0 : index
    %c0_71 = arith.constant 0 : index
    %239 = vector.load %arg9[%238, %c0_70, %c0_71] : memref<8x2x128xf32, #tpu.memory_space<vmem>>, vector<1x2x128xf32>
    %240 = vector.shape_cast %239 : vector<1x2x128xf32> to vector<2x128xf32>
    %cst_72 = arith.constant dense<0.000000e+00> : vector<2x128xf32>
    %241 = tpu.matmul %233, %25, %cst_72 {dimension_numbers = #tpu.dot_dimension_numbers<[1], [0], [0], [1], [0, 0, 1, 1], [], []>} : vector<2x32xf32>, vector<32x128xf32>, vector<2x128xf32> -> vector<2x128xf32>
    %242 = arith.addf %240, %241 : vector<2x128xf32>
    %243 = vector.extract_strided_slice %242 {offsets = [0, 0], sizes = [2, 64], strides = [1, 1]} : vector<2x128xf32> to vector<2x64xf32>
    %244 = arith.negf %243 : vector<2x64xf32>
    %245 = math.exp %244 : vector<2x64xf32>
    %cst_73 = arith.constant 1.000000e+00 : f32
    %246 = vector.broadcast %cst_73 : f32 to vector<2x64xf32>
    %247 = arith.addf %246, %245 : vector<2x64xf32>
    %248 = arith.divf %246, %247 : vector<2x64xf32>
    %249 = vector.extract_strided_slice %242 {offsets = [0, 64], sizes = [2, 32], strides = [1, 1]} : vector<2x128xf32> to vector<2x32xf32>
    %250 = math.tanh %249 : vector<2x32xf32>
    %251 = vector.extract_strided_slice %242 {offsets = [0, 96], sizes = [2, 32], strides = [1, 1]} : vector<2x128xf32> to vector<2x32xf32>
    %252 = arith.negf %251 : vector<2x32xf32>
    %253 = math.exp %252 : vector<2x32xf32>
    %cst_74 = arith.constant 1.000000e+00 : f32
    %254 = vector.broadcast %cst_74 : f32 to vector<2x32xf32>
    %255 = arith.addf %254, %253 : vector<2x32xf32>
    %256 = arith.divf %254, %255 : vector<2x32xf32>
    %257 = vector.extract_strided_slice %248 {offsets = [0, 32], sizes = [2, 32], strides = [1, 1]} : vector<2x64xf32> to vector<2x32xf32>
    %258 = arith.mulf %257, %231 : vector<2x32xf32>
    %259 = vector.extract_strided_slice %248 {offsets = [0, 0], sizes = [2, 32], strides = [1, 1]} : vector<2x64xf32> to vector<2x32xf32>
    %260 = arith.mulf %259, %250 : vector<2x32xf32>
    %261 = arith.addf %258, %260 : vector<2x32xf32>
    %262 = math.tanh %261 : vector<2x32xf32>
    %263 = arith.mulf %256, %262 : vector<2x32xf32>
    %264 = arith.index_cast %c7_i32 : i32 to index
    %c0_75 = arith.constant 0 : index
    %c0_76 = arith.constant 0 : index
    %265 = vector.load %arg10[%264, %c0_75, %c0_76] : memref<8x2x32xf32, #tpu.memory_space<vmem>>, vector<1x2x32xf32>
    %266 = vector.shape_cast %265 : vector<1x2x32xf32> to vector<2x32xf32>
    %267 = vector.shape_cast %263 : vector<2x32xf32> to vector<1x2x32xf32>
    tpu.vector_store %arg10[%264, %c0_75, %c0_76], %267 {strides = array<i32>} : memref<8x2x32xf32, #tpu.memory_space<vmem>>, vector<1x2x32xf32>,
    %c8_i32 = arith.constant 8 : i32
    %c0_77 = arith.constant 0 : index
    %c0_78 = arith.constant 0 : index
    %268 = vector.load %arg11[%c0_77, %c0_78] : memref<2x32xf32, #tpu.memory_space<vmem>>, vector<2x32xf32>
    tpu.vector_store %arg11[%c0_77, %c0_78], %263 {strides = array<i32>} : memref<2x32xf32, #tpu.memory_space<vmem>>, vector<2x32xf32>,
    %c0_79 = arith.constant 0 : index
    %c0_80 = arith.constant 0 : index
    %269 = vector.load %arg12[%c0_79, %c0_80] : memref<2x32xf32, #tpu.memory_space<vmem>>, vector<2x32xf32>
    tpu.vector_store %arg12[%c0_79, %c0_80], %261 {strides = array<i32>} : memref<2x32xf32, #tpu.memory_space<vmem>>, vector<2x32xf32>,
    %c0_81 = arith.constant 0 : index
    %c0_82 = arith.constant 0 : index
    %c0_83 = arith.constant 0 : index
    %270 = vector.load %arg10[%c0_81, %c0_82, %c0_83] : memref<8x2x32xf32, #tpu.memory_space<vmem>>, vector<8x2x32xf32>
    %271 = vector.shape_cast %270 : vector<8x2x32xf32> to vector<16x32xf32>
    %272 = arith.addf %3, %271 : vector<16x32xf32>
    %273 = arith.truncf %272 : vector<16x32xf32> to vector<16x32xbf16>
    %c0_84 = arith.constant 0 : index
    %c0_85 = arith.constant 0 : index
    %274 = vector.load %arg6[%c0_84, %c0_85] : memref<32x128xbf16, #tpu.memory_space<vmem>>, vector<32x128xbf16>
    %cst_86 = arith.constant dense<0.000000e+00> : vector<16x128xf32>
    %275 = tpu.matmul %273, %274, %cst_86 {dimension_numbers = #tpu.dot_dimension_numbers<[1], [0], [0], [1], [0, 0, 1, 1], [], []>} : vector<16x32xbf16>, vector<32x128xbf16>, vector<16x128xf32> -> vector<16x128xf32>
    %276 = vector.extract_strided_slice %275 {offsets = [0, 0], sizes = [16, 64], strides = [1, 1]} : vector<16x128xf32> to vector<16x64xf32>
    %277 = vector.extract_strided_slice %275 {offsets = [0, 64], sizes = [16, 64], strides = [1, 1]} : vector<16x128xf32> to vector<16x64xf32>
    %cst_87 = arith.constant 5.000000e-01 : f32
    %278 = vector.broadcast %cst_87 : f32 to vector<16x64xf32>
    %279 = arith.mulf %278, %276 : vector<16x64xf32>
    %cst_88 = arith.constant 0.707106769 : f32
    %280 = vector.broadcast %cst_88 : f32 to vector<16x64xf32>
    %281 = arith.mulf %276, %280 : vector<16x64xf32>
    %282 = math.erf %281 : vector<16x64xf32>
    %cst_89 = arith.constant 1.000000e+00 : f32
    %283 = vector.broadcast %cst_89 : f32 to vector<16x64xf32>
    %284 = arith.addf %283, %282 : vector<16x64xf32>
    %285 = arith.mulf %279, %284 : vector<16x64xf32>
    %286 = arith.mulf %285, %277 : vector<16x64xf32>
    %287 = arith.truncf %286 : vector<16x64xf32> to vector<16x64xbf16>
    %c0_90 = arith.constant 0 : index
    %c0_91 = arith.constant 0 : index
    %288 = vector.load %arg7[%c0_90, %c0_91] : memref<64x32xbf16, #tpu.memory_space<vmem>>, vector<64x32xbf16>
    %cst_92 = arith.constant dense<0.000000e+00> : vector<16x32xf32>
    %289 = tpu.matmul %287, %288, %cst_92 {dimension_numbers = #tpu.dot_dimension_numbers<[1], [0], [0], [1], [0, 0, 1, 1], [], []>} : vector<16x64xbf16>, vector<64x32xbf16>, vector<16x32xf32> -> vector<16x32xf32>
    %290 = arith.addf %272, %289 : vector<16x32xf32>
    %c0_93 = arith.constant 0 : index
    %c0_94 = arith.constant 0 : index
    %291 = vector.load %arg8[%c0_93, %c0_94] : memref<16x32xf32, #tpu.memory_space<vmem>>, vector<16x32xf32>
    tpu.vector_store %arg8[%c0_93, %c0_94], %290 {strides = array<i32>} : memref<16x32xf32, #tpu.memory_space<vmem>>, vector<16x32xf32>,
    return
  }
  func.func @transform_0(%arg0: i32) -> (i32, i32) {
    %c0_i32 = arith.constant 0 : i32
    %c0_i32_0 = arith.constant 0 : i32
    return %arg0, %c0_i32 : i32, i32
  }
  func.func @transform_1(%arg0: i32) -> (i32, i32) {
    %c0_i32 = arith.constant 0 : i32
    %c0_i32_0 = arith.constant 0 : i32
    %c0_i32_1 = arith.constant 0 : i32
    return %c0_i32, %c0_i32_0 : i32, i32
  }
  func.func @transform_2(%arg0: i32) -> (i32, i32) {
    %c0_i32 = arith.constant 0 : i32
    %c0_i32_0 = arith.constant 0 : i32
    %c0_i32_1 = arith.constant 0 : i32
    return %c0_i32, %c0_i32_0 : i32, i32
  }
  func.func @transform_3(%arg0: i32) -> (i32, i32) {
    %c0_i32 = arith.constant 0 : i32
    %c0_i32_0 = arith.constant 0 : i32
    %c0_i32_1 = arith.constant 0 : i32
    return %c0_i32, %c0_i32_0 : i32, i32
  }
  func.func @transform_4(%arg0: i32) -> (i32, i32) {
    %c0_i32 = arith.constant 0 : i32
    %c0_i32_0 = arith.constant 0 : i32
    %c0_i32_1 = arith.constant 0 : i32
    return %c0_i32, %c0_i32_0 : i32, i32
  }
  func.func @transform_5(%arg0: i32) -> (i32, i32) {
    %c0_i32 = arith.constant 0 : i32
    %c0_i32_0 = arith.constant 0 : i32
    %c0_i32_1 = arith.constant 0 : i32
    return %c0_i32, %c0_i32_0 : i32, i32
  }
  func.func @transform_6(%arg0: i32) -> (i32, i32) {
    %c0_i32 = arith.constant 0 : i32
    %c0_i32_0 = arith.constant 0 : i32
    %c0_i32_1 = arith.constant 0 : i32
    return %c0_i32, %c0_i32_0 : i32, i32
  }
  func.func @transform_7(%arg0: i32) -> (i32, i32) {
    %c0_i32 = arith.constant 0 : i32
    %c0_i32_0 = arith.constant 0 : i32
    return %arg0, %c0_i32 : i32, i32
  }
}

module attributes {stable_mosaic.version = 11 : i64} {
  func.func @linear_kernel(%arg0: i32, %arg1: memref<16x32xf32, #tpu.memory_space<vmem>>, %arg2: memref<32x5xbf16, #tpu.memory_space<vmem>>, %arg3: memref<1x5xf32, #tpu.memory_space<vmem>>, %arg4: memref<16x5xf32, #tpu.memory_space<vmem>>) attributes {dimension_semantics = [#tpu.dimension_semantics<parallel>], iteration_bounds = array<i64: 1>, scalar_prefetch = 0 : i64, scratch_operands = 0 : i64, tpu.core_type = #tpu.core_type<tc>, window_params = [{transform_indices = @transform_0, window_bounds = array<i64: 16, 32>}, {pipeline_mode = #tpu.pipeline_mode<synchronous>, transform_indices = @transform_1, window_bounds = array<i64: 32, 5>}, {pipeline_mode = #tpu.pipeline_mode<synchronous>, transform_indices = @transform_2, window_bounds = array<i64: 1, 5>}, {transform_indices = @transform_3, window_bounds = array<i64: 16, 5>}]} {
    %c0 = arith.constant 0 : index
    %c0_0 = arith.constant 0 : index
    %0 = vector.load %arg1[%c0, %c0_0] : memref<16x32xf32, #tpu.memory_space<vmem>>, vector<16x32xf32>
    %1 = arith.truncf %0 : vector<16x32xf32> to vector<16x32xbf16>
    %c0_1 = arith.constant 0 : index
    %c0_2 = arith.constant 0 : index
    %2 = vector.load %arg2[%c0_1, %c0_2] : memref<32x5xbf16, #tpu.memory_space<vmem>>, vector<32x5xbf16>
    %cst = arith.constant dense<0.000000e+00> : vector<16x5xf32>
    %3 = tpu.matmul %1, %2, %cst {dimension_numbers = #tpu.dot_dimension_numbers<[1], [0], [0], [1], [0, 0, 1, 1], [], []>} : vector<16x32xbf16>, vector<32x5xbf16>, vector<16x5xf32> -> vector<16x5xf32>
    %c0_3 = arith.constant 0 : index
    %c0_4 = arith.constant 0 : index
    %4 = vector.load %arg3[%c0_3, %c0_4] : memref<1x5xf32, #tpu.memory_space<vmem>>, vector<1x5xf32>
    %5 = vector.broadcast %4 : vector<1x5xf32> to vector<16x5xf32>
    %6 = arith.addf %3, %5 : vector<16x5xf32>
    %c0_5 = arith.constant 0 : index
    %c0_6 = arith.constant 0 : index
    %7 = vector.load %arg4[%c0_5, %c0_6] : memref<16x5xf32, #tpu.memory_space<vmem>>, vector<16x5xf32>
    tpu.vector_store %arg4[%c0_5, %c0_6], %6 {strides = array<i32>} : memref<16x5xf32, #tpu.memory_space<vmem>>, vector<16x5xf32>,
    return
  }
  func.func @transform_0(%arg0: i32) -> (i32, i32) {
    %c0_i32 = arith.constant 0 : i32
    %c0_i32_0 = arith.constant 0 : i32
    return %arg0, %c0_i32 : i32, i32
  }
  func.func @transform_1(%arg0: i32) -> (i32, i32) {
    %c0_i32 = arith.constant 0 : i32
    %c0_i32_0 = arith.constant 0 : i32
    %c0_i32_1 = arith.constant 0 : i32
    return %c0_i32, %c0_i32_0 : i32, i32
  }
  func.func @transform_2(%arg0: i32) -> (i32, i32) {
    %c0_i32 = arith.constant 0 : i32
    %c0_i32_0 = arith.constant 0 : i32
    %c0_i32_1 = arith.constant 0 : i32
    return %c0_i32, %c0_i32_0 : i32, i32
  }
  func.func @transform_3(%arg0: i32) -> (i32, i32) {
    %c0_i32 = arith.constant 0 : i32
    %c0_i32_0 = arith.constant 0 : i32
    return %arg0, %c0_i32 : i32, i32
  }
}

</mosaic_0001>

<bundles_post_ra>
// kernel: lstm_mixer_forward.4
= control target key start
LH: loop header
LB: loop body
LE: loop exit
PB: predicated region body
PF: predicated region fallthrough
CT: control target
= control target key end

     0   :  { %vm27_vm0 = vcmask 1041408   ;;  %vm28_vm1 = vcmask 1042432   ;;  %v58_v1 = vmov 65535   ;;  %vm23_vm2 = vcmask 39936   ;;  %s97_s1 = inlined_call_operand.vmem [shape: bf16[5,32], index: 1, kind: input, shape index: {}]   ;;  %s98_s0 = inlined_call_operand.vmem [shape: f32[16,5], index: 0, kind: input, shape index: {}]   ;;  %s99_s2 = inlined_call_operand.vmem [shape: f32[1,32], index: 2, kind: input, shape index: {}]   ;;  %s100_s3 = inlined_call_operand.vmem [shape: f32[16,32], index: 3, kind: output, shape index: {}]  }
   0x1   :  { %v18_v0 = vld [vmem:[%s97_s1] sm:$0x7]  ;;  %v29_v2 = vsel %vm27_vm0, 4294967295, %v58_v1  ;;  %v16_v4 = vld [vmem:[%s98_s0 + $0x8] sm:$0xff]  ;;  %vm48_vm3 = vcmask 261120  }
   0x2   :  { %v15_v3 = vld [vmem:[%s98_s0] sm:$0xff]  ;;  %v30_v5 = vsel %vm28_vm1, %v29_v2, 0 }
   0x3   :  { %v32_v6 = vand.u32 %v30_v5, %v18_v0  ;;  %v17_v7 = vpack.c.bf16 %v16_v4, %v15_v3  ;;  %v57_v8 = vld [vmem:[%s99_s2] ss:$0 sm:$0xff] }
   0x5   :  { %41 = vmatpush.bf16.msra.mxu0 %v32_v6 }
   0x8   :  { %55 = vmatmul.msk.bf16.vlgmr.msra.gmra.mxu0 %vm23_vm2, %v17_v7 }
  0x85   :  { %v43_v9 = vpop.f32.mrf.mxu0 }
  0x86   :  { %v44_v10 = vadd.f32 %v57_v8, %v43_v9 }
  0x88   :  { %49 = vst.msk [vmem:[%s100_s3] sm:$0xff] %vm48_vm3, %v44_v10 }
  0x8d   :  { %v45_v11 = vpop.f32.mrf.mxu0 }
  0x8e   :  { %v46_v12 = vadd.f32 %v57_v8, %v45_v11 }
  0x90   :  { %50 = vst.msk [vmem:[%s100_s3 + $0x8] sm:$0xff] %vm48_vm3, %v46_v12 }

// kernel: lstm_mixer_forward.7
= control target key start
LH: loop header
LB: loop body
LE: loop exit
PB: predicated region body
PF: predicated region fallthrough
CT: control target
= control target key end

     0   :  { %vm38_vm0 = vcmask 261120   ;;  %vm56_vm1 = vcmask 39936   ;;  %s116_s1 = inlined_call_operand.vmem [shape: bf16[32,5], index: 1, kind: input, shape index: {}]   ;;  %s117_s0 = inlined_call_operand.vmem [shape: f32[16,32], index: 0, kind: input, shape index: {}]   ;;  %s118_s2 = inlined_call_operand.vmem [shape: f32[1,5], index: 2, kind: input, shape index: {}]   ;;  %s119_s3 = inlined_call_operand.vmem [shape: f32[16,5], index: 3, kind: output, shape index: {}]  }
   0x1   :  { %v73_v0 = vld [vmem:[%s116_s1 + $0x8] sm:$0xff]  ;;  %v72_v1 = vld [vmem:[%s116_s1] sm:$0xff] }
   0x2   :  { %48 = vmatpush.bf16.msra.mxu0 %v73_v0  ;;  %v15_v2 = vld [vmem:[%s117_s0] sm:$0xff]  ;;  %v16_v3 = vld [vmem:[%s117_s0 + $0x8] sm:$0xff] }
   0x3   :  { %v17_v4 = vpack.c.bf16 %v16_v3, %v15_v2  ;;  %v74_v5 = vld [vmem:[%s118_s2] ss:$0 sm:$0xff] }
   0x6   :  { %49 = vmatpush.bf16.msra.mxu0 %v72_v1 }
   0x9   :  { %71 = vmatmul.msk.bf16.vlgmr.msra.gmra.mxu0 %vm38_vm0, %v17_v4 }
  0x86   :  { %v51_v6 = vpop.f32.mrf.mxu0 }
  0x87   :  { %v52_v7 = vadd.f32 %v74_v5, %v51_v6 }
  0x89   :  { %57 = vst.msk [vmem:[%s119_s3] sm:$0xff] %vm56_vm1, %v52_v7 }
  0x8e   :  { %v53_v8 = vpop.f32.mrf.mxu0 }
  0x8f   :  { %v54_v9 = vadd.f32 %v74_v5, %v53_v8 }
  0x91   :  { %58 = vst.msk [vmem:[%s119_s3 + $0x8] sm:$0xff] %vm56_vm1, %v54_v9 }

// kernel: lstm_mixer_forward.5
= control target key start
LH: loop header
LB: loop body
LE: loop exit
PB: predicated region body
PF: predicated region fallthrough
CT: control target
= control target key end

     0   :  { %12 = vsyncpa [#allocation7], 0  ;;  %s1119_s27 = smov [#allocation6]   ;;  %s1120_s29 = smov 64   ;;  %s1350_s0 = inlined_call_operand.vmem [shape: f32[16,32], index: 0, kind: input, shape index: {}]   ;;  %s1351_s1 = inlined_call_operand.vmem [shape: f32[1,32], index: 1, kind: input, shape index: {}]   ;;  %s1352_s2 = inlined_call_operand.vmem [shape: bf16[32,128], index: 2, kind: input, shape index: {}]   ;;  %s1353_s3 = inlined_call_operand.vmem [shape: f32[1,128], index: 3, kind: input, shape index: {}]   ;;  %s1354_s4 = inlined_call_operand.vmem [shape: f32[32,128], index: 4, kind: input, shape index: {}]   ;;  %s1355_s5 = inlined_call_operand.hbm [shape: bf16[32,128], index: 5, kind: input, shape index: {}]   ;;  %s1356_s6 = inlined_call_operand.vmem [shape: bf16[64,32], index: 6, kind: input, shape index: {}]   ;;  %s1357_s7 = inlined_call_operand.vmem [shape: f32[16,32], index: 7, kind: output, shape index: {}]  }
   0x1   :  { %s27_s26 = sshll.u32 %s1355_s5, 4  ;;  %s29_s28 = sshll.u32 %s1119_s27, 4  ;;  %s28_s26 = int_to_ptr.hbm [resolvable:$true] %s27_s26  ;;  %s30_s28 = int_to_ptr.vmem [resolvable:$true] %s29_s28 }
   0x2   :  { %s1121_s30 = smov 4  }
   0x3   :  { %35 = dma.hbm_to_vmem [thread:$0]  %s28_s26, 256, %s30_s28, [#allocation7], %s1120_s29, %s1120_s29, %s1121_s30  }
   0x4   :  { %1117 = dma.done.wait [#allocation7], 256  }
   0x5   :  { %1118 = vsyncadd [#allocation7], 4294967040  ;;  %v1174_v0 = vld [vmem:[%s1350_s0] sm:$0xff]  ;;  %vm54_vm0 = vcmask 261120   ;;  %v1181_v2 = vld [vmem:[%s1350_s0 + $0x8] sm:$0xff]  ;;  %v1122_v6 = vmov 32.0  }
   0x6   :  { %v52_v1 = vmul.f32 %v1174_v0, %v1174_v0  ;;  %v53_v4 = vmul.f32 %v1181_v2, %v1181_v2  ;;  %1019 = vrcp.f32 %v1122_v6  ;;  %v1003_v12 = vld [vmem:[%s1352_s2 + $0x8] sm:$0xff]  ;;  %v1002_v14 = vld [vmem:[%s1352_s2] sm:$0xff]  ;;  %v1196_v18 = vld [vmem:[%s1354_s4 + $0x18] sm:$0xff]  ;;  %vm47_vm2 = vcmask 254976  }
   0x7   :  { %130 = vmatpush.bf16.msra.mxu0 %v1003_v12  ;;  %v1201_v19 = vld [vmem:[%s1354_s4 + $0x10] sm:$0xff]  ;;  %182 = vmatpush.msra.mxu1 %v1196_v18  ;;  %v1123_v20 = vmov 0.0   ;;  %v1209_v21 = vld [vmem:[%s1354_s4 + $0x8] sm:$0xff]  ;;  %v160_v24 = vld [vmem:[%s1354_s4] sm:$0xff] }
   0x8   :  { %v55_v3 = vsel %vm54_vm0, %v52_v1, 0.0  ;;  %v58_v5 = vsel %vm54_vm0, %v53_v4, 0.0  ;;  %48 = vst.msk [vmem:[#allocation4] sm:$0x3] %vm47_vm2, %v1123_v20  ;;  %254 = vmatpush.msra.mxu2 %v1196_v18  ;;  %526 = vmatpush.msra.mxu3 %v1196_v18  ;;  %v1017_v41 = vld [vmem:[%s1351_s1] ss:$0 sm:$0xff] }
   0x9   :  { %56 = vadd.xlane.f32.xlu0 %v55_v3  ;;  %49 = vst.msk [vmem:[#allocation5] sm:$0x3] %vm47_vm2, %v1123_v20  ;;  %183 = vmatpush.msra.mxu1 %v1201_v19  ;;  %v1018_v47 = vld [vmem:[%s1353_s3] ss:$0 sm:$0xff]  ;;  %s1124_s1 = smov 32   ;;  %s1125_s3 = smov 96  }
   0xa   :  { %255 = vmatpush.msra.mxu2 %v1201_v19  ;;  %527 = vmatpush.msra.mxu3 %v1201_v19 }
   0xb   :  { %131 = vmatpush.bf16.msra.mxu0 %v1002_v14  ;;  %184 = vmatpush.msra.mxu1 %v1209_v21 }
   0xc   :  { %v1020_v7 = vpop.eup %1019  ;;  %256 = vmatpush.msra.mxu2 %v1209_v21  ;;  %528 = vmatpush.msra.mxu3 %v1209_v21 }
   0xd   :  { %v62_v8 = vmul.f32 32.0, %v1020_v7  ;;  %vm66_vm1 = vweird.f32 %v1020_v7  ;;  %185 = vmatpush.msra.mxu1 %v160_v24 }
   0xe   :  { %257 = vmatpush.msra.mxu2 %v160_v24  ;;  %529 = vmatpush.msra.mxu3 %v160_v24 }
   0xf   :  { %v63_v9 = vsub.f32 1.0, %v62_v8  ;;  %322 = vmatpush.msrb.mxu0 %v1196_v18  ;;  %v164_v28 = vld [vmem:[#allocation4] sm:$0x3]  ;;  %390 = vmatpush.msrb.mxu1 %v1196_v18 }
  0x10   :  { %958 = vmatmul.msk.f32.vlgmr.msra.gmra.mxu1 %vm54_vm0, %v164_v28  ;;  %458 = vmatpush.msrb.mxu2 %v1196_v18  ;;  %v165_v62 = vld [vmem:[#allocation5] sm:$0x3] }
  0x11   :  { %59 = vadd.xlane.f32.xlu0 %v58_v5  ;;  %v64_v10 = vmul.f32 %v1020_v7, %v63_v9  ;;  %323 = vmatpush.msrb.mxu0 %v1201_v19 }
  0x12   :  { %391 = vmatpush.msrb.mxu1 %v1201_v19  ;;  %459 = vmatpush.msrb.mxu2 %v1201_v19 }
  0x13   :  { %v65_v11 = vadd.f32 %v1020_v7, %v64_v10  ;;  %324 = vmatpush.msrb.mxu0 %v1209_v21 }
  0x14   :  { %392 = vmatpush.msrb.mxu1 %v1209_v21  ;;  %460 = vmatpush.msrb.mxu2 %v1209_v21 }
  0x15   :  { %v67_v13 = vsel %vm66_vm1, %v1020_v7, %v65_v11  ;;  %325 = vmatpush.msrb.mxu0 %v160_v24 }
  0x16   :  { %393 = vmatpush.msrb.mxu1 %v160_v24  ;;  %461 = vmatpush.msrb.mxu2 %v160_v24 }
  0x18   :  { %662 = vmatpush.msra.mxu1 %v1196_v18 }
  0x1a   :  { %663 = vmatpush.msra.mxu1 %v1201_v19 }
  0x1c   :  { %664 = vmatpush.msra.mxu1 %v1209_v21 }
  0x1e   :  { %665 = vmatpush.msra.mxu1 %v160_v24 }
  0x7c   :  { %v57_v15 = vpop.xlane.xlu0 %56 }
  0x7d   :  { %v68_v16 = vmul.f32 %v67_v13, %v57_v15 }
  0x7f   :  { %v70_v17 = vadd.f32 1e-08, %v68_v16 }
  0x81   :  { %1021 = vrsqrt.f32 %v70_v17  ;;  %vm78_vm4 = vweird.f32 %v70_v17 }
  0x84   :  { %v60_v22 = vpop.xlane.xlu0 %59 }
  0x85   :  { %v69_v23 = vmul.f32 %v67_v13, %v60_v22 }
  0x87   :  { %v1022_v25 = vpop.eup %1021  ;;  %v71_v26 = vadd.f32 1e-08, %v69_v23 }
  0x88   :  { %v73_v27 = vmul.f32 %v1022_v25, %v70_v17  ;;  %vm79_vm3 = vweird.f32 %v1022_v25 }
  0x89   :  { %1023 = vrsqrt.f32 %v71_v26  ;;  %vm80_vm5 = vmor %vm78_vm4, %vm79_vm3  ;;  %vm88_vm7 = vweird.f32 %v71_v26 }
  0x8a   :  { %v74_v29 = vmul.f32 %v1022_v25, %v73_v27 }
  0x8c   :  { %v75_v30 = vmul.f32 0.5, %v74_v29 }
  0x8d   :  { %v187_v54 = vpop.f32.mrf.mxu1 }
  0x8e   :  { %v76_v31 = vsub.f32 1.5, %v75_v30 }
  0x8f   :  { %v1024_v32 = vpop.eup %1023 }
  0x90   :  { %v83_v33 = vmul.f32 %v1024_v32, %v71_v26  ;;  %v77_v34 = vmul.f32 %v1022_v25, %v76_v31  ;;  %vm89_vm6 = vweird.f32 %v1024_v32 }
  0x91   :  { %vm90_vm8 = vmor %vm88_vm7, %vm89_vm6 }
  0x92   :  { %v84_v35 = vmul.f32 %v1024_v32, %v83_v33  ;;  %v81_v37 = vsel %vm80_vm5, %v1022_v25, %v77_v34 }
  0x93   :  { %v92_v40 = vmul.f32 %v81_v37, %v1174_v0 }
  0x94   :  { %v85_v36 = vmul.f32 0.5, %v84_v35 }
  0x95   :  { %v98_v44 = vmul.f32 %v1017_v41, %v92_v40 }
  0x96   :  { %v86_v38 = vsub.f32 1.5, %v85_v36 }
  0x98   :  { %v87_v39 = vmul.f32 %v1024_v32, %v86_v38 }
  0x9a   :  { %v91_v42 = vsel %vm90_vm8, %v1024_v32, %v87_v39 }
  0x9b   :  { %v93_v43 = vmul.f32 %v91_v42, %v1181_v2 }
  0x9d   :  { %v99_v45 = vmul.f32 %v1017_v41, %v93_v43 }
  0x9f   :  { %v100_v46 = vpack.c.bf16 %v99_v45, %v98_v44 }
  0xa1   :  { %957 = vmatmul.msk.bf16.vlgmr.msra.gmra.mxu0 %vm54_vm0, %v100_v46 }
  0xa2   :  { %594 = vmatpush.msra.mxu0 %v1196_v18 }
  0xa4   :  { %595 = vmatpush.msra.mxu0 %v1201_v19 }
  0xa6   :  { %596 = vmatpush.msra.mxu0 %v1209_v21 }
  0xa8   :  { %597 = vmatpush.msra.mxu0 %v160_v24 }
 0x11e   :  { %v133_v48 = vpop.f32.mrf.mxu0 }
 0x11f   :  { %v134_v49 = vadd.f32 %v1018_v47, %v133_v48 }
 0x121   :  { %v140_v50 = vrot.slane %v134_v49, 2  ;;  %v141_v51 = vrot.slane %v134_v49, 4  ;;  %v142_v52 = vrot.slane %v134_v49, 6  ;;  %152 = vst [vmem:[#allocation2] sm:$0x3] %v134_v49 }
 0x123   :  { %153 = vst [vmem:[#allocation2 + $0x2] sm:$0x3] %v140_v50 }
 0x124   :  { %154 = vst [vmem:[#allocation2 + $0x4] sm:$0x3] %v141_v51 }
 0x125   :  { %155 = vst [vmem:[#allocation2 + $0x6] sm:$0x3] %v142_v52 }
 0x126   :  { %v135_v53 = vpop.f32.mrf.mxu0 }
 0x127   :  { %v136_v55 = vadd.f32 %v1018_v47, %v135_v53 }
 0x128   :  { %v166_v56 = vld [vmem:[#allocation2] sm:$0x3] }
 0x129   :  { %v143_v57 = vrot.slane %v136_v55, 2  ;;  %v144_v58 = vrot.slane %v136_v55, 4  ;;  %v145_v59 = vrot.slane %v136_v55, 6  ;;  %156 = vst [vmem:[#allocation2 + $0x8] sm:$0x3] %v136_v55  ;;  %v190_v60 = vadd.f32 %v187_v54, %v166_v56 }
 0x12a   :  { %v239_v25 = vld [vmem:[#allocation2 + $0x2] sm:$0x3] }
 0x12b   :  { %157 = vst [vmem:[#allocation2 + $0xa] sm:$0x3] %v143_v57  ;;  %1025 = vtanh.f32 %v190_v60  ;;  %v959_v63 = vmul.f32 -1.442695, %v190_v60  ;;  %v307_v52 = vld [vmem:[#allocation2 + $0x4] sm:$0x3] }
 0x12c   :  { %158 = vst [vmem:[#allocation2 + $0xc] sm:$0x3] %v144_v58 }
 0x12d   :  { %159 = vst [vmem:[#allocation2 + $0xe] sm:$0x3] %v145_v59  ;;  %1027 = vpow2.f32 %v959_v63 }
 0x131   :  { %v1026_v61 = vpop.eup %1025 }
 0x132   :  { %217 = vrot.lane.b32.xlu1 %v1026_v61, %s1120_s29 }
 0x133   :  { %v1028_v1 = vpop.eup %1027 }
 0x134   :  { %v194_v3 = vadd.f32 1.0, %v1028_v1 }
 0x136   :  { %1029 = vrcp.f32 %v194_v3  ;;  %v206_v9 = vand.u32 2147483648, %v194_v3  ;;  %vm200_vm10 = vweird.f32 %v194_v3  ;;  %v204_v10 = vand.u32 2147483647, %v194_v3 }
 0x138   :  { %v207_v12 = vor.u32 1.1754944e-38, %v206_v9  ;;  %vm205_vm12 = vcmp.eq.f32.partialorder %v204_v10, 8.507059e+37 }
 0x13a   :  { %212 = vrot.lane.b32.xlu1 %v165_v62, %s1124_s1 }
 0x13c   :  { %v1030_v4 = vpop.eup %1029 }
 0x13d   :  { %v196_v5 = vmul.f32 %v1030_v4, %v194_v3  ;;  %vm201_vm9 = vweird.f32 %v1030_v4 }
 0x13e   :  { %vm202_vm11 = vmor %vm200_vm10, %vm201_vm9 }
 0x13f   :  { %v197_v6 = vsub.f32 1.0, %v196_v5 }
 0x141   :  { %v198_v7 = vmul.f32 %v1030_v4, %v197_v6 }
 0x143   :  { %v199_v8 = vadd.f32 %v1030_v4, %v198_v7 }
 0x145   :  { %v203_v11 = vsel %vm202_vm11, %v1030_v4, %v199_v8 }
 0x146   :  { %v208_v14 = vsel %vm205_vm12, %v207_v12, %v203_v11 }
 0x1a4   :  { %v218_v13 = vpop.permute.xlu1 %217 }
 0x1a5   :  { %v220_v15 = vmul.f32 %v218_v13, %v208_v14 }
 0x1a7   :  { %222 = vrot.lane.b32.xlu2 %v220_v15, %s1124_s1 }
 0x1ac   :  { %v213_v16 = vpop.permute.xlu1 %212 }
 0x1ad   :  { %v215_v17 = vmul.f32 %v213_v16, %v208_v14 }
 0x201   :  { %v223_v18 = vpop.permute.xlu2 %222 }
 0x202   :  { %v225_v19 = vadd.f32 %v223_v18, %v215_v17  ;;  %v375_v17 = vld [vmem:[#allocation2 + $0x6] sm:$0x3] }
 0x204   :  { %1031 = vtanh.f32 %v225_v19 }
 0x20a   :  { %v1032_v20 = vpop.eup %1031 }
 0x20b   :  { %228 = vrot.lane.b32.xlu2 %v1032_v20, %s1120_s29 }
 0x265   :  { %v229_v21 = vpop.permute.xlu2 %228 }
 0x266   :  { %v231_v22 = vmul.f32 %v229_v21, %v208_v14 }
 0x268   :  { %233 = vrot.lane.b32.xlu0 %v231_v22, %s1124_s1 }
 0x2da   :  { %v234_v23 = vpop.permute.xlu0 %233 }
 0x2db   :  { %237 = vst.msk [vmem:[#allocation3] sm:$0x3] %vm47_vm2, %v234_v23  ;;  %960 = vmatmul.msk.f32.vlgmr.msra.gmra.mxu2 %vm54_vm0, %v234_v23 }
 0x2e2   :  { %v720_v24 = vld [vmem:[#allocation3] sm:$0x3] }
 0x2e3   :  { %736 = vst [vmem:[#allocation1] ss:$4 sm:$0xff] %v720_v24 }
 0x35e   :  { %v259_v26 = vpop.f32.mrf.mxu2 }
 0x35f   :  { %v262_v27 = vadd.f32 %v259_v26, %v239_v25 }
 0x361   :  { %1033 = vtanh.f32 %v262_v27  ;;  %v961_v29 = vmul.f32 -1.442695, %v262_v27 }
 0x363   :  { %1035 = vpow2.f32 %v961_v29 }
 0x367   :  { %v1034_v28 = vpop.eup %1033 }
 0x368   :  { %285 = vrot.lane.b32.xlu1 %v1034_v28, %s1120_s29 }
 0x369   :  { %v1036_v30 = vpop.eup %1035 }
 0x36a   :  { %v266_v31 = vadd.f32 1.0, %v1036_v30 }
 0x36c   :  { %1037 = vrcp.f32 %v266_v31  ;;  %v278_v37 = vand.u32 2147483648, %v266_v31  ;;  %vm272_vm14 = vweird.f32 %v266_v31  ;;  %v276_v38 = vand.u32 2147483647, %v266_v31 }
 0x36e   :  { %v279_v40 = vor.u32 1.1754944e-38, %v278_v37  ;;  %vm277_vm1 = vcmp.eq.f32.partialorder %v276_v38, 8.507059e+37 }
 0x372   :  { %v1038_v32 = vpop.eup %1037 }
 0x373   :  { %v268_v33 = vmul.f32 %v1038_v32, %v266_v31  ;;  %vm273_vm13 = vweird.f32 %v1038_v32 }
 0x374   :  { %vm274_vm15 = vmor %vm272_vm14, %vm273_vm13 }
 0x375   :  { %v269_v34 = vsub.f32 1.0, %v268_v33 }
 0x377   :  { %v270_v35 = vmul.f32 %v1038_v32, %v269_v34 }
 0x379   :  { %v271_v36 = vadd.f32 %v1038_v32, %v270_v35 }
 0x37b   :  { %v275_v39 = vsel %vm274_vm15, %v1038_v32, %v271_v36 }
 0x37c   :  { %v280_v42 = vsel %vm277_vm1, %v279_v40, %v275_v39 }
 0x37d   :  { %v283_v44 = vmul.f32 %v280_v42, %v225_v19 }
 0x3da   :  { %v286_v41 = vpop.permute.xlu1 %285 }
 0x3db   :  { %v288_v43 = vmul.f32 %v286_v41, %v280_v42 }
 0x3dd   :  { %290 = vrot.lane.b32.xlu2 %v288_v43, %s1124_s1 }
 0x437   :  { %v291_v45 = vpop.permute.xlu2 %290 }
 0x438   :  { %v293_v46 = vadd.f32 %v291_v45, %v283_v44  ;;  %v443_v44 = vld [vmem:[#allocation2 + $0x8] sm:$0x3] }
 0x43a   :  { %1039 = vtanh.f32 %v293_v46 }
 0x440   :  { %v1040_v47 = vpop.eup %1039 }
 0x441   :  { %296 = vrot.lane.b32.xlu1 %v1040_v47, %s1120_s29 }
 0x4b3   :  { %v297_v48 = vpop.permute.xlu1 %296 }
 0x4b4   :  { %v299_v49 = vmul.f32 %v297_v48, %v280_v42 }
 0x4b6   :  { %301 = vrot.lane.b32.xlu2 %v299_v49, %s1124_s1 }
 0x510   :  { %v302_v50 = vpop.permute.xlu2 %301 }
 0x511   :  { %305 = vst.msk [vmem:[#allocation3 + $0x2] sm:$0x3] %vm47_vm2, %v302_v50  ;;  %962 = vmatmul.msk.f32.vlgmr.msrb.gmra.mxu0 %vm54_vm0, %v302_v50 }
 0x518   :  { %v721_v51 = vld [vmem:[#allocation3 + $0x2] sm:$0x3] }
 0x519   :  { %738 = vst [vmem:[#allocation1 + $0x1] ss:$4 sm:$0xff] %v721_v51 }
 0x58e   :  { %v327_v53 = vpop.f32.mrf.mxu0 }
 0x58f   :  { %v330_v54 = vadd.f32 %v327_v53, %v307_v52 }
 0x591   :  { %1041 = vtanh.f32 %v330_v54  ;;  %v963_v56 = vmul.f32 -1.442695, %v330_v54 }
 0x593   :  { %1043 = vpow2.f32 %v963_v56 }
 0x597   :  { %v1042_v55 = vpop.eup %1041 }
 0x598   :  { %353 = vrot.lane.b32.xlu1 %v1042_v55, %s1120_s29 }
 0x599   :  { %v1044_v57 = vpop.eup %1043 }
 0x59a   :  { %v334_v58 = vadd.f32 1.0, %v1044_v57 }
 0x59c   :  { %1045 = vrcp.f32 %v334_v58  ;;  %v346_v1 = vand.u32 2147483648, %v334_v58  ;;  %vm340_vm4 = vweird.f32 %v334_v58  ;;  %v344_v3 = vand.u32 2147483647, %v334_v58 }
 0x59e   :  { %v347_v5 = vor.u32 1.1754944e-38, %v346_v1  ;;  %vm345_vm6 = vcmp.eq.f32.partialorder %v344_v3, 8.507059e+37 }
 0x5a2   :  { %v1046_v59 = vpop.eup %1045 }
 0x5a3   :  { %v336_v60 = vmul.f32 %v1046_v59, %v334_v58  ;;  %vm341_vm3 = vweird.f32 %v1046_v59 }
 0x5a4   :  { %vm342_vm5 = vmor %vm340_vm4, %vm341_vm3 }
 0x5a5   :  { %v337_v61 = vsub.f32 1.0, %v336_v60 }
 0x5a7   :  { %v338_v62 = vmul.f32 %v1046_v59, %v337_v61 }
 0x5a9   :  { %v339_v63 = vadd.f32 %v1046_v59, %v338_v62 }
 0x5ab   :  { %v343_v4 = vsel %vm342_vm5, %v1046_v59, %v339_v63 }
 0x5ac   :  { %v348_v7 = vsel %vm345_vm6, %v347_v5, %v343_v4 }
 0x5ad   :  { %v351_v9 = vmul.f32 %v348_v7, %v293_v46 }
 0x60a   :  { %v354_v6 = vpop.permute.xlu1 %353 }
 0x60b   :  { %v356_v8 = vmul.f32 %v354_v6, %v348_v7 }
 0x60d   :  { %358 = vrot.lane.b32.xlu2 %v356_v8, %s1124_s1 }
 0x667   :  { %v359_v10 = vpop.permute.xlu2 %358 }
 0x668   :  { %v361_v11 = vadd.f32 %v359_v10, %v351_v9  ;;  %v511_v9 = vld [vmem:[#allocation2 + $0xa] sm:$0x3] }
 0x66a   :  { %1047 = vtanh.f32 %v361_v11 }
 0x670   :  { %v1048_v12 = vpop.eup %1047 }
 0x671   :  { %364 = vrot.lane.b32.xlu0 %v1048_v12, %s1120_s29 }
 0x6e3   :  { %v365_v13 = vpop.permute.xlu0 %364 }
 0x6e4   :  { %v367_v14 = vmul.f32 %v365_v13, %v348_v7 }
 0x6e6   :  { %369 = vrot.lane.b32.xlu1 %v367_v14, %s1124_s1 }
 0x758   :  { %v370_v15 = vpop.permute.xlu1 %369 }
 0x759   :  { %373 = vst.msk [vmem:[#allocation3 + $0x4] sm:$0x3] %vm47_vm2, %v370_v15  ;;  %964 = vmatmul.msk.f32.vlgmr.msrb.gmra.mxu1 %vm54_vm0, %v370_v15 }
 0x760   :  { %v722_v16 = vld [vmem:[#allocation3 + $0x4] sm:$0x3] }
 0x761   :  { %740 = vst [vmem:[#allocation1 + $0x2] ss:$4 sm:$0xff] %v722_v16 }
 0x7d6   :  { %v395_v18 = vpop.f32.mrf.mxu1 }
 0x7d7   :  { %v398_v19 = vadd.f32 %v395_v18, %v375_v17 }
 0x7d9   :  { %1049 = vtanh.f32 %v398_v19  ;;  %v965_v21 = vmul.f32 -1.442695, %v398_v19 }
 0x7db   :  { %1051 = vpow2.f32 %v965_v21 }
 0x7df   :  { %v1050_v20 = vpop.eup %1049 }
 0x7e0   :  { %421 = vrot.lane.b32.xlu2 %v1050_v20, %s1120_s29 }
 0x7e1   :  { %v1052_v22 = vpop.eup %1051 }
 0x7e2   :  { %v402_v23 = vadd.f32 1.0, %v1052_v22 }
 0x7e4   :  { %1053 = vrcp.f32 %v402_v23  ;;  %v414_v29 = vand.u32 2147483648, %v402_v23  ;;  %vm408_vm8 = vweird.f32 %v402_v23  ;;  %v412_v30 = vand.u32 2147483647, %v402_v23 }
 0x7e6   :  { %v415_v32 = vor.u32 1.1754944e-38, %v414_v29  ;;  %vm413_vm10 = vcmp.eq.f32.partialorder %v412_v30, 8.507059e+37 }
 0x7ea   :  { %v1054_v24 = vpop.eup %1053 }
 0x7eb   :  { %v404_v25 = vmul.f32 %v1054_v24, %v402_v23  ;;  %vm409_vm7 = vweird.f32 %v1054_v24 }
 0x7ec   :  { %vm410_vm9 = vmor %vm408_vm8, %vm409_vm7 }
 0x7ed   :  { %v405_v26 = vsub.f32 1.0, %v404_v25 }
 0x7ef   :  { %v406_v27 = vmul.f32 %v1054_v24, %v405_v26 }
 0x7f1   :  { %v407_v28 = vadd.f32 %v1054_v24, %v406_v27 }
 0x7f3   :  { %v411_v31 = vsel %vm410_vm9, %v1054_v24, %v407_v28 }
 0x7f4   :  { %v416_v34 = vsel %vm413_vm10, %v415_v32, %v411_v31 }
 0x7f5   :  { %v419_v36 = vmul.f32 %v416_v34, %v361_v11 }
 0x83a   :  { %v422_v33 = vpop.permute.xlu2 %421 }
 0x83b   :  { %v424_v35 = vmul.f32 %v422_v33, %v416_v34 }
 0x83d   :  { %426 = vrot.lane.b32.xlu0 %v424_v35, %s1124_s1 }
 0x8af   :  { %v427_v37 = vpop.permute.xlu0 %426 }
 0x8b0   :  { %v429_v38 = vadd.f32 %v427_v37, %v419_v36  ;;  %v579_v36 = vld [vmem:[#allocation2 + $0xc] sm:$0x3] }
 0x8b2   :  { %1055 = vtanh.f32 %v429_v38 }
 0x8b8   :  { %v1056_v39 = vpop.eup %1055 }
 0x8b9   :  { %432 = vrot.lane.b32.xlu1 %v1056_v39, %s1120_s29 }
 0x92b   :  { %v433_v40 = vpop.permute.xlu1 %432 }
 0x92c   :  { %v435_v41 = vmul.f32 %v433_v40, %v416_v34 }
 0x92e   :  { %437 = vrot.lane.b32.xlu2 %v435_v41, %s1124_s1 }
 0x988   :  { %v438_v42 = vpop.permute.xlu2 %437 }
 0x989   :  { %441 = vst.msk [vmem:[#allocation3 + $0x6] sm:$0x3] %vm47_vm2, %v438_v42  ;;  %966 = vmatmul.msk.f32.vlgmr.msrb.gmra.mxu2 %vm54_vm0, %v438_v42 }
 0x990   :  { %v723_v43 = vld [vmem:[#allocation3 + $0x6] sm:$0x3] }
 0x991   :  { %742 = vst [vmem:[#allocation1 + $0x3] ss:$4 sm:$0xff] %v723_v43 }
 0xa0c   :  { %v463_v45 = vpop.f32.mrf.mxu2 }
 0xa0d   :  { %v466_v46 = vadd.f32 %v463_v45, %v443_v44 }
 0xa0f   :  { %1057 = vtanh.f32 %v466_v46  ;;  %v967_v48 = vmul.f32 -1.442695, %v466_v46 }
 0xa11   :  { %1059 = vpow2.f32 %v967_v48 }
 0xa15   :  { %v1058_v47 = vpop.eup %1057 }
 0xa16   :  { %489 = vrot.lane.b32.xlu0 %v1058_v47, %s1120_s29 }
 0xa17   :  { %v1060_v49 = vpop.eup %1059 }
 0xa18   :  { %v470_v50 = vadd.f32 1.0, %v1060_v49 }
 0xa1a   :  { %1061 = vrcp.f32 %v470_v50  ;;  %v482_v56 = vand.u32 2147483648, %v470_v50  ;;  %vm476_vm12 = vweird.f32 %v470_v50  ;;  %v480_v57 = vand.u32 2147483647, %v470_v50 }
 0xa1c   :  { %v483_v59 = vor.u32 1.1754944e-38, %v482_v56  ;;  %vm481_vm14 = vcmp.eq.f32.partialorder %v480_v57, 8.507059e+37 }
 0xa20   :  { %v1062_v51 = vpop.eup %1061 }
 0xa21   :  { %v472_v52 = vmul.f32 %v1062_v51, %v470_v50  ;;  %vm477_vm11 = vweird.f32 %v1062_v51 }
 0xa22   :  { %vm478_vm13 = vmor %vm476_vm12, %vm477_vm11 }
 0xa23   :  { %v473_v53 = vsub.f32 1.0, %v472_v52 }
 0xa25   :  { %v474_v54 = vmul.f32 %v1062_v51, %v473_v53 }
 0xa27   :  { %v475_v55 = vadd.f32 %v1062_v51, %v474_v54 }
 0xa29   :  { %v479_v58 = vsel %vm478_vm13, %v1062_v51, %v475_v55 }
 0xa2a   :  { %v484_v61 = vsel %vm481_vm14, %v483_v59, %v479_v58 }
 0xa2b   :  { %v487_v63 = vmul.f32 %v484_v61, %v429_v38 }
 0xa88   :  { %v490_v60 = vpop.permute.xlu0 %489 }
 0xa89   :  { %v492_v62 = vmul.f32 %v490_v60, %v484_v61 }
 0xa8b   :  { %494 = vrot.lane.b32.xlu1 %v492_v62, %s1124_s1 }
 0xafd   :  { %v495_v1 = vpop.permute.xlu1 %494 }
 0xafe   :  { %v497_v3 = vadd.f32 %v495_v1, %v487_v63  ;;  %v647_v63 = vld [vmem:[#allocation2 + $0xe] sm:$0x3] }
 0xb00   :  { %1063 = vtanh.f32 %v497_v3 }
 0xb06   :  { %v1064_v4 = vpop.eup %1063 }
 0xb07   :  { %500 = vrot.lane.b32.xlu2 %v1064_v4, %s1120_s29 }
 0xb61   :  { %v501_v5 = vpop.permute.xlu2 %500 }
 0xb62   :  { %v503_v6 = vmul.f32 %v501_v5, %v484_v61 }
 0xb64   :  { %505 = vrot.lane.b32.xlu0 %v503_v6, %s1124_s1 }
 0xbd6   :  { %v506_v7 = vpop.permute.xlu0 %505 }
 0xbd7   :  { %509 = vst.msk [vmem:[#allocation3 + $0x8] sm:$0x3] %vm47_vm2, %v506_v7  ;;  %968 = vmatmul.msk.f32.vlgmr.msra.gmra.mxu3 %vm54_vm0, %v506_v7 }
 0xbde   :  { %v724_v8 = vld [vmem:[#allocation3 + $0x8] sm:$0x3] }
 0xbdf   :  { %744 = vst [vmem:[#allocation1 + $0x20] ss:$4 sm:$0xff] %v724_v8 }
 0xc5a   :  { %v531_v10 = vpop.f32.mrf.mxu3 }
 0xc5b   :  { %v534_v11 = vadd.f32 %v531_v10, %v511_v9 }
 0xc5d   :  { %1065 = vtanh.f32 %v534_v11  ;;  %v969_v13 = vmul.f32 -1.442695, %v534_v11 }
 0xc5f   :  { %1067 = vpow2.f32 %v969_v13 }
 0xc63   :  { %v1066_v12 = vpop.eup %1065 }
 0xc64   :  { %557 = vrot.lane.b32.xlu1 %v1066_v12, %s1120_s29 }
 0xc65   :  { %v1068_v14 = vpop.eup %1067 }
 0xc66   :  { %v538_v15 = vadd.f32 1.0, %v1068_v14 }
 0xc68   :  { %1069 = vrcp.f32 %v538_v15  ;;  %v550_v21 = vand.u32 2147483648, %v538_v15  ;;  %vm544_vm1 = vweird.f32 %v538_v15  ;;  %v548_v22 = vand.u32 2147483647, %v538_v15 }
 0xc6a   :  { %v551_v24 = vor.u32 1.1754944e-38, %v550_v21  ;;  %vm549_vm4 = vcmp.eq.f32.partialorder %v548_v22, 8.507059e+37 }
 0xc6e   :  { %v1070_v16 = vpop.eup %1069 }
 0xc6f   :  { %v540_v17 = vmul.f32 %v1070_v16, %v538_v15  ;;  %vm545_vm15 = vweird.f32 %v1070_v16 }
 0xc70   :  { %vm546_vm3 = vmor %vm544_vm1, %vm545_vm15 }
 0xc71   :  { %v541_v18 = vsub.f32 1.0, %v540_v17 }
 0xc73   :  { %v542_v19 = vmul.f32 %v1070_v16, %v541_v18 }
 0xc75   :  { %v543_v20 = vadd.f32 %v1070_v16, %v542_v19 }
 0xc77   :  { %v547_v23 = vsel %vm546_vm3, %v1070_v16, %v543_v20 }
 0xc78   :  { %v552_v26 = vsel %vm549_vm4, %v551_v24, %v547_v23 }
 0xc79   :  { %v555_v28 = vmul.f32 %v552_v26, %v497_v3 }
 0xcd6   :  { %v558_v25 = vpop.permute.xlu1 %557 }
 0xcd7   :  { %v560_v27 = vmul.f32 %v558_v25, %v552_v26 }
 0xcd9   :  { %562 = vrot.lane.b32.xlu2 %v560_v27, %s1124_s1  ;;  %v1004_v27 = vld [vmem:[#allocation6] sm:$0xff] }
 0xd33   :  { %v563_v29 = vpop.permute.xlu2 %562 }
 0xd34   :  { %v565_v30 = vadd.f32 %v563_v29, %v555_v28 }
 0xd36   :  { %1071 = vtanh.f32 %v565_v30 }
 0xd3c   :  { %v1072_v31 = vpop.eup %1071 }
 0xd3d   :  { %568 = vrot.lane.b32.xlu0 %v1072_v31, %s1120_s29  ;;  %v751_v31 = vld.sshfl [vmem:[#allocation1] sm:$0xff pattern:$0x73625140] }
 0xdaf   :  { %v569_v32 = vpop.permute.xlu0 %568 }
 0xdb0   :  { %v571_v33 = vmul.f32 %v569_v32, %v552_v26  ;;  %v1005_v26 = vld [vmem:[#allocation6 + $0x8] sm:$0xff] }
 0xdb1   :  { %783 = vmatpush.bf16.msra.mxu2 %v1005_v26 }
 0xdb2   :  { %573 = vrot.lane.b32.xlu1 %v571_v33, %s1124_s1  ;;  %v1298_v33 = vadd.f32 %v751_v31, %v1174_v0 }
 0xdb5   :  { %784 = vmatpush.bf16.msra.mxu2 %v1004_v27 }
 0xe24   :  { %v574_v34 = vpop.permute.xlu1 %573 }
 0xe25   :  { %577 = vst.msk [vmem:[#allocation3 + $0xa] sm:$0x3] %vm47_vm2, %v574_v34  ;;  %970 = vmatmul.msk.f32.vlgmr.msra.gmra.mxu0 %vm54_vm0, %v574_v34 }
 0xe2c   :  { %v725_v35 = vld [vmem:[#allocation3 + $0xa] sm:$0x3] }
 0xe2d   :  { %746 = vst [vmem:[#allocation1 + $0x21] ss:$4 sm:$0xff] %v725_v35 }
 0xea2   :  { %v599_v37 = vpop.f32.mrf.mxu0 }
 0xea3   :  { %v602_v38 = vadd.f32 %v599_v37, %v579_v36 }
 0xea5   :  { %1073 = vtanh.f32 %v602_v38  ;;  %v971_v40 = vmul.f32 -1.442695, %v602_v38 }
 0xea7   :  { %1075 = vpow2.f32 %v971_v40 }
 0xeab   :  { %v1074_v39 = vpop.eup %1073 }
 0xeac   :  { %625 = vrot.lane.b32.xlu2 %v1074_v39, %s1120_s29 }
 0xead   :  { %v1076_v41 = vpop.eup %1075 }
 0xeae   :  { %v606_v42 = vadd.f32 1.0, %v1076_v41 }
 0xeb0   :  { %1077 = vrcp.f32 %v606_v42  ;;  %v618_v48 = vand.u32 2147483648, %v606_v42  ;;  %vm612_vm6 = vweird.f32 %v606_v42  ;;  %v616_v49 = vand.u32 2147483647, %v606_v42 }
 0xeb2   :  { %v619_v51 = vor.u32 1.1754944e-38, %v618_v48  ;;  %vm617_vm8 = vcmp.eq.f32.partialorder %v616_v49, 8.507059e+37 }
 0xeb6   :  { %v1078_v43 = vpop.eup %1077 }
 0xeb7   :  { %v608_v44 = vmul.f32 %v1078_v43, %v606_v42  ;;  %vm613_vm5 = vweird.f32 %v1078_v43 }
 0xeb8   :  { %vm614_vm7 = vmor %vm612_vm6, %vm613_vm5  ;;  %vm922_vm6 = vcmask 523264  }
 0xeb9   :  { %v609_v45 = vsub.f32 1.0, %v608_v44 }
 0xebb   :  { %v610_v46 = vmul.f32 %v1078_v43, %v609_v45 }
 0xebd   :  { %v611_v47 = vadd.f32 %v1078_v43, %v610_v46 }
 0xebf   :  { %v615_v50 = vsel %vm614_vm7, %v1078_v43, %v611_v47 }
 0xec0   :  { %v620_v53 = vsel %vm617_vm8, %v619_v51, %v615_v50 }
 0xec1   :  { %v623_v55 = vmul.f32 %v620_v53, %v565_v30 }
 0xf06   :  { %v626_v52 = vpop.permute.xlu2 %625 }
 0xf07   :  { %v628_v54 = vmul.f32 %v626_v52, %v620_v53 }
 0xf09   :  { %630 = vrot.lane.b32.xlu0 %v628_v54, %s1124_s1 }
 0xf7b   :  { %v631_v56 = vpop.permute.xlu0 %630 }
 0xf7c   :  { %v633_v57 = vadd.f32 %v631_v56, %v623_v55 }
 0xf7e   :  { %1079 = vtanh.f32 %v633_v57 }
 0xf84   :  { %v1080_v58 = vpop.eup %1079 }
 0xf85   :  { %636 = vrot.lane.b32.xlu1 %v1080_v58, %s1120_s29 }
 0xff7   :  { %v637_v59 = vpop.permute.xlu1 %636 }
 0xff8   :  { %v639_v60 = vmul.f32 %v637_v59, %v620_v53 }
 0xffa   :  { %641 = vrot.lane.b32.xlu2 %v639_v60, %s1124_s1 }
0x1054   :  { %v642_v61 = vpop.permute.xlu2 %641 }
0x1055   :  { %645 = vst.msk [vmem:[#allocation3 + $0xc] sm:$0x3] %vm47_vm2, %v642_v61  ;;  %972 = vmatmul.msk.f32.vlgmr.msra.gmra.mxu1 %vm54_vm0, %v642_v61 }
0x105c   :  { %v726_v62 = vld [vmem:[#allocation3 + $0xc] sm:$0x3] }
0x105d   :  { %748 = vst [vmem:[#allocation1 + $0x22] ss:$4 sm:$0xff] %v726_v62 }
0x10d2   :  { %v667_v1 = vpop.f32.mrf.mxu1 }
0x10d3   :  { %v670_v3 = vadd.f32 %v667_v1, %v647_v63 }
0x10d5   :  { %1081 = vtanh.f32 %v670_v3  ;;  %v973_v5 = vmul.f32 -1.442695, %v670_v3 }
0x10d7   :  { %1083 = vpow2.f32 %v973_v5 }
0x10db   :  { %v1082_v4 = vpop.eup %1081 }
0x10dc   :  { %693 = vrot.lane.b32.xlu0 %v1082_v4, %s1120_s29 }
0x10dd   :  { %v1084_v6 = vpop.eup %1083 }
0x10de   :  { %v674_v7 = vadd.f32 1.0, %v1084_v6  ;;  %v1009_v6 = vld [vmem:[%s1356_s6 + $0x18] sm:$0xff] }
0x10df   :  { %930 = vmatpush.bf16.msrb.mxu3 %v1009_v6 }
0x10e0   :  { %1085 = vrcp.f32 %v674_v7  ;;  %v686_v13 = vand.u32 2147483648, %v674_v7  ;;  %vm680_vm10 = vweird.f32 %v674_v7  ;;  %v684_v14 = vand.u32 2147483647, %v674_v7 }
0x10e2   :  { %v687_v16 = vor.u32 1.1754944e-38, %v686_v13  ;;  %vm685_vm12 = vcmp.eq.f32.partialorder %v684_v14, 8.507059e+37 }
0x10e6   :  { %v1086_v8 = vpop.eup %1085 }
0x10e7   :  { %v676_v9 = vmul.f32 %v1086_v8, %v674_v7  ;;  %vm681_vm9 = vweird.f32 %v1086_v8  ;;  %v1008_v7 = vld [vmem:[%s1356_s6 + $0x10] sm:$0xff] }
0x10e8   :  { %vm682_vm11 = vmor %vm680_vm10, %vm681_vm9  ;;  %931 = vmatpush.bf16.msrb.mxu3 %v1008_v7 }
0x10e9   :  { %v677_v10 = vsub.f32 1.0, %v676_v9 }
0x10eb   :  { %v678_v11 = vmul.f32 %v1086_v8, %v677_v10  ;;  %v1007_v10 = vld [vmem:[%s1356_s6 + $0x8] sm:$0xff] }
0x10ec   :  { %932 = vmatpush.bf16.msrb.mxu3 %v1007_v10 }
0x10ed   :  { %v679_v12 = vadd.f32 %v1086_v8, %v678_v11 }
0x10ef   :  { %v683_v15 = vsel %vm682_vm11, %v1086_v8, %v679_v12 }
0x10f0   :  { %v688_v18 = vsel %vm685_vm12, %v687_v16, %v683_v15 }
0x10f1   :  { %v691_v20 = vmul.f32 %v688_v18, %v633_v57 }
0x114e   :  { %v694_v17 = vpop.permute.xlu0 %693 }
0x114f   :  { %v696_v19 = vmul.f32 %v694_v17, %v688_v18 }
0x1151   :  { %698 = vrot.lane.b32.xlu1 %v696_v19, %s1124_s1 }
0x11c3   :  { %v699_v21 = vpop.permute.xlu1 %698 }
0x11c4   :  { %v701_v22 = vadd.f32 %v699_v21, %v691_v20 }
0x11c6   :  { %1087 = vtanh.f32 %v701_v22 }
0x11cc   :  { %v1088_v23 = vpop.eup %1087 }
0x11cd   :  { %704 = vrot.lane.b32.xlu2 %v1088_v23, %s1120_s29  ;;  %v1006_v23 = vld [vmem:[%s1356_s6] sm:$0xff] }
0x11ce   :  { %933 = vmatpush.bf16.msrb.mxu3 %v1006_v23 }
0x1227   :  { %v705_v24 = vpop.permute.xlu2 %704 }
0x1228   :  { %v707_v25 = vmul.f32 %v705_v24, %v688_v18 }
0x122a   :  { %709 = vrot.lane.b32.xlu0 %v707_v25, %s1124_s1 }
0x1232   :  { %716 = vrot.lane.b32.xlu0 %v701_v22, %s1125_s3 }
0x129c   :  { %v710_v28 = vpop.permute.xlu0 %709 }
0x129d   :  { %713 = vst.msk [vmem:[#allocation3 + $0xe] sm:$0x3] %vm47_vm2, %v710_v28 }
0x129e   :  { %714 = vst.msk [vmem:[#allocation4] sm:$0x3] %vm47_vm2, %v710_v28 }
0x12a4   :  { %v727_v29 = vld [vmem:[#allocation3 + $0xe] sm:$0x3]  ;;  %v717_v30 = vpop.permute.xlu0 %716 }
0x12a5   :  { %750 = vst [vmem:[#allocation1 + $0x23] ss:$4 sm:$0xff] %v727_v29 }
0x12a6   :  { %719 = vst.msk [vmem:[#allocation5] sm:$0x3] %vm47_vm2, %v717_v30 }
0x12ac   :  { %v752_v32 = vld.sshfl [vmem:[#allocation1 + $0x20] sm:$0xff pattern:$0x73625140] }
0x12ad   :  { %v1301_v34 = vadd.f32 %v752_v32, %v1181_v2 }
0x12af   :  { %v757_v35 = vpack.c.bf16 %v1301_v34, %v1298_v33 }
0x12b1   :  { %982 = vmatmul.msk.bf16.vlgmr.msra.gmra.mxu2 %vm54_vm0, %v757_v35 }
0x1334   :  { %v1306_v36 = vpop.f32.mrf.mxu2 }
0x1335   :  { %881 = vrot.lane.b32.xlu1 %v1306_v36, %s1120_s29  ;;  %v1315_v0 = vmul.f32 0.70710677, %v1306_v36 }
0x1337   :  { %v795_v38 = vmul.f32 %v1315_v0, %v1315_v0 }
0x1339   :  { %v796_v40 = vmin.f32 %v795_v38, 16.0 }
0x133b   :  { %v808_v42 = vmul.f32 3.8918573e-05, %v796_v40  ;;  %v797_v57 = vmul.f32 2.1237322e-06, %v796_v40 }
0x133c   :  { %v1310_v37 = vpop.f32.mrf.mxu2 }
0x133d   :  { %883 = vrot.lane.b32.xlu2 %v1310_v37, %s1120_s29  ;;  %v1318_v2 = vmul.f32 0.70710677, %v1310_v37  ;;  %v809_v44 = vadd.f32 0.001143296, %v808_v42  ;;  %v798_v61 = vadd.f32 0.00028619796, %v797_v57 }
0x133e   :  { %v792_v57 = vmul.f32 0.5, %v1310_v37 }
0x133f   :  { %v835_v39 = vmul.f32 %v1318_v2, %v1318_v2  ;;  %v810_v46 = vmul.f32 %v809_v44, %v796_v40  ;;  %v799_v3 = vmul.f32 %v798_v61, %v796_v40 }
0x1341   :  { %v836_v41 = vmin.f32 %v835_v39, 16.0  ;;  %v811_v48 = vadd.f32 0.014752088, %v810_v46  ;;  %v800_v8 = vadd.f32 0.0036580483, %v799_v3 }
0x1343   :  { %v848_v43 = vmul.f32 3.8918573e-05, %v836_v41  ;;  %v812_v50 = vmul.f32 %v811_v48, %v796_v40  ;;  %v837_v59 = vmul.f32 2.1237322e-06, %v836_v41  ;;  %v801_v11 = vmul.f32 %v800_v8, %v796_v40 }
0x1345   :  { %v849_v45 = vadd.f32 0.001143296, %v848_v43  ;;  %v813_v52 = vadd.f32 0.112945676, %v812_v50  ;;  %v838_v63 = vadd.f32 0.00028619796, %v837_v59 }
0x1346   :  { %v802_v15 = vadd.f32 0.05243302, %v801_v11 }
0x1347   :  { %v850_v47 = vmul.f32 %v849_v45, %v836_v41  ;;  %v814_v54 = vmul.f32 %v813_v52, %v796_v40  ;;  %v839_v5 = vmul.f32 %v838_v63, %v836_v41 }
0x1348   :  { %v803_v19 = vmul.f32 %v802_v15, %v796_v40 }
0x1349   :  { %v851_v49 = vadd.f32 0.014752088, %v850_v47  ;;  %v815_v56 = vadd.f32 0.4994258, %v814_v54  ;;  %v840_v9 = vadd.f32 0.0036580483, %v839_v5 }
0x134a   :  { %v804_v24 = vadd.f32 0.18741608, %v803_v19 }
0x134b   :  { %v852_v51 = vmul.f32 %v851_v49, %v836_v41  ;;  %v816_v60 = vmul.f32 %v815_v56, %v796_v40  ;;  %v841_v13 = vmul.f32 %v840_v9, %v836_v41  ;;  %v791_v56 = vmul.f32 0.5, %v1306_v36 }
0x134c   :  { %v805_v28 = vmul.f32 %v804_v24, %v796_v40 }
0x134d   :  { %v853_v53 = vadd.f32 0.112945676, %v852_v51  ;;  %v817_v1 = vadd.f32 1.0, %v816_v60  ;;  %v842_v16 = vadd.f32 0.05243302, %v841_v13 }
0x134e   :  { %v806_v42 = vadd.f32 1.1283791, %v805_v28 }
0x134f   :  { %v854_v55 = vmul.f32 %v853_v53, %v836_v41  ;;  %1089 = vrcp.f32 %v817_v1  ;;  %v843_v20 = vmul.f32 %v842_v16, %v836_v41  ;;  %vm823_vm14 = vweird.f32 %v817_v1 }
0x1350   :  { %v829_v35 = vand.u32 2147483648, %v817_v1  ;;  %v827_v39 = vand.u32 2147483647, %v817_v1  ;;  %v807_v48 = vmul.f32 %v806_v42, %v1315_v0 }
0x1351   :  { %v855_v58 = vadd.f32 0.4994258, %v854_v55  ;;  %v844_v25 = vadd.f32 0.18741608, %v843_v20 }
0x1352   :  { %v830_v47 = vor.u32 1.1754944e-38, %v829_v35  ;;  %vm828_vm5 = vcmp.eq.f32.partialorder %v827_v39, 8.507059e+37 }
0x1353   :  { %v856_v62 = vmul.f32 %v855_v58, %v836_v41  ;;  %v845_v29 = vmul.f32 %v844_v25, %v836_v41 }
0x1355   :  { %v857_v4 = vadd.f32 1.0, %v856_v62  ;;  %v1090_v12 = vpop.eup %1089  ;;  %v846_v43 = vadd.f32 1.1283791, %v845_v29 }
0x1356   :  { %v819_v18 = vmul.f32 %v1090_v12, %v817_v1  ;;  %vm824_vm2 = vweird.f32 %v1090_v12 }
0x1357   :  { %1091 = vrcp.f32 %v857_v4  ;;  %v869_v32 = vand.u32 2147483648, %v857_v4  ;;  %vm863_vm15 = vweird.f32 %v857_v4  ;;  %v867_v38 = vand.u32 2147483647, %v857_v4  ;;  %vm825_vm1 = vmor %vm823_vm14, %vm824_vm2 }
0x1358   :  { %v820_v22 = vsub.f32 1.0, %v819_v18  ;;  %v847_v49 = vmul.f32 %v846_v43, %v1318_v2 }
0x1359   :  { %v870_v46 = vor.u32 1.1754944e-38, %v869_v32  ;;  %vm868_vm4 = vcmp.eq.f32.partialorder %v867_v38, 8.507059e+37 }
0x135a   :  { %v821_v27 = vmul.f32 %v1090_v12, %v820_v22 }
0x135c   :  { %v822_v31 = vadd.f32 %v1090_v12, %v821_v27 }
0x135d   :  { %v1092_v14 = vpop.eup %1091 }
0x135e   :  { %v859_v17 = vmul.f32 %v1092_v14, %v857_v4  ;;  %vm864_vm13 = vweird.f32 %v1092_v14  ;;  %v826_v45 = vsel %vm825_vm1, %v1090_v12, %v822_v31 }
0x135f   :  { %vm865_vm3 = vmor %vm863_vm15, %vm864_vm13  ;;  %v831_v41 = vsel %vm828_vm5, %v830_v47, %v826_v45 }
0x1360   :  { %v860_v21 = vsub.f32 1.0, %v859_v17  ;;  %v832_v51 = vmul.f32 %v831_v41, %v807_v48 }
0x1362   :  { %v861_v26 = vmul.f32 %v1092_v14, %v860_v21  ;;  %v983_v53 = vclamps-f32 %v832_v51, 1.0 }
0x1364   :  { %v862_v30 = vadd.f32 %v1092_v14, %v861_v26  ;;  %v875_v55 = vadd.f32 1.0, %v983_v53 }
0x1366   :  { %v866_v44 = vsel %vm865_vm3, %v1092_v14, %v862_v30  ;;  %v877_v60 = vmul.f32 %v875_v55, %v791_v56 }
0x1367   :  { %v871_v40 = vsel %vm868_vm4, %v870_v46, %v866_v44 }
0x1368   :  { %v872_v50 = vmul.f32 %v871_v40, %v847_v49 }
0x136a   :  { %v984_v52 = vclamps-f32 %v872_v50, 1.0 }
0x136c   :  { %v876_v54 = vadd.f32 1.0, %v984_v52 }
0x136e   :  { %v878_v59 = vmul.f32 %v876_v54, %v792_v57 }
0x1397   :  { %v884_v58 = vpop.permute.xlu2 %883 }
0x1398   :  { %v888_v62 = vmul.f32 %v884_v58, %v878_v59 }
0x13a7   :  { %v882_v61 = vpop.permute.xlu1 %881 }
0x13a8   :  { %v887_v63 = vmul.f32 %v882_v61, %v877_v60 }
0x13aa   :  { %v889_v0 = vpack.c.bf16 %v888_v62, %v887_v63 }
0x13ac   :  { %1001 = vmatmul.msk.bf16.vlgmr.msrb.gmra.mxu3 %vm922_vm6, %v889_v0 }
0x142f   :  { %v935_v2 = vpop.f32.mrf.mxu3 }
0x1430   :  { %v940_v1 = vadd.f32 %v935_v2, %v1298_v33 }
0x1432   :  { %942 = vst.msk [vmem:[%s1357_s7] sm:$0xff] %vm54_vm0, %v940_v1 }
0x1437   :  { %v937_v36 = vpop.f32.mrf.mxu3 }
0x1438   :  { %v941_v37 = vadd.f32 %v937_v36, %v1301_v34 }
0x143a   :  { %943 = vst.msk [vmem:[%s1357_s7 + $0x8] sm:$0xff] %vm54_vm0, %v941_v37 }
0x143b   :  { %948 = vsyncpa [#allocation7], 1 }

// kernel: lstm_mixer_forward.6
= control target key start
LH: loop header
LB: loop body
LE: loop exit
PB: predicated region body
PF: predicated region fallthrough
CT: control target
= control target key end

     0   :  { %12 = vsyncpa [#allocation7], 0  ;;  %s1432_s0 = inlined_call_operand.vmem [shape: f32[16,32], index: 0, kind: input, shape index: {}]   ;;  %s1433_s1 = inlined_call_operand.hbm [shape: f32[1,32], index: 1, kind: input, shape index: {}]   ;;  %s1434_s2 = inlined_call_operand.vmem [shape: bf16[32,128], index: 2, kind: input, shape index: {}]   ;;  %s1435_s3 = inlined_call_operand.hbm [shape: f32[1,128], index: 3, kind: input, shape index: {}]   ;;  %s1436_s4 = inlined_call_operand.vmem [shape: f32[32,128], index: 4, kind: input, shape index: {}]   ;;  %s1437_s5 = inlined_call_operand.hbm [shape: bf16[32,128], index: 5, kind: input, shape index: {}]   ;;  %s1438_s6 = inlined_call_operand.vmem [shape: bf16[64,32], index: 6, kind: input, shape index: {}]   ;;  %s1439_s7 = inlined_call_operand.vmem [shape: f32[16,32], index: 7, kind: output, shape index: {}]  }
   0x1   :  { %13 = vsyncpa [#allocation9], 0  ;;  %s34_s26 = sshll.u32 %s1435_s3, 4  ;;  %s1199_s27 = smov [#allocation8]   ;;  %s35_s26 = int_to_ptr.hbm [resolvable:$true] %s34_s26 }
   0x2   :  { %s36_s28 = sshll.u32 %s1199_s27, 4  ;;  %s21_s8 = sshll.u32 %s1433_s1, 4  ;;  %s37_s28 = int_to_ptr.vmem [resolvable:$true] %s36_s28  ;;  %s22_s8 = int_to_ptr.hbm [resolvable:$true] %s21_s8 }
   0x3   :  { %39 = dma.hbm_to_vmem [thread:$0]  %s35_s26, 16, %s37_s28, [#allocation9]  }
   0x4   :  { %s1200_s9 = smov [#allocation6]   ;;  %s46_s13 = sshll.u32 %s1437_s5, 4  ;;  %s47_s13 = int_to_ptr.hbm [resolvable:$true] %s46_s13 }
   0x5   :  { %s23_s10 = sshll.u32 %s1200_s9, 4  ;;  %s1201_s3 = smov [#allocation10]   ;;  %s24_s10 = int_to_ptr.vmem [resolvable:$true] %s23_s10 }
   0x6   :  { %26 = dma.hbm_to_vmem [thread:$0]  %s22_s8, 16, %s24_s10, [#allocation7]  }
   0x7   :  { %s48_s14 = sshll.u32 %s1201_s3, 4  ;;  %s1202_s15 = smov 64   ;;  %s49_s14 = int_to_ptr.vmem [resolvable:$true] %s48_s14 }
   0x8   :  { %s1203_s16 = smov 4  }
   0x9   :  { %54 = dma.hbm_to_vmem [thread:$0]  %s47_s13, 256, %s49_s14, [#allocation9], %s1202_s15, %s1202_s15, %s1203_s16  }
   0xa   :  { %1195 = dma.done.wait [#allocation7], 16  }
   0xb   :  { %1196 = vsyncadd [#allocation7], 4294967280 }
   0xc   :  { %1197 = dma.done.wait [#allocation9], 272  }
   0xd   :  { %1198 = vsyncadd [#allocation9], 4294967024  ;;  %v1262_v0 = vld [vmem:[%s1432_s0] sm:$0xff]  ;;  %vm81_vm0 = vcmask 261120   ;;  %v1269_v2 = vld [vmem:[%s1432_s0 + $0x8] sm:$0xff]  ;;  %v1204_v6 = vmov 32.0  }
   0xe   :  { %v79_v1 = vmul.f32 %v1262_v0, %v1262_v0  ;;  %v80_v4 = vmul.f32 %v1269_v2, %v1269_v2  ;;  %1049 = vrcp.f32 %v1204_v6  ;;  %v1031_v12 = vld [vmem:[%s1434_s2 + $0x8] sm:$0xff]  ;;  %v1030_v14 = vld [vmem:[%s1434_s2] sm:$0xff]  ;;  %v1284_v18 = vld [vmem:[%s1436_s4 + $0x18] sm:$0xff]  ;;  %vm74_vm2 = vcmask 254976   ;;  %s1207_s29 = smov 96  }
   0xf   :  { %157 = vmatpush.bf16.msra.mxu0 %v1031_v12  ;;  %v1289_v19 = vld [vmem:[%s1436_s4 + $0x10] sm:$0xff]  ;;  %209 = vmatpush.msra.mxu1 %v1284_v18  ;;  %v1205_v20 = vmov 0.0   ;;  %v1297_v21 = vld [vmem:[%s1436_s4 + $0x8] sm:$0xff]  ;;  %v187_v24 = vld [vmem:[%s1436_s4] sm:$0xff]  ;;  %s1206_s4 = smov 32  }
  0x10   :  { %v82_v3 = vsel %vm81_vm0, %v79_v1, 0.0  ;;  %v85_v5 = vsel %vm81_vm0, %v80_v4, 0.0  ;;  %75 = vst.msk [vmem:[#allocation4] sm:$0x3] %vm74_vm2, %v1205_v20  ;;  %281 = vmatpush.msra.mxu2 %v1284_v18  ;;  %553 = vmatpush.msra.mxu3 %v1284_v18  ;;  %v1047_v41 = vld [vmem:[#allocation6] ss:$0 sm:$0xff] }
  0x11   :  { %83 = vadd.xlane.f32.xlu0 %v82_v3  ;;  %76 = vst.msk [vmem:[#allocation5] sm:$0x3] %vm74_vm2, %v1205_v20  ;;  %210 = vmatpush.msra.mxu1 %v1289_v19  ;;  %v1048_v47 = vld [vmem:[#allocation8] ss:$0 sm:$0xff] }
  0x12   :  { %282 = vmatpush.msra.mxu2 %v1289_v19  ;;  %554 = vmatpush.msra.mxu3 %v1289_v19 }
  0x13   :  { %158 = vmatpush.bf16.msra.mxu0 %v1030_v14  ;;  %211 = vmatpush.msra.mxu1 %v1297_v21 }
  0x14   :  { %v1050_v7 = vpop.eup %1049  ;;  %283 = vmatpush.msra.mxu2 %v1297_v21  ;;  %555 = vmatpush.msra.mxu3 %v1297_v21 }
  0x15   :  { %v89_v8 = vmul.f32 32.0, %v1050_v7  ;;  %vm93_vm1 = vweird.f32 %v1050_v7  ;;  %212 = vmatpush.msra.mxu1 %v187_v24 }
  0x16   :  { %284 = vmatpush.msra.mxu2 %v187_v24  ;;  %556 = vmatpush.msra.mxu3 %v187_v24 }
  0x17   :  { %v90_v9 = vsub.f32 1.0, %v89_v8  ;;  %349 = vmatpush.msrb.mxu0 %v1284_v18  ;;  %v191_v28 = vld [vmem:[#allocation4] sm:$0x3]  ;;  %417 = vmatpush.msrb.mxu1 %v1284_v18 }
  0x18   :  { %986 = vmatmul.msk.f32.vlgmr.msra.gmra.mxu1 %vm81_vm0, %v191_v28  ;;  %485 = vmatpush.msrb.mxu2 %v1284_v18  ;;  %v192_v62 = vld [vmem:[#allocation5] sm:$0x3] }
  0x19   :  { %86 = vadd.xlane.f32.xlu0 %v85_v5  ;;  %v91_v10 = vmul.f32 %v1050_v7, %v90_v9  ;;  %350 = vmatpush.msrb.mxu0 %v1289_v19 }
  0x1a   :  { %418 = vmatpush.msrb.mxu1 %v1289_v19  ;;  %486 = vmatpush.msrb.mxu2 %v1289_v19 }
  0x1b   :  { %v92_v11 = vadd.f32 %v1050_v7, %v91_v10  ;;  %351 = vmatpush.msrb.mxu0 %v1297_v21 }
  0x1c   :  { %419 = vmatpush.msrb.mxu1 %v1297_v21  ;;  %487 = vmatpush.msrb.mxu2 %v1297_v21 }
  0x1d   :  { %v94_v13 = vsel %vm93_vm1, %v1050_v7, %v92_v11  ;;  %352 = vmatpush.msrb.mxu0 %v187_v24 }
  0x1e   :  { %420 = vmatpush.msrb.mxu1 %v187_v24  ;;  %488 = vmatpush.msrb.mxu2 %v187_v24 }
  0x20   :  { %689 = vmatpush.msra.mxu1 %v1284_v18 }
  0x22   :  { %690 = vmatpush.msra.mxu1 %v1289_v19 }
  0x24   :  { %691 = vmatpush.msra.mxu1 %v1297_v21 }
  0x26   :  { %692 = vmatpush.msra.mxu1 %v187_v24 }
  0x84   :  { %v84_v15 = vpop.xlane.xlu0 %83 }
  0x85   :  { %v95_v16 = vmul.f32 %v94_v13, %v84_v15 }
  0x87   :  { %v97_v17 = vadd.f32 1e-08, %v95_v16 }
  0x89   :  { %1051 = vrsqrt.f32 %v97_v17  ;;  %vm105_vm4 = vweird.f32 %v97_v17 }
  0x8c   :  { %v87_v22 = vpop.xlane.xlu0 %86 }
  0x8d   :  { %v96_v23 = vmul.f32 %v94_v13, %v87_v22 }
  0x8f   :  { %v1052_v25 = vpop.eup %1051  ;;  %v98_v26 = vadd.f32 1e-08, %v96_v23 }
  0x90   :  { %v100_v27 = vmul.f32 %v1052_v25, %v97_v17  ;;  %vm106_vm3 = vweird.f32 %v1052_v25 }
  0x91   :  { %1053 = vrsqrt.f32 %v98_v26  ;;  %vm107_vm5 = vmor %vm105_vm4, %vm106_vm3  ;;  %vm115_vm7 = vweird.f32 %v98_v26 }
  0x92   :  { %v101_v29 = vmul.f32 %v1052_v25, %v100_v27 }
  0x94   :  { %v102_v30 = vmul.f32 0.5, %v101_v29 }
  0x95   :  { %v214_v54 = vpop.f32.mrf.mxu1 }
  0x96   :  { %v103_v31 = vsub.f32 1.5, %v102_v30 }
  0x97   :  { %v1054_v32 = vpop.eup %1053 }
  0x98   :  { %v110_v33 = vmul.f32 %v1054_v32, %v98_v26  ;;  %v104_v34 = vmul.f32 %v1052_v25, %v103_v31  ;;  %vm116_vm6 = vweird.f32 %v1054_v32 }
  0x99   :  { %vm117_vm8 = vmor %vm115_vm7, %vm116_vm6 }
  0x9a   :  { %v111_v35 = vmul.f32 %v1054_v32, %v110_v33  ;;  %v108_v37 = vsel %vm107_vm5, %v1052_v25, %v104_v34 }
  0x9b   :  { %v119_v40 = vmul.f32 %v108_v37, %v1262_v0 }
  0x9c   :  { %v112_v36 = vmul.f32 0.5, %v111_v35 }
  0x9d   :  { %v125_v44 = vmul.f32 %v1047_v41, %v119_v40 }
  0x9e   :  { %v113_v38 = vsub.f32 1.5, %v112_v36 }
  0xa0   :  { %v114_v39 = vmul.f32 %v1054_v32, %v113_v38 }
  0xa2   :  { %v118_v42 = vsel %vm117_vm8, %v1054_v32, %v114_v39 }
  0xa3   :  { %v120_v43 = vmul.f32 %v118_v42, %v1269_v2 }
  0xa5   :  { %v126_v45 = vmul.f32 %v1047_v41, %v120_v43 }
  0xa7   :  { %v127_v46 = vpack.c.bf16 %v126_v45, %v125_v44 }
  0xa9   :  { %985 = vmatmul.msk.bf16.vlgmr.msra.gmra.mxu0 %vm81_vm0, %v127_v46 }
  0xaa   :  { %621 = vmatpush.msra.mxu0 %v1284_v18 }
  0xac   :  { %622 = vmatpush.msra.mxu0 %v1289_v19 }
  0xae   :  { %623 = vmatpush.msra.mxu0 %v1297_v21 }
  0xb0   :  { %624 = vmatpush.msra.mxu0 %v187_v24 }
 0x126   :  { %v160_v48 = vpop.f32.mrf.mxu0 }
 0x127   :  { %v161_v49 = vadd.f32 %v1048_v47, %v160_v48 }
 0x129   :  { %v167_v50 = vrot.slane %v161_v49, 2  ;;  %v168_v51 = vrot.slane %v161_v49, 4  ;;  %v169_v52 = vrot.slane %v161_v49, 6  ;;  %179 = vst [vmem:[#allocation2] sm:$0x3] %v161_v49 }
 0x12b   :  { %180 = vst [vmem:[#allocation2 + $0x2] sm:$0x3] %v167_v50 }
 0x12c   :  { %181 = vst [vmem:[#allocation2 + $0x4] sm:$0x3] %v168_v51 }
 0x12d   :  { %182 = vst [vmem:[#allocation2 + $0x6] sm:$0x3] %v169_v52 }
 0x12e   :  { %v162_v53 = vpop.f32.mrf.mxu0 }
 0x12f   :  { %v163_v55 = vadd.f32 %v1048_v47, %v162_v53 }
 0x130   :  { %v193_v56 = vld [vmem:[#allocation2] sm:$0x3] }
 0x131   :  { %v170_v57 = vrot.slane %v163_v55, 2  ;;  %v171_v58 = vrot.slane %v163_v55, 4  ;;  %v172_v59 = vrot.slane %v163_v55, 6  ;;  %183 = vst [vmem:[#allocation2 + $0x8] sm:$0x3] %v163_v55  ;;  %v217_v60 = vadd.f32 %v214_v54, %v193_v56 }
 0x132   :  { %v266_v25 = vld [vmem:[#allocation2 + $0x2] sm:$0x3] }
 0x133   :  { %184 = vst [vmem:[#allocation2 + $0xa] sm:$0x3] %v170_v57  ;;  %1055 = vtanh.f32 %v217_v60  ;;  %v987_v63 = vmul.f32 -1.442695, %v217_v60  ;;  %v334_v52 = vld [vmem:[#allocation2 + $0x4] sm:$0x3] }
 0x134   :  { %185 = vst [vmem:[#allocation2 + $0xc] sm:$0x3] %v171_v58 }
 0x135   :  { %186 = vst [vmem:[#allocation2 + $0xe] sm:$0x3] %v172_v59  ;;  %1057 = vpow2.f32 %v987_v63 }
 0x139   :  { %v1056_v61 = vpop.eup %1055 }
 0x13a   :  { %244 = vrot.lane.b32.xlu1 %v1056_v61, %s1202_s15 }
 0x13b   :  { %v1058_v1 = vpop.eup %1057 }
 0x13c   :  { %v221_v3 = vadd.f32 1.0, %v1058_v1 }
 0x13e   :  { %1059 = vrcp.f32 %v221_v3  ;;  %v233_v9 = vand.u32 2147483648, %v221_v3  ;;  %vm227_vm10 = vweird.f32 %v221_v3  ;;  %v231_v10 = vand.u32 2147483647, %v221_v3 }
 0x140   :  { %v234_v12 = vor.u32 1.1754944e-38, %v233_v9  ;;  %vm232_vm12 = vcmp.eq.f32.partialorder %v231_v10, 8.507059e+37 }
 0x142   :  { %239 = vrot.lane.b32.xlu1 %v192_v62, %s1206_s4 }
 0x144   :  { %v1060_v4 = vpop.eup %1059 }
 0x145   :  { %v223_v5 = vmul.f32 %v1060_v4, %v221_v3  ;;  %vm228_vm9 = vweird.f32 %v1060_v4 }
 0x146   :  { %vm229_vm11 = vmor %vm227_vm10, %vm228_vm9 }
 0x147   :  { %v224_v6 = vsub.f32 1.0, %v223_v5 }
 0x149   :  { %v225_v7 = vmul.f32 %v1060_v4, %v224_v6 }
 0x14b   :  { %v226_v8 = vadd.f32 %v1060_v4, %v225_v7 }
 0x14d   :  { %v230_v11 = vsel %vm229_vm11, %v1060_v4, %v226_v8 }
 0x14e   :  { %v235_v14 = vsel %vm232_vm12, %v234_v12, %v230_v11 }
 0x1ac   :  { %v245_v13 = vpop.permute.xlu1 %244 }
 0x1ad   :  { %v247_v15 = vmul.f32 %v245_v13, %v235_v14 }
 0x1af   :  { %249 = vrot.lane.b32.xlu2 %v247_v15, %s1206_s4 }
 0x1b4   :  { %v240_v16 = vpop.permute.xlu1 %239 }
 0x1b5   :  { %v242_v17 = vmul.f32 %v240_v16, %v235_v14 }
 0x209   :  { %v250_v18 = vpop.permute.xlu2 %249 }
 0x20a   :  { %v252_v19 = vadd.f32 %v250_v18, %v242_v17  ;;  %v402_v17 = vld [vmem:[#allocation2 + $0x6] sm:$0x3] }
 0x20c   :  { %1061 = vtanh.f32 %v252_v19 }
 0x212   :  { %v1062_v20 = vpop.eup %1061 }
 0x213   :  { %255 = vrot.lane.b32.xlu2 %v1062_v20, %s1202_s15 }
 0x26d   :  { %v256_v21 = vpop.permute.xlu2 %255 }
 0x26e   :  { %v258_v22 = vmul.f32 %v256_v21, %v235_v14 }
 0x270   :  { %260 = vrot.lane.b32.xlu0 %v258_v22, %s1206_s4 }
 0x2e2   :  { %v261_v23 = vpop.permute.xlu0 %260 }
 0x2e3   :  { %264 = vst.msk [vmem:[#allocation3] sm:$0x3] %vm74_vm2, %v261_v23  ;;  %988 = vmatmul.msk.f32.vlgmr.msra.gmra.mxu2 %vm81_vm0, %v261_v23 }
 0x2ea   :  { %v747_v24 = vld [vmem:[#allocation3] sm:$0x3] }
 0x2eb   :  { %763 = vst [vmem:[#allocation1] ss:$4 sm:$0xff] %v747_v24 }
 0x366   :  { %v286_v26 = vpop.f32.mrf.mxu2 }
 0x367   :  { %v289_v27 = vadd.f32 %v286_v26, %v266_v25 }
 0x369   :  { %1063 = vtanh.f32 %v289_v27  ;;  %v989_v29 = vmul.f32 -1.442695, %v289_v27 }
 0x36b   :  { %1065 = vpow2.f32 %v989_v29 }
 0x36f   :  { %v1064_v28 = vpop.eup %1063 }
 0x370   :  { %312 = vrot.lane.b32.xlu1 %v1064_v28, %s1202_s15 }
 0x371   :  { %v1066_v30 = vpop.eup %1065 }
 0x372   :  { %v293_v31 = vadd.f32 1.0, %v1066_v30 }
 0x374   :  { %1067 = vrcp.f32 %v293_v31  ;;  %v305_v37 = vand.u32 2147483648, %v293_v31  ;;  %vm299_vm14 = vweird.f32 %v293_v31  ;;  %v303_v38 = vand.u32 2147483647, %v293_v31 }
 0x376   :  { %v306_v40 = vor.u32 1.1754944e-38, %v305_v37  ;;  %vm304_vm1 = vcmp.eq.f32.partialorder %v303_v38, 8.507059e+37 }
 0x37a   :  { %v1068_v32 = vpop.eup %1067 }
 0x37b   :  { %v295_v33 = vmul.f32 %v1068_v32, %v293_v31  ;;  %vm300_vm13 = vweird.f32 %v1068_v32 }
 0x37c   :  { %vm301_vm15 = vmor %vm299_vm14, %vm300_vm13 }
 0x37d   :  { %v296_v34 = vsub.f32 1.0, %v295_v33 }
 0x37f   :  { %v297_v35 = vmul.f32 %v1068_v32, %v296_v34 }
 0x381   :  { %v298_v36 = vadd.f32 %v1068_v32, %v297_v35 }
 0x383   :  { %v302_v39 = vsel %vm301_vm15, %v1068_v32, %v298_v36 }
 0x384   :  { %v307_v42 = vsel %vm304_vm1, %v306_v40, %v302_v39 }
 0x385   :  { %v310_v44 = vmul.f32 %v307_v42, %v252_v19 }
 0x3e2   :  { %v313_v41 = vpop.permute.xlu1 %312 }
 0x3e3   :  { %v315_v43 = vmul.f32 %v313_v41, %v307_v42 }
 0x3e5   :  { %317 = vrot.lane.b32.xlu2 %v315_v43, %s1206_s4 }
 0x43f   :  { %v318_v45 = vpop.permute.xlu2 %317 }
 0x440   :  { %v320_v46 = vadd.f32 %v318_v45, %v310_v44  ;;  %v470_v44 = vld [vmem:[#allocation2 + $0x8] sm:$0x3] }
 0x442   :  { %1069 = vtanh.f32 %v320_v46 }
 0x448   :  { %v1070_v47 = vpop.eup %1069 }
 0x449   :  { %323 = vrot.lane.b32.xlu1 %v1070_v47, %s1202_s15 }
 0x4bb   :  { %v324_v48 = vpop.permute.xlu1 %323 }
 0x4bc   :  { %v326_v49 = vmul.f32 %v324_v48, %v307_v42 }
 0x4be   :  { %328 = vrot.lane.b32.xlu2 %v326_v49, %s1206_s4 }
 0x518   :  { %v329_v50 = vpop.permute.xlu2 %328 }
 0x519   :  { %332 = vst.msk [vmem:[#allocation3 + $0x2] sm:$0x3] %vm74_vm2, %v329_v50  ;;  %990 = vmatmul.msk.f32.vlgmr.msrb.gmra.mxu0 %vm81_vm0, %v329_v50 }
 0x520   :  { %v748_v51 = vld [vmem:[#allocation3 + $0x2] sm:$0x3] }
 0x521   :  { %765 = vst [vmem:[#allocation1 + $0x1] ss:$4 sm:$0xff] %v748_v51 }
 0x596   :  { %v354_v53 = vpop.f32.mrf.mxu0 }
 0x597   :  { %v357_v54 = vadd.f32 %v354_v53, %v334_v52 }
 0x599   :  { %1071 = vtanh.f32 %v357_v54  ;;  %v991_v56 = vmul.f32 -1.442695, %v357_v54 }
 0x59b   :  { %1073 = vpow2.f32 %v991_v56 }
 0x59f   :  { %v1072_v55 = vpop.eup %1071 }
 0x5a0   :  { %380 = vrot.lane.b32.xlu1 %v1072_v55, %s1202_s15 }
 0x5a1   :  { %v1074_v57 = vpop.eup %1073 }
 0x5a2   :  { %v361_v58 = vadd.f32 1.0, %v1074_v57 }
 0x5a4   :  { %1075 = vrcp.f32 %v361_v58  ;;  %v373_v1 = vand.u32 2147483648, %v361_v58  ;;  %vm367_vm4 = vweird.f32 %v361_v58  ;;  %v371_v3 = vand.u32 2147483647, %v361_v58 }
 0x5a6   :  { %v374_v5 = vor.u32 1.1754944e-38, %v373_v1  ;;  %vm372_vm6 = vcmp.eq.f32.partialorder %v371_v3, 8.507059e+37 }
 0x5aa   :  { %v1076_v59 = vpop.eup %1075 }
 0x5ab   :  { %v363_v60 = vmul.f32 %v1076_v59, %v361_v58  ;;  %vm368_vm3 = vweird.f32 %v1076_v59 }
 0x5ac   :  { %vm369_vm5 = vmor %vm367_vm4, %vm368_vm3 }
 0x5ad   :  { %v364_v61 = vsub.f32 1.0, %v363_v60 }
 0x5af   :  { %v365_v62 = vmul.f32 %v1076_v59, %v364_v61 }
 0x5b1   :  { %v366_v63 = vadd.f32 %v1076_v59, %v365_v62 }
 0x5b3   :  { %v370_v4 = vsel %vm369_vm5, %v1076_v59, %v366_v63 }
 0x5b4   :  { %v375_v7 = vsel %vm372_vm6, %v374_v5, %v370_v4 }
 0x5b5   :  { %v378_v9 = vmul.f32 %v375_v7, %v320_v46 }
 0x612   :  { %v381_v6 = vpop.permute.xlu1 %380 }
 0x613   :  { %v383_v8 = vmul.f32 %v381_v6, %v375_v7 }
 0x615   :  { %385 = vrot.lane.b32.xlu2 %v383_v8, %s1206_s4 }
 0x66f   :  { %v386_v10 = vpop.permute.xlu2 %385 }
 0x670   :  { %v388_v11 = vadd.f32 %v386_v10, %v378_v9  ;;  %v538_v9 = vld [vmem:[#allocation2 + $0xa] sm:$0x3] }
 0x672   :  { %1077 = vtanh.f32 %v388_v11 }
 0x678   :  { %v1078_v12 = vpop.eup %1077 }
 0x679   :  { %391 = vrot.lane.b32.xlu0 %v1078_v12, %s1202_s15 }
 0x6eb   :  { %v392_v13 = vpop.permute.xlu0 %391 }
 0x6ec   :  { %v394_v14 = vmul.f32 %v392_v13, %v375_v7 }
 0x6ee   :  { %396 = vrot.lane.b32.xlu1 %v394_v14, %s1206_s4 }
 0x760   :  { %v397_v15 = vpop.permute.xlu1 %396 }
 0x761   :  { %400 = vst.msk [vmem:[#allocation3 + $0x4] sm:$0x3] %vm74_vm2, %v397_v15  ;;  %992 = vmatmul.msk.f32.vlgmr.msrb.gmra.mxu1 %vm81_vm0, %v397_v15 }
 0x768   :  { %v749_v16 = vld [vmem:[#allocation3 + $0x4] sm:$0x3] }
 0x769   :  { %767 = vst [vmem:[#allocation1 + $0x2] ss:$4 sm:$0xff] %v749_v16 }
 0x7de   :  { %v422_v18 = vpop.f32.mrf.mxu1 }
 0x7df   :  { %v425_v19 = vadd.f32 %v422_v18, %v402_v17 }
 0x7e1   :  { %1079 = vtanh.f32 %v425_v19  ;;  %v993_v21 = vmul.f32 -1.442695, %v425_v19 }
 0x7e3   :  { %1081 = vpow2.f32 %v993_v21 }
 0x7e7   :  { %v1080_v20 = vpop.eup %1079 }
 0x7e8   :  { %448 = vrot.lane.b32.xlu2 %v1080_v20, %s1202_s15 }
 0x7e9   :  { %v1082_v22 = vpop.eup %1081 }
 0x7ea   :  { %v429_v23 = vadd.f32 1.0, %v1082_v22 }
 0x7ec   :  { %1083 = vrcp.f32 %v429_v23  ;;  %v441_v29 = vand.u32 2147483648, %v429_v23  ;;  %vm435_vm8 = vweird.f32 %v429_v23  ;;  %v439_v30 = vand.u32 2147483647, %v429_v23 }
 0x7ee   :  { %v442_v32 = vor.u32 1.1754944e-38, %v441_v29  ;;  %vm440_vm10 = vcmp.eq.f32.partialorder %v439_v30, 8.507059e+37 }
 0x7f2   :  { %v1084_v24 = vpop.eup %1083 }
 0x7f3   :  { %v431_v25 = vmul.f32 %v1084_v24, %v429_v23  ;;  %vm436_vm7 = vweird.f32 %v1084_v24 }
 0x7f4   :  { %vm437_vm9 = vmor %vm435_vm8, %vm436_vm7 }
 0x7f5   :  { %v432_v26 = vsub.f32 1.0, %v431_v25 }
 0x7f7   :  { %v433_v27 = vmul.f32 %v1084_v24, %v432_v26 }
 0x7f9   :  { %v434_v28 = vadd.f32 %v1084_v24, %v433_v27 }
 0x7fb   :  { %v438_v31 = vsel %vm437_vm9, %v1084_v24, %v434_v28 }
 0x7fc   :  { %v443_v34 = vsel %vm440_vm10, %v442_v32, %v438_v31 }
 0x7fd   :  { %v446_v36 = vmul.f32 %v443_v34, %v388_v11 }
 0x842   :  { %v449_v33 = vpop.permute.xlu2 %448 }
 0x843   :  { %v451_v35 = vmul.f32 %v449_v33, %v443_v34 }
 0x845   :  { %453 = vrot.lane.b32.xlu0 %v451_v35, %s1206_s4 }
 0x8b7   :  { %v454_v37 = vpop.permute.xlu0 %453 }
 0x8b8   :  { %v456_v38 = vadd.f32 %v454_v37, %v446_v36  ;;  %v606_v36 = vld [vmem:[#allocation2 + $0xc] sm:$0x3] }
 0x8ba   :  { %1085 = vtanh.f32 %v456_v38 }
 0x8c0   :  { %v1086_v39 = vpop.eup %1085 }
 0x8c1   :  { %459 = vrot.lane.b32.xlu1 %v1086_v39, %s1202_s15 }
 0x933   :  { %v460_v40 = vpop.permute.xlu1 %459 }
 0x934   :  { %v462_v41 = vmul.f32 %v460_v40, %v443_v34 }
 0x936   :  { %464 = vrot.lane.b32.xlu2 %v462_v41, %s1206_s4 }
 0x990   :  { %v465_v42 = vpop.permute.xlu2 %464 }
 0x991   :  { %468 = vst.msk [vmem:[#allocation3 + $0x6] sm:$0x3] %vm74_vm2, %v465_v42  ;;  %994 = vmatmul.msk.f32.vlgmr.msrb.gmra.mxu2 %vm81_vm0, %v465_v42 }
 0x998   :  { %v750_v43 = vld [vmem:[#allocation3 + $0x6] sm:$0x3] }
 0x999   :  { %769 = vst [vmem:[#allocation1 + $0x3] ss:$4 sm:$0xff] %v750_v43 }
 0xa14   :  { %v490_v45 = vpop.f32.mrf.mxu2 }
 0xa15   :  { %v493_v46 = vadd.f32 %v490_v45, %v470_v44 }
 0xa17   :  { %1087 = vtanh.f32 %v493_v46  ;;  %v995_v48 = vmul.f32 -1.442695, %v493_v46 }
 0xa19   :  { %1089 = vpow2.f32 %v995_v48 }
 0xa1d   :  { %v1088_v47 = vpop.eup %1087 }
 0xa1e   :  { %516 = vrot.lane.b32.xlu0 %v1088_v47, %s1202_s15 }
 0xa1f   :  { %v1090_v49 = vpop.eup %1089 }
 0xa20   :  { %v497_v50 = vadd.f32 1.0, %v1090_v49 }
 0xa22   :  { %1091 = vrcp.f32 %v497_v50  ;;  %v509_v56 = vand.u32 2147483648, %v497_v50  ;;  %vm503_vm12 = vweird.f32 %v497_v50  ;;  %v507_v57 = vand.u32 2147483647, %v497_v50 }
 0xa24   :  { %v510_v59 = vor.u32 1.1754944e-38, %v509_v56  ;;  %vm508_vm14 = vcmp.eq.f32.partialorder %v507_v57, 8.507059e+37 }
 0xa28   :  { %v1092_v51 = vpop.eup %1091 }
 0xa29   :  { %v499_v52 = vmul.f32 %v1092_v51, %v497_v50  ;;  %vm504_vm11 = vweird.f32 %v1092_v51 }
 0xa2a   :  { %vm505_vm13 = vmor %vm503_vm12, %vm504_vm11 }
 0xa2b   :  { %v500_v53 = vsub.f32 1.0, %v499_v52 }
 0xa2d   :  { %v501_v54 = vmul.f32 %v1092_v51, %v500_v53 }
 0xa2f   :  { %v502_v55 = vadd.f32 %v1092_v51, %v501_v54 }
 0xa31   :  { %v506_v58 = vsel %vm505_vm13, %v1092_v51, %v502_v55 }
 0xa32   :  { %v511_v61 = vsel %vm508_vm14, %v510_v59, %v506_v58 }
 0xa33   :  { %v514_v63 = vmul.f32 %v511_v61, %v456_v38 }
 0xa90   :  { %v517_v60 = vpop.permute.xlu0 %516 }
 0xa91   :  { %v519_v62 = vmul.f32 %v517_v60, %v511_v61 }
 0xa93   :  { %521 = vrot.lane.b32.xlu1 %v519_v62, %s1206_s4 }
 0xb05   :  { %v522_v1 = vpop.permute.xlu1 %521 }
 0xb06   :  { %v524_v3 = vadd.f32 %v522_v1, %v514_v63  ;;  %v674_v63 = vld [vmem:[#allocation2 + $0xe] sm:$0x3] }
 0xb08   :  { %1093 = vtanh.f32 %v524_v3 }
 0xb0e   :  { %v1094_v4 = vpop.eup %1093 }
 0xb0f   :  { %527 = vrot.lane.b32.xlu2 %v1094_v4, %s1202_s15 }
 0xb69   :  { %v528_v5 = vpop.permute.xlu2 %527 }
 0xb6a   :  { %v530_v6 = vmul.f32 %v528_v5, %v511_v61 }
 0xb6c   :  { %532 = vrot.lane.b32.xlu0 %v530_v6, %s1206_s4 }
 0xbde   :  { %v533_v7 = vpop.permute.xlu0 %532 }
 0xbdf   :  { %536 = vst.msk [vmem:[#allocation3 + $0x8] sm:$0x3] %vm74_vm2, %v533_v7  ;;  %996 = vmatmul.msk.f32.vlgmr.msra.gmra.mxu3 %vm81_vm0, %v533_v7 }
 0xbe6   :  { %v751_v8 = vld [vmem:[#allocation3 + $0x8] sm:$0x3] }
 0xbe7   :  { %771 = vst [vmem:[#allocation1 + $0x20] ss:$4 sm:$0xff] %v751_v8 }
 0xc62   :  { %v558_v10 = vpop.f32.mrf.mxu3 }
 0xc63   :  { %v561_v11 = vadd.f32 %v558_v10, %v538_v9 }
 0xc65   :  { %1095 = vtanh.f32 %v561_v11  ;;  %v997_v13 = vmul.f32 -1.442695, %v561_v11 }
 0xc67   :  { %1097 = vpow2.f32 %v997_v13 }
 0xc6b   :  { %v1096_v12 = vpop.eup %1095 }
 0xc6c   :  { %584 = vrot.lane.b32.xlu1 %v1096_v12, %s1202_s15 }
 0xc6d   :  { %v1098_v14 = vpop.eup %1097 }
 0xc6e   :  { %v565_v15 = vadd.f32 1.0, %v1098_v14 }
 0xc70   :  { %1099 = vrcp.f32 %v565_v15  ;;  %v577_v21 = vand.u32 2147483648, %v565_v15  ;;  %vm571_vm1 = vweird.f32 %v565_v15  ;;  %v575_v22 = vand.u32 2147483647, %v565_v15 }
 0xc72   :  { %v578_v24 = vor.u32 1.1754944e-38, %v577_v21  ;;  %vm576_vm4 = vcmp.eq.f32.partialorder %v575_v22, 8.507059e+37 }
 0xc76   :  { %v1100_v16 = vpop.eup %1099 }
 0xc77   :  { %v567_v17 = vmul.f32 %v1100_v16, %v565_v15  ;;  %vm572_vm15 = vweird.f32 %v1100_v16 }
 0xc78   :  { %vm573_vm3 = vmor %vm571_vm1, %vm572_vm15 }
 0xc79   :  { %v568_v18 = vsub.f32 1.0, %v567_v17 }
 0xc7b   :  { %v569_v19 = vmul.f32 %v1100_v16, %v568_v18 }
 0xc7d   :  { %v570_v20 = vadd.f32 %v1100_v16, %v569_v19 }
 0xc7f   :  { %v574_v23 = vsel %vm573_vm3, %v1100_v16, %v570_v20 }
 0xc80   :  { %v579_v26 = vsel %vm576_vm4, %v578_v24, %v574_v23 }
 0xc81   :  { %v582_v28 = vmul.f32 %v579_v26, %v524_v3 }
 0xcde   :  { %v585_v25 = vpop.permute.xlu1 %584 }
 0xcdf   :  { %v587_v27 = vmul.f32 %v585_v25, %v579_v26 }
 0xce1   :  { %589 = vrot.lane.b32.xlu2 %v587_v27, %s1206_s4  ;;  %v1032_v27 = vld [vmem:[#allocation10] sm:$0xff] }
 0xd3b   :  { %v590_v29 = vpop.permute.xlu2 %589 }
 0xd3c   :  { %v592_v30 = vadd.f32 %v590_v29, %v582_v28 }
 0xd3e   :  { %1101 = vtanh.f32 %v592_v30 }
 0xd44   :  { %v1102_v31 = vpop.eup %1101 }
 0xd45   :  { %595 = vrot.lane.b32.xlu0 %v1102_v31, %s1202_s15  ;;  %v778_v31 = vld.sshfl [vmem:[#allocation1] sm:$0xff pattern:$0x73625140] }
 0xdb7   :  { %v596_v32 = vpop.permute.xlu0 %595 }
 0xdb8   :  { %v598_v33 = vmul.f32 %v596_v32, %v579_v26  ;;  %v1033_v26 = vld [vmem:[#allocation10 + $0x8] sm:$0xff] }
 0xdb9   :  { %810 = vmatpush.bf16.msra.mxu2 %v1033_v26 }
 0xdba   :  { %600 = vrot.lane.b32.xlu1 %v598_v33, %s1206_s4  ;;  %v1380_v33 = vadd.f32 %v778_v31, %v1262_v0 }
 0xdbd   :  { %811 = vmatpush.bf16.msra.mxu2 %v1032_v27 }
 0xe2c   :  { %v601_v34 = vpop.permute.xlu1 %600 }
 0xe2d   :  { %604 = vst.msk [vmem:[#allocation3 + $0xa] sm:$0x3] %vm74_vm2, %v601_v34  ;;  %998 = vmatmul.msk.f32.vlgmr.msra.gmra.mxu0 %vm81_vm0, %v601_v34 }
 0xe34   :  { %v752_v35 = vld [vmem:[#allocation3 + $0xa] sm:$0x3] }
 0xe35   :  { %773 = vst [vmem:[#allocation1 + $0x21] ss:$4 sm:$0xff] %v752_v35 }
 0xeaa   :  { %v626_v37 = vpop.f32.mrf.mxu0 }
 0xeab   :  { %v629_v38 = vadd.f32 %v626_v37, %v606_v36 }
 0xead   :  { %1103 = vtanh.f32 %v629_v38  ;;  %v999_v40 = vmul.f32 -1.442695, %v629_v38 }
 0xeaf   :  { %1105 = vpow2.f32 %v999_v40 }
 0xeb3   :  { %v1104_v39 = vpop.eup %1103 }
 0xeb4   :  { %652 = vrot.lane.b32.xlu2 %v1104_v39, %s1202_s15 }
 0xeb5   :  { %v1106_v41 = vpop.eup %1105 }
 0xeb6   :  { %v633_v42 = vadd.f32 1.0, %v1106_v41 }
 0xeb8   :  { %1107 = vrcp.f32 %v633_v42  ;;  %v645_v48 = vand.u32 2147483648, %v633_v42  ;;  %vm639_vm6 = vweird.f32 %v633_v42  ;;  %v643_v49 = vand.u32 2147483647, %v633_v42 }
 0xeba   :  { %v646_v51 = vor.u32 1.1754944e-38, %v645_v48  ;;  %vm644_vm8 = vcmp.eq.f32.partialorder %v643_v49, 8.507059e+37 }
 0xebe   :  { %v1108_v43 = vpop.eup %1107 }
 0xebf   :  { %v635_v44 = vmul.f32 %v1108_v43, %v633_v42  ;;  %vm640_vm5 = vweird.f32 %v1108_v43 }
 0xec0   :  { %vm641_vm7 = vmor %vm639_vm6, %vm640_vm5  ;;  %vm949_vm6 = vcmask 523264  }
 0xec1   :  { %v636_v45 = vsub.f32 1.0, %v635_v44 }
 0xec3   :  { %v637_v46 = vmul.f32 %v1108_v43, %v636_v45 }
 0xec5   :  { %v638_v47 = vadd.f32 %v1108_v43, %v637_v46 }
 0xec7   :  { %v642_v50 = vsel %vm641_vm7, %v1108_v43, %v638_v47 }
 0xec8   :  { %v647_v53 = vsel %vm644_vm8, %v646_v51, %v642_v50 }
 0xec9   :  { %v650_v55 = vmul.f32 %v647_v53, %v592_v30 }
 0xf0e   :  { %v653_v52 = vpop.permute.xlu2 %652 }
 0xf0f   :  { %v655_v54 = vmul.f32 %v653_v52, %v647_v53 }
 0xf11   :  { %657 = vrot.lane.b32.xlu0 %v655_v54, %s1206_s4 }
 0xf83   :  { %v658_v56 = vpop.permute.xlu0 %657 }
 0xf84   :  { %v660_v57 = vadd.f32 %v658_v56, %v650_v55 }
 0xf86   :  { %1109 = vtanh.f32 %v660_v57 }
 0xf8c   :  { %v1110_v58 = vpop.eup %1109 }
 0xf8d   :  { %663 = vrot.lane.b32.xlu1 %v1110_v58, %s1202_s15 }
 0xfff   :  { %v664_v59 = vpop.permute.xlu1 %663 }
0x1000   :  { %v666_v60 = vmul.f32 %v664_v59, %v647_v53 }
0x1002   :  { %668 = vrot.lane.b32.xlu2 %v666_v60, %s1206_s4 }
0x105c   :  { %v669_v61 = vpop.permute.xlu2 %668 }
0x105d   :  { %672 = vst.msk [vmem:[#allocation3 + $0xc] sm:$0x3] %vm74_vm2, %v669_v61  ;;  %1000 = vmatmul.msk.f32.vlgmr.msra.gmra.mxu1 %vm81_vm0, %v669_v61 }
0x1064   :  { %v753_v62 = vld [vmem:[#allocation3 + $0xc] sm:$0x3] }
0x1065   :  { %775 = vst [vmem:[#allocation1 + $0x22] ss:$4 sm:$0xff] %v753_v62 }
0x10da   :  { %v694_v1 = vpop.f32.mrf.mxu1 }
0x10db   :  { %v697_v3 = vadd.f32 %v694_v1, %v674_v63 }
0x10dd   :  { %1111 = vtanh.f32 %v697_v3  ;;  %v1001_v5 = vmul.f32 -1.442695, %v697_v3 }
0x10df   :  { %1113 = vpow2.f32 %v1001_v5 }
0x10e3   :  { %v1112_v4 = vpop.eup %1111 }
0x10e4   :  { %720 = vrot.lane.b32.xlu0 %v1112_v4, %s1202_s15 }
0x10e5   :  { %v1114_v6 = vpop.eup %1113 }
0x10e6   :  { %v701_v7 = vadd.f32 1.0, %v1114_v6  ;;  %v1037_v6 = vld [vmem:[%s1438_s6 + $0x18] sm:$0xff] }
0x10e7   :  { %957 = vmatpush.bf16.msrb.mxu3 %v1037_v6 }
0x10e8   :  { %1115 = vrcp.f32 %v701_v7  ;;  %v713_v13 = vand.u32 2147483648, %v701_v7  ;;  %vm707_vm10 = vweird.f32 %v701_v7  ;;  %v711_v14 = vand.u32 2147483647, %v701_v7 }
0x10ea   :  { %v714_v16 = vor.u32 1.1754944e-38, %v713_v13  ;;  %vm712_vm12 = vcmp.eq.f32.partialorder %v711_v14, 8.507059e+37 }
0x10ee   :  { %v1116_v8 = vpop.eup %1115 }
0x10ef   :  { %v703_v9 = vmul.f32 %v1116_v8, %v701_v7  ;;  %vm708_vm9 = vweird.f32 %v1116_v8  ;;  %v1036_v7 = vld [vmem:[%s1438_s6 + $0x10] sm:$0xff] }
0x10f0   :  { %vm709_vm11 = vmor %vm707_vm10, %vm708_vm9  ;;  %958 = vmatpush.bf16.msrb.mxu3 %v1036_v7 }
0x10f1   :  { %v704_v10 = vsub.f32 1.0, %v703_v9 }
0x10f3   :  { %v705_v11 = vmul.f32 %v1116_v8, %v704_v10  ;;  %v1035_v10 = vld [vmem:[%s1438_s6 + $0x8] sm:$0xff] }
0x10f4   :  { %959 = vmatpush.bf16.msrb.mxu3 %v1035_v10 }
0x10f5   :  { %v706_v12 = vadd.f32 %v1116_v8, %v705_v11 }
0x10f7   :  { %v710_v15 = vsel %vm709_vm11, %v1116_v8, %v706_v12 }
0x10f8   :  { %v715_v18 = vsel %vm712_vm12, %v714_v16, %v710_v15 }
0x10f9   :  { %v718_v20 = vmul.f32 %v715_v18, %v660_v57 }
0x1156   :  { %v721_v17 = vpop.permute.xlu0 %720 }
0x1157   :  { %v723_v19 = vmul.f32 %v721_v17, %v715_v18 }
0x1159   :  { %725 = vrot.lane.b32.xlu1 %v723_v19, %s1206_s4 }
0x11cb   :  { %v726_v21 = vpop.permute.xlu1 %725 }
0x11cc   :  { %v728_v22 = vadd.f32 %v726_v21, %v718_v20 }
0x11ce   :  { %1117 = vtanh.f32 %v728_v22 }
0x11d4   :  { %v1118_v23 = vpop.eup %1117 }
0x11d5   :  { %731 = vrot.lane.b32.xlu2 %v1118_v23, %s1202_s15  ;;  %v1034_v23 = vld [vmem:[%s1438_s6] sm:$0xff] }
0x11d6   :  { %960 = vmatpush.bf16.msrb.mxu3 %v1034_v23 }
0x122f   :  { %v732_v24 = vpop.permute.xlu2 %731 }
0x1230   :  { %v734_v25 = vmul.f32 %v732_v24, %v715_v18 }
0x1232   :  { %736 = vrot.lane.b32.xlu0 %v734_v25, %s1206_s4 }
0x123a   :  { %743 = vrot.lane.b32.xlu0 %v728_v22, %s1207_s29 }
0x12a4   :  { %v737_v28 = vpop.permute.xlu0 %736 }
0x12a5   :  { %740 = vst.msk [vmem:[#allocation3 + $0xe] sm:$0x3] %vm74_vm2, %v737_v28 }
0x12a6   :  { %741 = vst.msk [vmem:[#allocation4] sm:$0x3] %vm74_vm2, %v737_v28 }
0x12ac   :  { %v754_v29 = vld [vmem:[#allocation3 + $0xe] sm:$0x3]  ;;  %v744_v30 = vpop.permute.xlu0 %743 }
0x12ad   :  { %777 = vst [vmem:[#allocation1 + $0x23] ss:$4 sm:$0xff] %v754_v29 }
0x12ae   :  { %746 = vst.msk [vmem:[#allocation5] sm:$0x3] %vm74_vm2, %v744_v30 }
0x12b4   :  { %v779_v32 = vld.sshfl [vmem:[#allocation1 + $0x20] sm:$0xff pattern:$0x73625140] }
0x12b5   :  { %v1383_v34 = vadd.f32 %v779_v32, %v1269_v2 }
0x12b7   :  { %v784_v35 = vpack.c.bf16 %v1383_v34, %v1380_v33 }
0x12b9   :  { %1010 = vmatmul.msk.bf16.vlgmr.msra.gmra.mxu2 %vm81_vm0, %v784_v35 }
0x133c   :  { %v1388_v36 = vpop.f32.mrf.mxu2 }
0x133d   :  { %908 = vrot.lane.b32.xlu1 %v1388_v36, %s1202_s15  ;;  %v1397_v0 = vmul.f32 0.70710677, %v1388_v36 }
0x133f   :  { %v822_v38 = vmul.f32 %v1397_v0, %v1397_v0 }
0x1341   :  { %v823_v40 = vmin.f32 %v822_v38, 16.0 }
0x1343   :  { %v835_v42 = vmul.f32 3.8918573e-05, %v823_v40  ;;  %v824_v57 = vmul.f32 2.1237322e-06, %v823_v40 }
0x1344   :  { %v1392_v37 = vpop.f32.mrf.mxu2 }
0x1345   :  { %910 = vrot.lane.b32.xlu2 %v1392_v37, %s1202_s15  ;;  %v1400_v2 = vmul.f32 0.70710677, %v1392_v37  ;;  %v836_v44 = vadd.f32 0.001143296, %v835_v42  ;;  %v825_v61 = vadd.f32 0.00028619796, %v824_v57 }
0x1346   :  { %v819_v57 = vmul.f32 0.5, %v1392_v37 }
0x1347   :  { %v862_v39 = vmul.f32 %v1400_v2, %v1400_v2  ;;  %v837_v46 = vmul.f32 %v836_v44, %v823_v40  ;;  %v826_v3 = vmul.f32 %v825_v61, %v823_v40 }
0x1349   :  { %v863_v41 = vmin.f32 %v862_v39, 16.0  ;;  %v838_v48 = vadd.f32 0.014752088, %v837_v46  ;;  %v827_v8 = vadd.f32 0.0036580483, %v826_v3 }
0x134b   :  { %v875_v43 = vmul.f32 3.8918573e-05, %v863_v41  ;;  %v839_v50 = vmul.f32 %v838_v48, %v823_v40  ;;  %v864_v59 = vmul.f32 2.1237322e-06, %v863_v41  ;;  %v828_v11 = vmul.f32 %v827_v8, %v823_v40 }
0x134d   :  { %v876_v45 = vadd.f32 0.001143296, %v875_v43  ;;  %v840_v52 = vadd.f32 0.112945676, %v839_v50  ;;  %v865_v63 = vadd.f32 0.00028619796, %v864_v59 }
0x134e   :  { %v829_v15 = vadd.f32 0.05243302, %v828_v11 }
0x134f   :  { %v877_v47 = vmul.f32 %v876_v45, %v863_v41  ;;  %v841_v54 = vmul.f32 %v840_v52, %v823_v40  ;;  %v866_v5 = vmul.f32 %v865_v63, %v863_v41 }
0x1350   :  { %v830_v19 = vmul.f32 %v829_v15, %v823_v40 }
0x1351   :  { %v878_v49 = vadd.f32 0.014752088, %v877_v47  ;;  %v842_v56 = vadd.f32 0.4994258, %v841_v54  ;;  %v867_v9 = vadd.f32 0.0036580483, %v866_v5 }
0x1352   :  { %v831_v24 = vadd.f32 0.18741608, %v830_v19 }
0x1353   :  { %v879_v51 = vmul.f32 %v878_v49, %v863_v41  ;;  %v843_v60 = vmul.f32 %v842_v56, %v823_v40  ;;  %v868_v13 = vmul.f32 %v867_v9, %v863_v41  ;;  %v818_v56 = vmul.f32 0.5, %v1388_v36 }
0x1354   :  { %v832_v28 = vmul.f32 %v831_v24, %v823_v40 }
0x1355   :  { %v880_v53 = vadd.f32 0.112945676, %v879_v51  ;;  %v844_v1 = vadd.f32 1.0, %v843_v60  ;;  %v869_v16 = vadd.f32 0.05243302, %v868_v13 }
0x1356   :  { %v833_v42 = vadd.f32 1.1283791, %v832_v28 }
0x1357   :  { %v881_v55 = vmul.f32 %v880_v53, %v863_v41  ;;  %1119 = vrcp.f32 %v844_v1  ;;  %v870_v20 = vmul.f32 %v869_v16, %v863_v41  ;;  %vm850_vm14 = vweird.f32 %v844_v1 }
0x1358   :  { %v856_v35 = vand.u32 2147483648, %v844_v1  ;;  %v854_v39 = vand.u32 2147483647, %v844_v1  ;;  %v834_v48 = vmul.f32 %v833_v42, %v1397_v0 }
0x1359   :  { %v882_v58 = vadd.f32 0.4994258, %v881_v55  ;;  %v871_v25 = vadd.f32 0.18741608, %v870_v20 }
0x135a   :  { %v857_v47 = vor.u32 1.1754944e-38, %v856_v35  ;;  %vm855_vm5 = vcmp.eq.f32.partialorder %v854_v39, 8.507059e+37 }
0x135b   :  { %v883_v62 = vmul.f32 %v882_v58, %v863_v41  ;;  %v872_v29 = vmul.f32 %v871_v25, %v863_v41 }
0x135d   :  { %v884_v4 = vadd.f32 1.0, %v883_v62  ;;  %v1120_v12 = vpop.eup %1119  ;;  %v873_v43 = vadd.f32 1.1283791, %v872_v29 }
0x135e   :  { %v846_v18 = vmul.f32 %v1120_v12, %v844_v1  ;;  %vm851_vm2 = vweird.f32 %v1120_v12 }
0x135f   :  { %1121 = vrcp.f32 %v884_v4  ;;  %v896_v32 = vand.u32 2147483648, %v884_v4  ;;  %vm890_vm15 = vweird.f32 %v884_v4  ;;  %v894_v38 = vand.u32 2147483647, %v884_v4  ;;  %vm852_vm1 = vmor %vm850_vm14, %vm851_vm2 }
0x1360   :  { %v847_v22 = vsub.f32 1.0, %v846_v18  ;;  %v874_v49 = vmul.f32 %v873_v43, %v1400_v2 }
0x1361   :  { %v897_v46 = vor.u32 1.1754944e-38, %v896_v32  ;;  %vm895_vm4 = vcmp.eq.f32.partialorder %v894_v38, 8.507059e+37 }
0x1362   :  { %v848_v27 = vmul.f32 %v1120_v12, %v847_v22 }
0x1364   :  { %v849_v31 = vadd.f32 %v1120_v12, %v848_v27 }
0x1365   :  { %v1122_v14 = vpop.eup %1121 }
0x1366   :  { %v886_v17 = vmul.f32 %v1122_v14, %v884_v4  ;;  %vm891_vm13 = vweird.f32 %v1122_v14  ;;  %v853_v45 = vsel %vm852_vm1, %v1120_v12, %v849_v31 }
0x1367   :  { %vm892_vm3 = vmor %vm890_vm15, %vm891_vm13  ;;  %v858_v41 = vsel %vm855_vm5, %v857_v47, %v853_v45 }
0x1368   :  { %v887_v21 = vsub.f32 1.0, %v886_v17  ;;  %v859_v51 = vmul.f32 %v858_v41, %v834_v48 }
0x136a   :  { %v888_v26 = vmul.f32 %v1122_v14, %v887_v21  ;;  %v1011_v53 = vclamps-f32 %v859_v51, 1.0 }
0x136c   :  { %v889_v30 = vadd.f32 %v1122_v14, %v888_v26  ;;  %v902_v55 = vadd.f32 1.0, %v1011_v53 }
0x136e   :  { %v893_v44 = vsel %vm892_vm3, %v1122_v14, %v889_v30  ;;  %v904_v60 = vmul.f32 %v902_v55, %v818_v56 }
0x136f   :  { %v898_v40 = vsel %vm895_vm4, %v897_v46, %v893_v44 }
0x1370   :  { %v899_v50 = vmul.f32 %v898_v40, %v874_v49 }
0x1372   :  { %v1012_v52 = vclamps-f32 %v899_v50, 1.0 }
0x1374   :  { %v903_v54 = vadd.f32 1.0, %v1012_v52 }
0x1376   :  { %v905_v59 = vmul.f32 %v903_v54, %v819_v57 }
0x139f   :  { %v911_v58 = vpop.permute.xlu2 %910 }
0x13a0   :  { %v915_v62 = vmul.f32 %v911_v58, %v905_v59 }
0x13af   :  { %v909_v61 = vpop.permute.xlu1 %908 }
0x13b0   :  { %v914_v63 = vmul.f32 %v909_v61, %v904_v60 }
0x13b2   :  { %v916_v0 = vpack.c.bf16 %v915_v62, %v914_v63 }
0x13b4   :  { %1029 = vmatmul.msk.bf16.vlgmr.msrb.gmra.mxu3 %vm949_vm6, %v916_v0 }
0x1437   :  { %v962_v2 = vpop.f32.mrf.mxu3 }
0x1438   :  { %v967_v1 = vadd.f32 %v962_v2, %v1380_v33 }
0x143a   :  { %969 = vst.msk [vmem:[%s1439_s7] sm:$0xff] %vm81_vm0, %v967_v1 }
0x143f   :  { %v964_v36 = vpop.f32.mrf.mxu3 }
0x1440   :  { %v968_v37 = vadd.f32 %v964_v36, %v1383_v34 }
0x1442   :  { %970 = vst.msk [vmem:[%s1439_s7 + $0x8] sm:$0xff] %vm81_vm0, %v968_v37 }
0x1443   :  { %975 = vsyncpa [#allocation7], 1 }
0x1444   :  { %976 = vsyncpa [#allocation9], 1 }

</bundles_post_ra>
